<compile_context>
chip_gen: v7x
topology: tpu7x:2x2x1
jax: 0.10.0
libtpu: 0.0.40
codegen_flags: <defaults>
</compile_context>

<pallas_src>
import jax
import jax.numpy as jnp
from jax.experimental import pallas as pl
from jax.experimental.pallas import tpu as pltpu

EPS = 1e-5  # PyTorch BatchNorm default eps


def _silu(v):
    return v * jax.nn.sigmoid(v)


# ----------------------------------------------------------------- kernel body

def _make_fused_kernel(nblocks, k):
    """Whole LegNet forward; TB batch elements per grid step, all in VMEM."""
    pad = (k - 1) // 2

    def kernel(*refs):
        x_ref, bias_ref = refs[0], refs[1]
        o_ref, pad_ref = refs[-2], refs[-1]
        w_it = iter(refs[2:-2])

        TB, L, _ = x_ref.shape
        Cmax = pad_ref.shape[-1]

        # Zero the halo rows of the shared padded scratch once per step
        # (interior is always (re)written before it is read).
        if pad > 0:
            pad_ref[:, :pad, :] = jnp.zeros((TB, pad, Cmax), jnp.float32)
            pad_ref[:, pad + L:, :] = jnp.zeros((TB, pad, Cmax), jnp.float32)

        bias_row = [0]

        def next_bias(width):
            r = bias_row[0]
            bias_row[0] += 1
            return bias_ref[r:r + 1, :width]                 # (1, width)

        def conv_taps(x3, w_ref):
            """'same' Conv1d (stride 1) as k per-tap matmuls.

            x3: (TB, L, Cin) value; w_ref: (k, Cin, Cout).
            Returns pre-bias / pre-activation (TB*L, Cout) f32."""
            _, _, Cin = x3.shape
            kk, _, Cout = w_ref.shape
            if kk == 1:                                      # 1x1: single matmul
                return jnp.dot(x3.reshape(TB * L, Cin), w_ref[0],
                               preferred_element_type=jnp.float32)
            # write the interior of the persistent zero-haloed scratch once
            pad_ref[:, pad:pad + L, :Cin] = x3
            acc = jnp.zeros((TB * L, Cout), jnp.float32)
            for t in range(kk):                              # k shifted views, no pad copies
                xt = pad_ref[:, t:t + L, :Cin].reshape(TB * L, Cin)
                acc = acc + jnp.dot(xt, w_ref[t], preferred_element_type=jnp.float32)
            return acc

        def conv_layer(x3, w_ref, apply_act):
            Cout = w_ref.shape[-1]
            y = conv_taps(x3, w_ref) + next_bias(Cout)
            if apply_act:
                y = _silu(y)
            return y.reshape(TB, L, Cout)

        x = x_ref[...].astype(jnp.float32)                   # (TB, L, Cin)
        x = conv_layer(x, next(w_it), True)                  # blc0: conv(ks)+BN+SiLU

        for _ in range(nblocks):
            h = conv_layer(x, next(w_it), True)              # 1x1 expand
            h = conv_layer(h, next(w_it), True)              # grouped conv (block-diag dense)
            # Squeeze-and-Excite (resident in VMEM / vregs)
            w_se1 = next(w_it)
            pooled = jnp.mean(h, axis=1)                     # (TB, mid)
            hid = _silu(jnp.dot(pooled, w_se1[...], preferred_element_type=jnp.float32)
                        + next_bias(w_se1.shape[-1]))
            w_se2 = next(w_it)
            gate = jax.nn.sigmoid(
                jnp.dot(hid, w_se2[...], preferred_element_type=jnp.float32)
                + next_bias(w_se2.shape[-1]))
            h = h * gate[:, None, :]
            h = conv_layer(h, next(w_it), True)              # 1x1 project
            # resize conv on concat([x, h]) == conv(x, Wa) + conv(h, Wb): no lane concat
            wr_a, wr_b = next(w_it), next(w_it)
            sz = wr_a.shape[-1]
            y = conv_taps(x, wr_a) + conv_taps(h, wr_b) + next_bias(sz)
            x = _silu(y).reshape(TB, L, sz)
            # maxpooling = nn.Identity() (use_max_pooling=False)

        x = conv_layer(x, next(w_it), False)                 # mapper: 1x1 conv + bias
        # head: AdaptiveAvgPool1d(1)+Flatten, [Dropout=id], Linear+BN+SiLU, Linear
        p = jnp.mean(x, axis=1)                              # (TB, M)
        wh1 = next(w_it)
        hh = _silu(jnp.dot(p, wh1[...], preferred_element_type=jnp.float32)
                   + next_bias(wh1.shape[-1]))
        wh2 = next(w_it)
        out = (jnp.dot(hh, wh2[...], preferred_element_type=jnp.float32)
               + next_bias(wh2.shape[-1]))
        o_ref[...] = out.reshape(o_ref.shape).astype(o_ref.dtype)

    return kernel


# ----------------------------------------------------------------- weight preparation

def _fold_bn(bnp):
    s = bnp['gamma'] / jnp.sqrt(bnp['var'] + EPS)
    return s, bnp['beta'] - bnp['mean'] * s


def prepare_params(P, cfg):
    """Fold BN (eval) into weights, build per-tap weight stacks, block-diagonal
    grouped-conv weights, split resize weights and one packed bias table.
    Runs ONCE, outside the forward."""
    k, fpg = cfg['ks'], cfg['filter_per_group']
    cs = cfg['conv_sizes']
    nblocks = len(cs) - 1
    weights, biases = [], []

    def add_bias(v):
        biases.append(jnp.asarray(v, jnp.float32).reshape(-1))

    # blc0: torch (C0, Cin, k) -> per-tap (k, Cin, C0), BN scale folded
    s, t = _fold_bn(P['blc0']['bn'])
    weights.append(jnp.transpose(P['blc0']['w'], (2, 1, 0)) * s)
    add_bias(t)

    for i in range(nblocks):
        pi = P[f'inv_res_blc{i}']
        mid = pi['w1'].shape[0]
        prev = cs[i]
        # 1x1 expand
        s1, t1 = _fold_bn(pi['bn1'])
        weights.append((pi['w1'][:, :, 0].T * s1)[None])              # (1, prev, mid)
        add_bias(t1)
        # grouped conv -> block-diagonal dense per-tap weight (k, mid, mid)
        s2, t2 = _fold_bn(pi['bn2'])
        w2 = pi['w2']                                                 # (mid, fpg, k)
        wd = jnp.zeros((k, mid, mid), jnp.float32)
        cout = jnp.arange(mid)
        for j in range(fpg):
            cin = (cout // fpg) * fpg + j
            wd = wd.at[:, cin, cout].set(w2[:, j, :].T)               # values (k, mid)
        weights.append(wd * s2[None, None, :])
        add_bias(t2)
        # SE (fc weights pre-transposed to (in, out))
        weights.append(pi['se_w1'].T)
        add_bias(pi['se_b1'])
        weights.append(pi['se_w2'].T)
        add_bias(pi['se_b2'])
        # 1x1 project
        s3, t3 = _fold_bn(pi['bn3'])
        weights.append((pi['w3'][:, :, 0].T * s3)[None])              # (1, mid, prev)
        add_bias(t3)
        # resize conv split into the x-half and h-half (avoids the lane concat)
        pr = P[f'resize_blc{i}']
        sr, tr = _fold_bn(pr['bn'])
        wr = jnp.transpose(pr['w'], (2, 1, 0)) * sr                   # (k, 2*prev, sz)
        weights.append(wr[:, :prev, :])
        weights.append(wr[:, prev:, :])
        add_bias(tr)

    pm = P['mapper']                                                  # 1x1 conv w/ bias
    weights.append(pm['w'][:, :, 0].T[None])
    add_bias(pm['b'])

    ph = P['head']
    sh, th = _fold_bn(ph['bn1'])
    weights.append(ph['w1'].T * sh)                                   # (M, l0)
    add_bias(ph['b1'] * sh + th)
    out = cfg['out_channels']
    out_pad = ((out + 127) // 128) * 128                              # lane-dense store path
    l0 = ph['w2'].shape[1]
    weights.append(jnp.zeros((l0, out_pad), jnp.float32).at[:, :out].set(ph['w2'].T))
    add_bias(jnp.zeros((out_pad,), jnp.float32).at[:out].set(ph['b2']))

    # pack all bias / folded-BN-shift rows into ONE lane-padded array (one ref)
    bpad = max(((int(b.shape[0]) + 127) // 128) * 128 for b in biases)
    bias_pack = jnp.zeros((len(biases), bpad), jnp.float32)
    for r, b in enumerate(biases):
        bias_pack = bias_pack.at[r, :b.shape[0]].set(b)
    return weights, bias_pack


# ----------------------------------------------------------------- forward wrapper

def _const_index_map(ndim):
    return lambda b: (0,) * ndim


def forward_pallas(x_ncl, weights, bias_pack, cfg, batch_tile=4):
    B, Cin, L = x_ncl.shape
    cs = cfg['conv_sizes']
    nblocks = len(cs) - 1
    k, rf = cfg['ks'], cfg['resize_factor']
    pad = (k - 1) // 2
    out_pad = weights[-1].shape[-1]

    # NCL -> NLC (channels on the lane axis).
    # TODO(synk): for large inputs feed (B, L, Cin) straight from the data
    # pipeline instead of paying this transpose as a separate XLA op.
    x = jnp.transpose(x_ncl, (0, 2, 1))

    tb = min(batch_tile, B)
    Bp = ((B + tb - 1) // tb) * tb
    if Bp != B:
        x = jnp.concatenate([x, jnp.zeros((Bp - B, L, Cin), x.dtype)], axis=0)
    nsteps = Bp // tb

    # widest input ever fed to a k-tap conv -> scratch channel width
    cmax = max([cfg['in_channels']] + [c * rf for c in cs[1:]] + list(cs[:-1]))

    in_specs = [pl.BlockSpec((tb, L, Cin), lambda b: (b, 0, 0)),
                pl.BlockSpec(bias_pack.shape, _const_index_map(bias_pack.ndim))]
    for w in weights:
        in_specs.append(pl.BlockSpec(w.shape, _const_index_map(w.ndim)))

    y = pl.pallas_call(
        _make_fused_kernel(nblocks, k),
        grid=(nsteps,),                  # batch tiles; even count keeps both v7x TCs busy
        out_shape=jax.ShapeDtypeStruct((nsteps, tb, out_pad), jnp.float32),
        in_specs=in_specs,
        out_specs=pl.BlockSpec((1, tb, out_pad), lambda b: (b, 0, 0)),
        scratch_shapes=[pltpu.VMEM((tb, L + 2 * pad, cmax), jnp.float32)],
        compiler_params=pltpu.CompilerParams(
            dimension_semantics=("parallel",),
            vmem_limit_bytes=32 * 1024 * 1024),
    )(x, bias_pack, *weights)
    return y.reshape(Bp, out_pad)[:B, :cfg['out_channels']]


# ----------------------------------------------------------------- pure-JAX reference

def ref_forward(x, P, cfg):
    silu = lambda v: v * jax.nn.sigmoid(v)

    def conv(x, w, groups=1, bias=None):
        k = w.shape[-1]
        pad = (k - 1) // 2
        y = jax.lax.conv_general_dilated(
            x, w, window_strides=(1,), padding=[(pad, pad)],
            dimension_numbers=('NCH', 'OIH', 'NCH'), feature_group_count=groups)
        if bias is not None:
            y = y + bias[None, :, None]
        return y

    def bn(x, p):
        s = p['gamma'] / jnp.sqrt(p['var'] + EPS)
        return (x - p['mean'][None, :, None]) * s[None, :, None] + p['beta'][None, :, None]

    x = silu(bn(conv(x, P['blc0']['w']), P['blc0']['bn']))
    for i in range(len(cfg['conv_sizes']) - 1):
        pi = P[f'inv_res_blc{i}']
        mid = pi['w1'].shape[0]
        h = silu(bn(conv(x, pi['w1']), pi['bn1']))
        h = silu(bn(conv(h, pi['w2'], groups=mid // cfg['filter_per_group']), pi['bn2']))
        y = h.mean(axis=2)
        y = silu(y @ pi['se_w1'].T + pi['se_b1'])
        y = jax.nn.sigmoid(y @ pi['se_w2'].T + pi['se_b2'])
        h = h * y[:, :, None]
        h = silu(bn(conv(h, pi['w3']), pi['bn3']))
        x = jnp.concatenate([x, h], axis=1)
        pr = P[f'resize_blc{i}']
        x = silu(bn(conv(x, pr['w']), pr['bn']))
    pm = P['mapper']
    x = conv(x, pm['w'], bias=pm['b'])
    p = x.mean(axis=2)
    ph = P['head']
    h = p @ ph['w1'].T + ph['b1']
    s = ph['bn1']['gamma'] / jnp.sqrt(ph['bn1']['var'] + EPS)
    h = (h - ph['bn1']['mean']) * s + ph['bn1']['beta']
    h = silu(h)
    return h @ ph['w2'].T + ph['b2']


# ----------------------------------------------------------------- params / main

def init_params(key, cfg):
    keys = iter(jax.random.split(key, 256))

    def nrm(shape, scale=0.05):
        return scale * jax.random.normal(next(keys), shape, jnp.float32)

    def bn(c):
        return dict(gamma=1.0 + nrm((c,)), beta=nrm((c,)),
                    mean=nrm((c,)), var=0.5 + jnp.abs(nrm((c,), 1.0)))

    cs, ks = cfg['conv_sizes'], cfg['ks']
    rf, fpg, red = cfg['resize_factor'], cfg['filter_per_group'], cfg['se_reduction']
    P = {'blc0': dict(w=nrm((cs[0], cfg['in_channels'], ks)), bn=bn(cs[0]))}
    for i, (prev, sz) in enumerate(zip(cs[:-1], cs[1:])):
        mid = sz * rf
        P[f'inv_res_blc{i}'] = dict(
            w1=nrm((mid, prev, 1)), bn1=bn(mid),
            w2=nrm((mid, fpg, ks)), bn2=bn(mid),
            se_w1=nrm((prev // red, mid)), se_b1=nrm((prev // red,)),
            se_w2=nrm((mid, prev // red)), se_b2=nrm((mid,)),
            w3=nrm((prev, mid, 1)), bn3=bn(prev),
        )
        P[f'resize_blc{i}'] = dict(w=nrm((sz, 2 * prev, ks)), bn=bn(sz))
    P['mapper'] = dict(w=nrm((cfg['mapper_size'], cs[-1], 1)),
                       b=nrm((cfg['mapper_size'],)))
    l0 = cfg['linear_sizes'][0]
    P['head'] = dict(w1=nrm((l0, cfg['mapper_size'])), b1=nrm((l0,)), bn1=bn(l0),
                     w2=nrm((cfg['out_channels'], l0)), b2=nrm((cfg['out_channels'],)))
    return P


if __name__ == "__main__":
    cfg = dict(seqsize=16, in_channels=6, out_channels=1,
               conv_sizes=(16, 16), mapper_size=32, linear_sizes=(16,),
               ks=5, resize_factor=4, filter_per_group=2, se_reduction=4)
    key = jax.random.PRNGKey(0)
    kp, kx = jax.random.split(key)
    P = init_params(kp, cfg)

    B = 8                                   # 8 sequences, 4 per grid step -> grid=(2,)
    x = jax.random.normal(kx, (B, cfg['in_channels'], cfg['seqsize']), jnp.float32)

    weights, bias_pack = prepare_params(P, cfg)        # BN folding done once, outside forward
    fwd = jax.jit(lambda xb, ws, bs: forward_pallas(xb, ws, bs, cfg, batch_tile=4))

    out = jax.block_until_ready(fwd(x, weights, bias_pack))
    assert out.shape == (B, cfg['out_channels'])

    ref = jax.block_until_ready(ref_forward(x, P, cfg))
    if not bool(jnp.allclose(out, ref, rtol=1e-3, atol=1e-3)):
        raise AssertionError("Pallas/ref mismatch: max abs err = "
                             f"{float(jnp.max(jnp.abs(out - ref)))}")
    print("KERNEL_OK")
</pallas_src>

<mosaic_0001>
module attributes {stable_mosaic.version = 11 : i64} {
  func.func @kernel(%arg0: i32, %arg1: memref<4x16x6xf32, #tpu.memory_space<vmem>>, %arg2: memref<10x128xf32, #tpu.memory_space<vmem>>, %arg3: memref<5x6x16xf32, #tpu.memory_space<vmem>>, %arg4: memref<1x16x64xf32, #tpu.memory_space<vmem>>, %arg5: memref<5x64x64xf32, #tpu.memory_space<vmem>>, %arg6: memref<64x4xf32, #tpu.memory_space<vmem>>, %arg7: memref<4x64xf32, #tpu.memory_space<vmem>>, %arg8: memref<1x64x16xf32, #tpu.memory_space<vmem>>, %arg9: memref<5x16x16xf32, #tpu.memory_space<vmem>>, %arg10: memref<5x16x16xf32, #tpu.memory_space<vmem>>, %arg11: memref<1x16x32xf32, #tpu.memory_space<vmem>>, %arg12: memref<32x16xf32, #tpu.memory_space<vmem>>, %arg13: memref<16x128xf32, #tpu.memory_space<vmem>>, %arg14: memref<1x4x128xf32, #tpu.memory_space<vmem>>, %arg15: memref<4x20x64xf32, #tpu.memory_space<vmem>>) attributes {dimension_semantics = [#tpu.dimension_semantics<parallel>], iteration_bounds = array<i64: 2>, scalar_prefetch = 0 : i64, scratch_operands = 1 : i64, tpu.core_type = #tpu.core_type<tc>, window_params = [{transform_indices = @transform_0, window_bounds = array<i64: 4, 16, 6>}, {pipeline_mode = #tpu.pipeline_mode<synchronous>, transform_indices = @transform_1, window_bounds = array<i64: 10, 128>}, {pipeline_mode = #tpu.pipeline_mode<synchronous>, transform_indices = @transform_2, window_bounds = array<i64: 5, 6, 16>}, {pipeline_mode = #tpu.pipeline_mode<synchronous>, transform_indices = @transform_3, window_bounds = array<i64: 1, 16, 64>}, {pipeline_mode = #tpu.pipeline_mode<synchronous>, transform_indices = @transform_4, window_bounds = array<i64: 5, 64, 64>}, {pipeline_mode = #tpu.pipeline_mode<synchronous>, transform_indices = @transform_5, window_bounds = array<i64: 64, 4>}, {pipeline_mode = #tpu.pipeline_mode<synchronous>, transform_indices = @transform_6, window_bounds = array<i64: 4, 64>}, {pipeline_mode = #tpu.pipeline_mode<synchronous>, transform_indices = @transform_7, window_bounds = array<i64: 1, 64, 16>}, {pipeline_mode = #tpu.pipeline_mode<synchronous>, transform_indices = @transform_8, window_bounds = array<i64: 5, 16, 16>}, {pipeline_mode = #tpu.pipeline_mode<synchronous>, transform_indices = @transform_9, window_bounds = array<i64: 5, 16, 16>}, {pipeline_mode = #tpu.pipeline_mode<synchronous>, transform_indices = @transform_10, window_bounds = array<i64: 1, 16, 32>}, {pipeline_mode = #tpu.pipeline_mode<synchronous>, transform_indices = @transform_11, window_bounds = array<i64: 32, 16>}, {pipeline_mode = #tpu.pipeline_mode<synchronous>, transform_indices = @transform_12, window_bounds = array<i64: 16, 128>}, {transform_indices = @transform_13, window_bounds = array<i64: 1, 4, 128>}]} {
    %cst = arith.constant 0.000000e+00 : f32
    %0 = vector.broadcast %cst : f32 to vector<4x2x64xf32>
    %c0 = arith.constant 0 : index
    %c0_0 = arith.constant 0 : index
    %c0_1 = arith.constant 0 : index
    %1 = vector.load %arg15[%c0, %c0_0, %c0_1] : memref<4x20x64xf32, #tpu.memory_space<vmem>>, vector<4x2x64xf32>
    tpu.vector_store %arg15[%c0, %c0_0, %c0_1], %0 {strides = array<i32>} : memref<4x20x64xf32, #tpu.memory_space<vmem>>, vector<4x2x64xf32>,
    %cst_2 = arith.constant 0.000000e+00 : f32
    %2 = vector.broadcast %cst_2 : f32 to vector<4x2x64xf32>
    %c0_3 = arith.constant 0 : index
    %c18 = arith.constant 18 : index
    %c0_4 = arith.constant 0 : index
    %3 = vector.load %arg15[%c0_3, %c18, %c0_4] : memref<4x20x64xf32, #tpu.memory_space<vmem>>, vector<4x2x64xf32>
    tpu.vector_store %arg15[%c0_3, %c18, %c0_4], %2 {strides = array<i32>} : memref<4x20x64xf32, #tpu.memory_space<vmem>>, vector<4x2x64xf32>,
    %c0_5 = arith.constant 0 : index
    %c0_6 = arith.constant 0 : index
    %c0_7 = arith.constant 0 : index
    %4 = vector.load %arg1[%c0_5, %c0_6, %c0_7] : memref<4x16x6xf32, #tpu.memory_space<vmem>>, vector<4x16x6xf32>
    %c0_8 = arith.constant 0 : index
    %c2 = arith.constant 2 : index
    %c0_9 = arith.constant 0 : index
    %5 = vector.load %arg15[%c0_8, %c2, %c0_9] : memref<4x20x64xf32, #tpu.memory_space<vmem>>, vector<4x16x6xf32>
    tpu.vector_store %arg15[%c0_8, %c2, %c0_9], %4 {strides = array<i32>} : memref<4x20x64xf32, #tpu.memory_space<vmem>>, vector<4x16x6xf32>,
    %cst_10 = arith.constant 0.000000e+00 : f32
    %6 = vector.broadcast %cst_10 : f32 to vector<64x16xf32>
    %c0_11 = arith.constant 0 : index
    %c0_12 = arith.constant 0 : index
    %c0_13 = arith.constant 0 : index
    %7 = vector.load %arg15[%c0_11, %c0_12, %c0_13] : memref<4x20x64xf32, #tpu.memory_space<vmem>>, vector<4x16x6xf32>
    %8 = vector.shape_cast %7 : vector<4x16x6xf32> to vector<64x6xf32>
    %c0_14 = arith.constant 0 : index
    %c0_15 = arith.constant 0 : index
    %c0_16 = arith.constant 0 : index
    %9 = vector.load %arg3[%c0_14, %c0_15, %c0_16] : memref<5x6x16xf32, #tpu.memory_space<vmem>>, vector<1x6x16xf32>
    %10 = vector.shape_cast %9 : vector<1x6x16xf32> to vector<6x16xf32>
    %cst_17 = arith.constant dense<0.000000e+00> : vector<64x16xf32>
    %11 = tpu.matmul %8, %10, %cst_17 {dimension_numbers = #tpu.dot_dimension_numbers<[1], [0], [0], [1], [0, 0, 1, 1], [], []>} : vector<64x6xf32>, vector<6x16xf32>, vector<64x16xf32> -> vector<64x16xf32>
    %12 = arith.addf %6, %11 : vector<64x16xf32>
    %c0_18 = arith.constant 0 : index
    %c1 = arith.constant 1 : index
    %c0_19 = arith.constant 0 : index
    %13 = vector.load %arg15[%c0_18, %c1, %c0_19] : memref<4x20x64xf32, #tpu.memory_space<vmem>>, vector<4x16x6xf32>
    %14 = vector.shape_cast %13 : vector<4x16x6xf32> to vector<64x6xf32>
    %c1_20 = arith.constant 1 : index
    %c0_21 = arith.constant 0 : index
    %c0_22 = arith.constant 0 : index
    %15 = vector.load %arg3[%c1_20, %c0_21, %c0_22] : memref<5x6x16xf32, #tpu.memory_space<vmem>>, vector<1x6x16xf32>
    %16 = vector.shape_cast %15 : vector<1x6x16xf32> to vector<6x16xf32>
    %cst_23 = arith.constant dense<0.000000e+00> : vector<64x16xf32>
    %17 = tpu.matmul %14, %16, %cst_23 {dimension_numbers = #tpu.dot_dimension_numbers<[1], [0], [0], [1], [0, 0, 1, 1], [], []>} : vector<64x6xf32>, vector<6x16xf32>, vector<64x16xf32> -> vector<64x16xf32>
    %18 = arith.addf %12, %17 : vector<64x16xf32>
    %c0_24 = arith.constant 0 : index
    %c2_25 = arith.constant 2 : index
    %c0_26 = arith.constant 0 : index
    %19 = vector.load %arg15[%c0_24, %c2_25, %c0_26] : memref<4x20x64xf32, #tpu.memory_space<vmem>>, vector<4x16x6xf32>
    %20 = vector.shape_cast %19 : vector<4x16x6xf32> to vector<64x6xf32>
    %c2_27 = arith.constant 2 : index
    %c0_28 = arith.constant 0 : index
    %c0_29 = arith.constant 0 : index
    %21 = vector.load %arg3[%c2_27, %c0_28, %c0_29] : memref<5x6x16xf32, #tpu.memory_space<vmem>>, vector<1x6x16xf32>
    %22 = vector.shape_cast %21 : vector<1x6x16xf32> to vector<6x16xf32>
    %cst_30 = arith.constant dense<0.000000e+00> : vector<64x16xf32>
    %23 = tpu.matmul %20, %22, %cst_30 {dimension_numbers = #tpu.dot_dimension_numbers<[1], [0], [0], [1], [0, 0, 1, 1], [], []>} : vector<64x6xf32>, vector<6x16xf32>, vector<64x16xf32> -> vector<64x16xf32>
    %24 = arith.addf %18, %23 : vector<64x16xf32>
    %c0_31 = arith.constant 0 : index
    %c3 = arith.constant 3 : index
    %c0_32 = arith.constant 0 : index
    %25 = vector.load %arg15[%c0_31, %c3, %c0_32] : memref<4x20x64xf32, #tpu.memory_space<vmem>>, vector<4x16x6xf32>
    %26 = vector.shape_cast %25 : vector<4x16x6xf32> to vector<64x6xf32>
    %c3_33 = arith.constant 3 : index
    %c0_34 = arith.constant 0 : index
    %c0_35 = arith.constant 0 : index
    %27 = vector.load %arg3[%c3_33, %c0_34, %c0_35] : memref<5x6x16xf32, #tpu.memory_space<vmem>>, vector<1x6x16xf32>
    %28 = vector.shape_cast %27 : vector<1x6x16xf32> to vector<6x16xf32>
    %cst_36 = arith.constant dense<0.000000e+00> : vector<64x16xf32>
    %29 = tpu.matmul %26, %28, %cst_36 {dimension_numbers = #tpu.dot_dimension_numbers<[1], [0], [0], [1], [0, 0, 1, 1], [], []>} : vector<64x6xf32>, vector<6x16xf32>, vector<64x16xf32> -> vector<64x16xf32>
    %30 = arith.addf %24, %29 : vector<64x16xf32>
    %c0_37 = arith.constant 0 : index
    %c4 = arith.constant 4 : index
    %c0_38 = arith.constant 0 : index
    %31 = vector.load %arg15[%c0_37, %c4, %c0_38] : memref<4x20x64xf32, #tpu.memory_space<vmem>>, vector<4x16x6xf32>
    %32 = vector.shape_cast %31 : vector<4x16x6xf32> to vector<64x6xf32>
    %c4_39 = arith.constant 4 : index
    %c0_40 = arith.constant 0 : index
    %c0_41 = arith.constant 0 : index
    %33 = vector.load %arg3[%c4_39, %c0_40, %c0_41] : memref<5x6x16xf32, #tpu.memory_space<vmem>>, vector<1x6x16xf32>
    %34 = vector.shape_cast %33 : vector<1x6x16xf32> to vector<6x16xf32>
    %cst_42 = arith.constant dense<0.000000e+00> : vector<64x16xf32>
    %35 = tpu.matmul %32, %34, %cst_42 {dimension_numbers = #tpu.dot_dimension_numbers<[1], [0], [0], [1], [0, 0, 1, 1], [], []>} : vector<64x6xf32>, vector<6x16xf32>, vector<64x16xf32> -> vector<64x16xf32>
    %36 = arith.addf %30, %35 : vector<64x16xf32>
    %c0_43 = arith.constant 0 : index
    %c0_44 = arith.constant 0 : index
    %37 = vector.load %arg2[%c0_43, %c0_44] : memref<10x128xf32, #tpu.memory_space<vmem>>, vector<1x16xf32>
    %38 = vector.broadcast %37 : vector<1x16xf32> to vector<64x16xf32>
    %39 = arith.addf %36, %38 : vector<64x16xf32>
    %40 = arith.negf %39 : vector<64x16xf32>
    %41 = math.exp %40 : vector<64x16xf32>
    %cst_45 = arith.constant 1.000000e+00 : f32
    %42 = vector.broadcast %cst_45 : f32 to vector<64x16xf32>
    %43 = arith.addf %42, %41 : vector<64x16xf32>
    %44 = arith.divf %42, %43 : vector<64x16xf32>
    %45 = arith.mulf %39, %44 : vector<64x16xf32>
    %46 = vector.shape_cast %45 : vector<64x16xf32> to vector<4x16x16xf32>
    %47 = vector.shape_cast %46 : vector<4x16x16xf32> to vector<64x16xf32>
    %c0_46 = arith.constant 0 : index
    %c0_47 = arith.constant 0 : index
    %c0_48 = arith.constant 0 : index
    %48 = vector.load %arg4[%c0_46, %c0_47, %c0_48] : memref<1x16x64xf32, #tpu.memory_space<vmem>>, vector<1x16x64xf32>
    %49 = vector.shape_cast %48 : vector<1x16x64xf32> to vector<16x64xf32>
    %cst_49 = arith.constant dense<0.000000e+00> : vector<64x64xf32>
    %50 = tpu.matmul %47, %49, %cst_49 {dimension_numbers = #tpu.dot_dimension_numbers<[1], [0], [0], [1], [0, 0, 1, 1], [], []>} : vector<64x16xf32>, vector<16x64xf32>, vector<64x64xf32> -> vector<64x64xf32>
    %c1_50 = arith.constant 1 : index
    %c0_51 = arith.constant 0 : index
    %51 = vector.load %arg2[%c1_50, %c0_51] : memref<10x128xf32, #tpu.memory_space<vmem>>, vector<1x64xf32>
    %52 = vector.broadcast %51 : vector<1x64xf32> to vector<64x64xf32>
    %53 = arith.addf %50, %52 : vector<64x64xf32>
    %54 = arith.negf %53 : vector<64x64xf32>
    %55 = math.exp %54 : vector<64x64xf32>
    %cst_52 = arith.constant 1.000000e+00 : f32
    %56 = vector.broadcast %cst_52 : f32 to vector<64x64xf32>
    %57 = arith.addf %56, %55 : vector<64x64xf32>
    %58 = arith.divf %56, %57 : vector<64x64xf32>
    %59 = arith.mulf %53, %58 : vector<64x64xf32>
    %60 = vector.shape_cast %59 : vector<64x64xf32> to vector<4x16x64xf32>
    %c0_53 = arith.constant 0 : index
    %c2_54 = arith.constant 2 : index
    %c0_55 = arith.constant 0 : index
    %61 = vector.load %arg15[%c0_53, %c2_54, %c0_55] : memref<4x20x64xf32, #tpu.memory_space<vmem>>, vector<4x16x64xf32>
    tpu.vector_store %arg15[%c0_53, %c2_54, %c0_55], %60 {strides = array<i32>} : memref<4x20x64xf32, #tpu.memory_space<vmem>>, vector<4x16x64xf32>,
    %cst_56 = arith.constant 0.000000e+00 : f32
    %62 = vector.broadcast %cst_56 : f32 to vector<64x64xf32>
    %c0_57 = arith.constant 0 : index
    %c0_58 = arith.constant 0 : index
    %c0_59 = arith.constant 0 : index
    %63 = vector.load %arg15[%c0_57, %c0_58, %c0_59] : memref<4x20x64xf32, #tpu.memory_space<vmem>>, vector<4x16x64xf32>
    %64 = vector.shape_cast %63 : vector<4x16x64xf32> to vector<64x64xf32>
    %c0_60 = arith.constant 0 : index
    %c0_61 = arith.constant 0 : index
    %c0_62 = arith.constant 0 : index
    %65 = vector.load %arg5[%c0_60, %c0_61, %c0_62] : memref<5x64x64xf32, #tpu.memory_space<vmem>>, vector<1x64x64xf32>
    %66 = vector.shape_cast %65 : vector<1x64x64xf32> to vector<64x64xf32>
    %cst_63 = arith.constant dense<0.000000e+00> : vector<64x64xf32>
    %67 = tpu.matmul %64, %66, %cst_63 {dimension_numbers = #tpu.dot_dimension_numbers<[1], [0], [0], [1], [0, 0, 1, 1], [], []>} : vector<64x64xf32>, vector<64x64xf32>, vector<64x64xf32> -> vector<64x64xf32>
    %68 = arith.addf %62, %67 : vector<64x64xf32>
    %c0_64 = arith.constant 0 : index
    %c1_65 = arith.constant 1 : index
    %c0_66 = arith.constant 0 : index
    %69 = vector.load %arg15[%c0_64, %c1_65, %c0_66] : memref<4x20x64xf32, #tpu.memory_space<vmem>>, vector<4x16x64xf32>
    %70 = vector.shape_cast %69 : vector<4x16x64xf32> to vector<64x64xf32>
    %c1_67 = arith.constant 1 : index
    %c0_68 = arith.constant 0 : index
    %c0_69 = arith.constant 0 : index
    %71 = vector.load %arg5[%c1_67, %c0_68, %c0_69] : memref<5x64x64xf32, #tpu.memory_space<vmem>>, vector<1x64x64xf32>
    %72 = vector.shape_cast %71 : vector<1x64x64xf32> to vector<64x64xf32>
    %cst_70 = arith.constant dense<0.000000e+00> : vector<64x64xf32>
    %73 = tpu.matmul %70, %72, %cst_70 {dimension_numbers = #tpu.dot_dimension_numbers<[1], [0], [0], [1], [0, 0, 1, 1], [], []>} : vector<64x64xf32>, vector<64x64xf32>, vector<64x64xf32> -> vector<64x64xf32>
    %74 = arith.addf %68, %73 : vector<64x64xf32>
    %c0_71 = arith.constant 0 : index
    %c2_72 = arith.constant 2 : index
    %c0_73 = arith.constant 0 : index
    %75 = vector.load %arg15[%c0_71, %c2_72, %c0_73] : memref<4x20x64xf32, #tpu.memory_space<vmem>>, vector<4x16x64xf32>
    %76 = vector.shape_cast %75 : vector<4x16x64xf32> to vector<64x64xf32>
    %c2_74 = arith.constant 2 : index
    %c0_75 = arith.constant 0 : index
    %c0_76 = arith.constant 0 : index
    %77 = vector.load %arg5[%c2_74, %c0_75, %c0_76] : memref<5x64x64xf32, #tpu.memory_space<vmem>>, vector<1x64x64xf32>
    %78 = vector.shape_cast %77 : vector<1x64x64xf32> to vector<64x64xf32>
    %cst_77 = arith.constant dense<0.000000e+00> : vector<64x64xf32>
    %79 = tpu.matmul %76, %78, %cst_77 {dimension_numbers = #tpu.dot_dimension_numbers<[1], [0], [0], [1], [0, 0, 1, 1], [], []>} : vector<64x64xf32>, vector<64x64xf32>, vector<64x64xf32> -> vector<64x64xf32>
    %80 = arith.addf %74, %79 : vector<64x64xf32>
    %c0_78 = arith.constant 0 : index
    %c3_79 = arith.constant 3 : index
    %c0_80 = arith.constant 0 : index
    %81 = vector.load %arg15[%c0_78, %c3_79, %c0_80] : memref<4x20x64xf32, #tpu.memory_space<vmem>>, vector<4x16x64xf32>
    %82 = vector.shape_cast %81 : vector<4x16x64xf32> to vector<64x64xf32>
    %c3_81 = arith.constant 3 : index
    %c0_82 = arith.constant 0 : index
    %c0_83 = arith.constant 0 : index
    %83 = vector.load %arg5[%c3_81, %c0_82, %c0_83] : memref<5x64x64xf32, #tpu.memory_space<vmem>>, vector<1x64x64xf32>
    %84 = vector.shape_cast %83 : vector<1x64x64xf32> to vector<64x64xf32>
    %cst_84 = arith.constant dense<0.000000e+00> : vector<64x64xf32>
    %85 = tpu.matmul %82, %84, %cst_84 {dimension_numbers = #tpu.dot_dimension_numbers<[1], [0], [0], [1], [0, 0, 1, 1], [], []>} : vector<64x64xf32>, vector<64x64xf32>, vector<64x64xf32> -> vector<64x64xf32>
    %86 = arith.addf %80, %85 : vector<64x64xf32>
    %c0_85 = arith.constant 0 : index
    %c4_86 = arith.constant 4 : index
    %c0_87 = arith.constant 0 : index
    %87 = vector.load %arg15[%c0_85, %c4_86, %c0_87] : memref<4x20x64xf32, #tpu.memory_space<vmem>>, vector<4x16x64xf32>
    %88 = vector.shape_cast %87 : vector<4x16x64xf32> to vector<64x64xf32>
    %c4_88 = arith.constant 4 : index
    %c0_89 = arith.constant 0 : index
    %c0_90 = arith.constant 0 : index
    %89 = vector.load %arg5[%c4_88, %c0_89, %c0_90] : memref<5x64x64xf32, #tpu.memory_space<vmem>>, vector<1x64x64xf32>
    %90 = vector.shape_cast %89 : vector<1x64x64xf32> to vector<64x64xf32>
    %cst_91 = arith.constant dense<0.000000e+00> : vector<64x64xf32>
    %91 = tpu.matmul %88, %90, %cst_91 {dimension_numbers = #tpu.dot_dimension_numbers<[1], [0], [0], [1], [0, 0, 1, 1], [], []>} : vector<64x64xf32>, vector<64x64xf32>, vector<64x64xf32> -> vector<64x64xf32>
    %92 = arith.addf %86, %91 : vector<64x64xf32>
    %c2_92 = arith.constant 2 : index
    %c0_93 = arith.constant 0 : index
    %93 = vector.load %arg2[%c2_92, %c0_93] : memref<10x128xf32, #tpu.memory_space<vmem>>, vector<1x64xf32>
    %94 = vector.broadcast %93 : vector<1x64xf32> to vector<64x64xf32>
    %95 = arith.addf %92, %94 : vector<64x64xf32>
    %96 = arith.negf %95 : vector<64x64xf32>
    %97 = math.exp %96 : vector<64x64xf32>
    %cst_94 = arith.constant 1.000000e+00 : f32
    %98 = vector.broadcast %cst_94 : f32 to vector<64x64xf32>
    %99 = arith.addf %98, %97 : vector<64x64xf32>
    %100 = arith.divf %98, %99 : vector<64x64xf32>
    %101 = arith.mulf %95, %100 : vector<64x64xf32>
    %102 = vector.shape_cast %101 : vector<64x64xf32> to vector<4x16x64xf32>
    %cst_95 = arith.constant dense<0.000000e+00> : vector<4x64xf32>
    %103 = vector.multi_reduction <add>, %102, %cst_95 [1] : vector<4x16x64xf32> to vector<4x64xf32>
    %cst_96 = arith.constant 1.600000e+01 : f32
    %104 = vector.broadcast %cst_96 : f32 to vector<4x64xf32>
    %105 = arith.divf %103, %104 : vector<4x64xf32>
    %c0_97 = arith.constant 0 : index
    %c0_98 = arith.constant 0 : index
    %106 = vector.load %arg6[%c0_97, %c0_98] : memref<64x4xf32, #tpu.memory_space<vmem>>, vector<64x4xf32>
    %cst_99 = arith.constant dense<0.000000e+00> : vector<4x4xf32>
    %107 = tpu.matmul %105, %106, %cst_99 {dimension_numbers = #tpu.dot_dimension_numbers<[1], [0], [0], [1], [0, 0, 1, 1], [], []>} : vector<4x64xf32>, vector<64x4xf32>, vector<4x4xf32> -> vector<4x4xf32>
    %c3_100 = arith.constant 3 : index
    %c0_101 = arith.constant 0 : index
    %108 = vector.load %arg2[%c3_100, %c0_101] : memref<10x128xf32, #tpu.memory_space<vmem>>, vector<1x4xf32>
    %109 = vector.broadcast %108 : vector<1x4xf32> to vector<4x4xf32>
    %110 = arith.addf %107, %109 : vector<4x4xf32>
    %111 = arith.negf %110 : vector<4x4xf32>
    %112 = math.exp %111 : vector<4x4xf32>
    %cst_102 = arith.constant 1.000000e+00 : f32
    %113 = vector.broadcast %cst_102 : f32 to vector<4x4xf32>
    %114 = arith.addf %113, %112 : vector<4x4xf32>
    %115 = arith.divf %113, %114 : vector<4x4xf32>
    %116 = arith.mulf %110, %115 : vector<4x4xf32>
    %c0_103 = arith.constant 0 : index
    %c0_104 = arith.constant 0 : index
    %117 = vector.load %arg7[%c0_103, %c0_104] : memref<4x64xf32, #tpu.memory_space<vmem>>, vector<4x64xf32>
    %cst_105 = arith.constant dense<0.000000e+00> : vector<4x64xf32>
    %118 = tpu.matmul %116, %117, %cst_105 {dimension_numbers = #tpu.dot_dimension_numbers<[1], [0], [0], [1], [0, 0, 1, 1], [], []>} : vector<4x4xf32>, vector<4x64xf32>, vector<4x64xf32> -> vector<4x64xf32>
    %c4_106 = arith.constant 4 : index
    %c0_107 = arith.constant 0 : index
    %119 = vector.load %arg2[%c4_106, %c0_107] : memref<10x128xf32, #tpu.memory_space<vmem>>, vector<1x64xf32>
    %120 = vector.broadcast %119 : vector<1x64xf32> to vector<4x64xf32>
    %121 = arith.addf %118, %120 : vector<4x64xf32>
    %122 = arith.negf %121 : vector<4x64xf32>
    %123 = math.exp %122 : vector<4x64xf32>
    %cst_108 = arith.constant 1.000000e+00 : f32
    %124 = vector.broadcast %cst_108 : f32 to vector<4x64xf32>
    %125 = arith.addf %124, %123 : vector<4x64xf32>
    %126 = arith.divf %124, %125 : vector<4x64xf32>
    %127 = vector.shape_cast %126 : vector<4x64xf32> to vector<4x1x64xf32>
    %128 = vector.broadcast %127 : vector<4x1x64xf32> to vector<4x16x64xf32>
    %129 = arith.mulf %102, %128 : vector<4x16x64xf32>
    %130 = vector.shape_cast %129 : vector<4x16x64xf32> to vector<64x64xf32>
    %c0_109 = arith.constant 0 : index
    %c0_110 = arith.constant 0 : index
    %c0_111 = arith.constant 0 : index
    %131 = vector.load %arg8[%c0_109, %c0_110, %c0_111] : memref<1x64x16xf32, #tpu.memory_space<vmem>>, vector<1x64x16xf32>
    %132 = vector.shape_cast %131 : vector<1x64x16xf32> to vector<64x16xf32>
    %cst_112 = arith.constant dense<0.000000e+00> : vector<64x16xf32>
    %133 = tpu.matmul %130, %132, %cst_112 {dimension_numbers = #tpu.dot_dimension_numbers<[1], [0], [0], [1], [0, 0, 1, 1], [], []>} : vector<64x64xf32>, vector<64x16xf32>, vector<64x16xf32> -> vector<64x16xf32>
    %c5 = arith.constant 5 : index
    %c0_113 = arith.constant 0 : index
    %134 = vector.load %arg2[%c5, %c0_113] : memref<10x128xf32, #tpu.memory_space<vmem>>, vector<1x16xf32>
    %135 = vector.broadcast %134 : vector<1x16xf32> to vector<64x16xf32>
    %136 = arith.addf %133, %135 : vector<64x16xf32>
    %137 = arith.negf %136 : vector<64x16xf32>
    %138 = math.exp %137 : vector<64x16xf32>
    %cst_114 = arith.constant 1.000000e+00 : f32
    %139 = vector.broadcast %cst_114 : f32 to vector<64x16xf32>
    %140 = arith.addf %139, %138 : vector<64x16xf32>
    %141 = arith.divf %139, %140 : vector<64x16xf32>
    %142 = arith.mulf %136, %141 : vector<64x16xf32>
    %143 = vector.shape_cast %142 : vector<64x16xf32> to vector<4x16x16xf32>
    %c0_115 = arith.constant 0 : index
    %c2_116 = arith.constant 2 : index
    %c0_117 = arith.constant 0 : index
    %144 = vector.load %arg15[%c0_115, %c2_116, %c0_117] : memref<4x20x64xf32, #tpu.memory_space<vmem>>, vector<4x16x16xf32>
    tpu.vector_store %arg15[%c0_115, %c2_116, %c0_117], %46 {strides = array<i32>} : memref<4x20x64xf32, #tpu.memory_space<vmem>>, vector<4x16x16xf32>,
    %cst_118 = arith.constant 0.000000e+00 : f32
    %145 = vector.broadcast %cst_118 : f32 to vector<64x16xf32>
    %c0_119 = arith.constant 0 : index
    %c0_120 = arith.constant 0 : index
    %c0_121 = arith.constant 0 : index
    %146 = vector.load %arg15[%c0_119, %c0_120, %c0_121] : memref<4x20x64xf32, #tpu.memory_space<vmem>>, vector<4x16x16xf32>
    %147 = vector.shape_cast %146 : vector<4x16x16xf32> to vector<64x16xf32>
    %c0_122 = arith.constant 0 : index
    %c0_123 = arith.constant 0 : index
    %c0_124 = arith.constant 0 : index
    %148 = vector.load %arg9[%c0_122, %c0_123, %c0_124] : memref<5x16x16xf32, #tpu.memory_space<vmem>>, vector<1x16x16xf32>
    %149 = vector.shape_cast %148 : vector<1x16x16xf32> to vector<16x16xf32>
    %cst_125 = arith.constant dense<0.000000e+00> : vector<64x16xf32>
    %150 = tpu.matmul %147, %149, %cst_125 {dimension_numbers = #tpu.dot_dimension_numbers<[1], [0], [0], [1], [0, 0, 1, 1], [], []>} : vector<64x16xf32>, vector<16x16xf32>, vector<64x16xf32> -> vector<64x16xf32>
    %151 = arith.addf %145, %150 : vector<64x16xf32>
    %c0_126 = arith.constant 0 : index
    %c1_127 = arith.constant 1 : index
    %c0_128 = arith.constant 0 : index
    %152 = vector.load %arg15[%c0_126, %c1_127, %c0_128] : memref<4x20x64xf32, #tpu.memory_space<vmem>>, vector<4x16x16xf32>
    %153 = vector.shape_cast %152 : vector<4x16x16xf32> to vector<64x16xf32>
    %c1_129 = arith.constant 1 : index
    %c0_130 = arith.constant 0 : index
    %c0_131 = arith.constant 0 : index
    %154 = vector.load %arg9[%c1_129, %c0_130, %c0_131] : memref<5x16x16xf32, #tpu.memory_space<vmem>>, vector<1x16x16xf32>
    %155 = vector.shape_cast %154 : vector<1x16x16xf32> to vector<16x16xf32>
    %cst_132 = arith.constant dense<0.000000e+00> : vector<64x16xf32>
    %156 = tpu.matmul %153, %155, %cst_132 {dimension_numbers = #tpu.dot_dimension_numbers<[1], [0], [0], [1], [0, 0, 1, 1], [], []>} : vector<64x16xf32>, vector<16x16xf32>, vector<64x16xf32> -> vector<64x16xf32>
    %157 = arith.addf %151, %156 : vector<64x16xf32>
    %c0_133 = arith.constant 0 : index
    %c2_134 = arith.constant 2 : index
    %c0_135 = arith.constant 0 : index
    %158 = vector.load %arg15[%c0_133, %c2_134, %c0_135] : memref<4x20x64xf32, #tpu.memory_space<vmem>>, vector<4x16x16xf32>
    %159 = vector.shape_cast %158 : vector<4x16x16xf32> to vector<64x16xf32>
    %c2_136 = arith.constant 2 : index
    %c0_137 = arith.constant 0 : index
    %c0_138 = arith.constant 0 : index
    %160 = vector.load %arg9[%c2_136, %c0_137, %c0_138] : memref<5x16x16xf32, #tpu.memory_space<vmem>>, vector<1x16x16xf32>
    %161 = vector.shape_cast %160 : vector<1x16x16xf32> to vector<16x16xf32>
    %cst_139 = arith.constant dense<0.000000e+00> : vector<64x16xf32>
    %162 = tpu.matmul %159, %161, %cst_139 {dimension_numbers = #tpu.dot_dimension_numbers<[1], [0], [0], [1], [0, 0, 1, 1], [], []>} : vector<64x16xf32>, vector<16x16xf32>, vector<64x16xf32> -> vector<64x16xf32>
    %163 = arith.addf %157, %162 : vector<64x16xf32>
    %c0_140 = arith.constant 0 : index
    %c3_141 = arith.constant 3 : index
    %c0_142 = arith.constant 0 : index
    %164 = vector.load %arg15[%c0_140, %c3_141, %c0_142] : memref<4x20x64xf32, #tpu.memory_space<vmem>>, vector<4x16x16xf32>
    %165 = vector.shape_cast %164 : vector<4x16x16xf32> to vector<64x16xf32>
    %c3_143 = arith.constant 3 : index
    %c0_144 = arith.constant 0 : index
    %c0_145 = arith.constant 0 : index
    %166 = vector.load %arg9[%c3_143, %c0_144, %c0_145] : memref<5x16x16xf32, #tpu.memory_space<vmem>>, vector<1x16x16xf32>
    %167 = vector.shape_cast %166 : vector<1x16x16xf32> to vector<16x16xf32>
    %cst_146 = arith.constant dense<0.000000e+00> : vector<64x16xf32>
    %168 = tpu.matmul %165, %167, %cst_146 {dimension_numbers = #tpu.dot_dimension_numbers<[1], [0], [0], [1], [0, 0, 1, 1], [], []>} : vector<64x16xf32>, vector<16x16xf32>, vector<64x16xf32> -> vector<64x16xf32>
    %169 = arith.addf %163, %168 : vector<64x16xf32>
    %c0_147 = arith.constant 0 : index
    %c4_148 = arith.constant 4 : index
    %c0_149 = arith.constant 0 : index
    %170 = vector.load %arg15[%c0_147, %c4_148, %c0_149] : memref<4x20x64xf32, #tpu.memory_space<vmem>>, vector<4x16x16xf32>
    %171 = vector.shape_cast %170 : vector<4x16x16xf32> to vector<64x16xf32>
    %c4_150 = arith.constant 4 : index
    %c0_151 = arith.constant 0 : index
    %c0_152 = arith.constant 0 : index
    %172 = vector.load %arg9[%c4_150, %c0_151, %c0_152] : memref<5x16x16xf32, #tpu.memory_space<vmem>>, vector<1x16x16xf32>
    %173 = vector.shape_cast %172 : vector<1x16x16xf32> to vector<16x16xf32>
    %cst_153 = arith.constant dense<0.000000e+00> : vector<64x16xf32>
    %174 = tpu.matmul %171, %173, %cst_153 {dimension_numbers = #tpu.dot_dimension_numbers<[1], [0], [0], [1], [0, 0, 1, 1], [], []>} : vector<64x16xf32>, vector<16x16xf32>, vector<64x16xf32> -> vector<64x16xf32>
    %175 = arith.addf %169, %174 : vector<64x16xf32>
    %c0_154 = arith.constant 0 : index
    %c2_155 = arith.constant 2 : index
    %c0_156 = arith.constant 0 : index
    %176 = vector.load %arg15[%c0_154, %c2_155, %c0_156] : memref<4x20x64xf32, #tpu.memory_space<vmem>>, vector<4x16x16xf32>
    tpu.vector_store %arg15[%c0_154, %c2_155, %c0_156], %143 {strides = array<i32>} : memref<4x20x64xf32, #tpu.memory_space<vmem>>, vector<4x16x16xf32>,
    %cst_157 = arith.constant 0.000000e+00 : f32
    %177 = vector.broadcast %cst_157 : f32 to vector<64x16xf32>
    %c0_158 = arith.constant 0 : index
    %c0_159 = arith.constant 0 : index
    %c0_160 = arith.constant 0 : index
    %178 = vector.load %arg15[%c0_158, %c0_159, %c0_160] : memref<4x20x64xf32, #tpu.memory_space<vmem>>, vector<4x16x16xf32>
    %179 = vector.shape_cast %178 : vector<4x16x16xf32> to vector<64x16xf32>
    %c0_161 = arith.constant 0 : index
    %c0_162 = arith.constant 0 : index
    %c0_163 = arith.constant 0 : index
    %180 = vector.load %arg10[%c0_161, %c0_162, %c0_163] : memref<5x16x16xf32, #tpu.memory_space<vmem>>, vector<1x16x16xf32>
    %181 = vector.shape_cast %180 : vector<1x16x16xf32> to vector<16x16xf32>
    %cst_164 = arith.constant dense<0.000000e+00> : vector<64x16xf32>
    %182 = tpu.matmul %179, %181, %cst_164 {dimension_numbers = #tpu.dot_dimension_numbers<[1], [0], [0], [1], [0, 0, 1, 1], [], []>} : vector<64x16xf32>, vector<16x16xf32>, vector<64x16xf32> -> vector<64x16xf32>
    %183 = arith.addf %177, %182 : vector<64x16xf32>
    %c0_165 = arith.constant 0 : index
    %c1_166 = arith.constant 1 : index
    %c0_167 = arith.constant 0 : index
    %184 = vector.load %arg15[%c0_165, %c1_166, %c0_167] : memref<4x20x64xf32, #tpu.memory_space<vmem>>, vector<4x16x16xf32>
    %185 = vector.shape_cast %184 : vector<4x16x16xf32> to vector<64x16xf32>
    %c1_168 = arith.constant 1 : index
    %c0_169 = arith.constant 0 : index
    %c0_170 = arith.constant 0 : index
    %186 = vector.load %arg10[%c1_168, %c0_169, %c0_170] : memref<5x16x16xf32, #tpu.memory_space<vmem>>, vector<1x16x16xf32>
    %187 = vector.shape_cast %186 : vector<1x16x16xf32> to vector<16x16xf32>
    %cst_171 = arith.constant dense<0.000000e+00> : vector<64x16xf32>
    %188 = tpu.matmul %185, %187, %cst_171 {dimension_numbers = #tpu.dot_dimension_numbers<[1], [0], [0], [1], [0, 0, 1, 1], [], []>} : vector<64x16xf32>, vector<16x16xf32>, vector<64x16xf32> -> vector<64x16xf32>
    %189 = arith.addf %183, %188 : vector<64x16xf32>
    %c0_172 = arith.constant 0 : index
    %c2_173 = arith.constant 2 : index
    %c0_174 = arith.constant 0 : index
    %190 = vector.load %arg15[%c0_172, %c2_173, %c0_174] : memref<4x20x64xf32, #tpu.memory_space<vmem>>, vector<4x16x16xf32>
    %191 = vector.shape_cast %190 : vector<4x16x16xf32> to vector<64x16xf32>
    %c2_175 = arith.constant 2 : index
    %c0_176 = arith.constant 0 : index
    %c0_177 = arith.constant 0 : index
    %192 = vector.load %arg10[%c2_175, %c0_176, %c0_177] : memref<5x16x16xf32, #tpu.memory_space<vmem>>, vector<1x16x16xf32>
    %193 = vector.shape_cast %192 : vector<1x16x16xf32> to vector<16x16xf32>
    %cst_178 = arith.constant dense<0.000000e+00> : vector<64x16xf32>
    %194 = tpu.matmul %191, %193, %cst_178 {dimension_numbers = #tpu.dot_dimension_numbers<[1], [0], [0], [1], [0, 0, 1, 1], [], []>} : vector<64x16xf32>, vector<16x16xf32>, vector<64x16xf32> -> vector<64x16xf32>
    %195 = arith.addf %189, %194 : vector<64x16xf32>
    %c0_179 = arith.constant 0 : index
    %c3_180 = arith.constant 3 : index
    %c0_181 = arith.constant 0 : index
    %196 = vector.load %arg15[%c0_179, %c3_180, %c0_181] : memref<4x20x64xf32, #tpu.memory_space<vmem>>, vector<4x16x16xf32>
    %197 = vector.shape_cast %196 : vector<4x16x16xf32> to vector<64x16xf32>
    %c3_182 = arith.constant 3 : index
    %c0_183 = arith.constant 0 : index
    %c0_184 = arith.constant 0 : index
    %198 = vector.load %arg10[%c3_182, %c0_183, %c0_184] : memref<5x16x16xf32, #tpu.memory_space<vmem>>, vector<1x16x16xf32>
    %199 = vector.shape_cast %198 : vector<1x16x16xf32> to vector<16x16xf32>
    %cst_185 = arith.constant dense<0.000000e+00> : vector<64x16xf32>
    %200 = tpu.matmul %197, %199, %cst_185 {dimension_numbers = #tpu.dot_dimension_numbers<[1], [0], [0], [1], [0, 0, 1, 1], [], []>} : vector<64x16xf32>, vector<16x16xf32>, vector<64x16xf32> -> vector<64x16xf32>
    %201 = arith.addf %195, %200 : vector<64x16xf32>
    %c0_186 = arith.constant 0 : index
    %c4_187 = arith.constant 4 : index
    %c0_188 = arith.constant 0 : index
    %202 = vector.load %arg15[%c0_186, %c4_187, %c0_188] : memref<4x20x64xf32, #tpu.memory_space<vmem>>, vector<4x16x16xf32>
    %203 = vector.shape_cast %202 : vector<4x16x16xf32> to vector<64x16xf32>
    %c4_189 = arith.constant 4 : index
    %c0_190 = arith.constant 0 : index
    %c0_191 = arith.constant 0 : index
    %204 = vector.load %arg10[%c4_189, %c0_190, %c0_191] : memref<5x16x16xf32, #tpu.memory_space<vmem>>, vector<1x16x16xf32>
    %205 = vector.shape_cast %204 : vector<1x16x16xf32> to vector<16x16xf32>
    %cst_192 = arith.constant dense<0.000000e+00> : vector<64x16xf32>
    %206 = tpu.matmul %203, %205, %cst_192 {dimension_numbers = #tpu.dot_dimension_numbers<[1], [0], [0], [1], [0, 0, 1, 1], [], []>} : vector<64x16xf32>, vector<16x16xf32>, vector<64x16xf32> -> vector<64x16xf32>
    %207 = arith.addf %201, %206 : vector<64x16xf32>
    %208 = arith.addf %175, %207 : vector<64x16xf32>
    %c6 = arith.constant 6 : index
    %c0_193 = arith.constant 0 : index
    %209 = vector.load %arg2[%c6, %c0_193] : memref<10x128xf32, #tpu.memory_space<vmem>>, vector<1x16xf32>
    %210 = vector.broadcast %209 : vector<1x16xf32> to vector<64x16xf32>
    %211 = arith.addf %208, %210 : vector<64x16xf32>
    %212 = arith.negf %211 : vector<64x16xf32>
    %213 = math.exp %212 : vector<64x16xf32>
    %cst_194 = arith.constant 1.000000e+00 : f32
    %214 = vector.broadcast %cst_194 : f32 to vector<64x16xf32>
    %215 = arith.addf %214, %213 : vector<64x16xf32>
    %216 = arith.divf %214, %215 : vector<64x16xf32>
    %217 = arith.mulf %211, %216 : vector<64x16xf32>
    %218 = vector.shape_cast %217 : vector<64x16xf32> to vector<4x16x16xf32>
    %219 = vector.shape_cast %218 : vector<4x16x16xf32> to vector<64x16xf32>
    %c0_195 = arith.constant 0 : index
    %c0_196 = arith.constant 0 : index
    %c0_197 = arith.constant 0 : index
    %220 = vector.load %arg11[%c0_195, %c0_196, %c0_197] : memref<1x16x32xf32, #tpu.memory_space<vmem>>, vector<1x16x32xf32>
    %221 = vector.shape_cast %220 : vector<1x16x32xf32> to vector<16x32xf32>
    %cst_198 = arith.constant dense<0.000000e+00> : vector<64x32xf32>
    %222 = tpu.matmul %219, %221, %cst_198 {dimension_numbers = #tpu.dot_dimension_numbers<[1], [0], [0], [1], [0, 0, 1, 1], [], []>} : vector<64x16xf32>, vector<16x32xf32>, vector<64x32xf32> -> vector<64x32xf32>
    %c7 = arith.constant 7 : index
    %c0_199 = arith.constant 0 : index
    %223 = vector.load %arg2[%c7, %c0_199] : memref<10x128xf32, #tpu.memory_space<vmem>>, vector<1x32xf32>
    %224 = vector.broadcast %223 : vector<1x32xf32> to vector<64x32xf32>
    %225 = arith.addf %222, %224 : vector<64x32xf32>
    %226 = vector.shape_cast %225 : vector<64x32xf32> to vector<4x16x32xf32>
    %cst_200 = arith.constant dense<0.000000e+00> : vector<4x32xf32>
    %227 = vector.multi_reduction <add>, %226, %cst_200 [1] : vector<4x16x32xf32> to vector<4x32xf32>
    %cst_201 = arith.constant 1.600000e+01 : f32
    %228 = vector.broadcast %cst_201 : f32 to vector<4x32xf32>
    %229 = arith.divf %227, %228 : vector<4x32xf32>
    %c0_202 = arith.constant 0 : index
    %c0_203 = arith.constant 0 : index
    %230 = vector.load %arg12[%c0_202, %c0_203] : memref<32x16xf32, #tpu.memory_space<vmem>>, vector<32x16xf32>
    %cst_204 = arith.constant dense<0.000000e+00> : vector<4x16xf32>
    %231 = tpu.matmul %229, %230, %cst_204 {dimension_numbers = #tpu.dot_dimension_numbers<[1], [0], [0], [1], [0, 0, 1, 1], [], []>} : vector<4x32xf32>, vector<32x16xf32>, vector<4x16xf32> -> vector<4x16xf32>
    %c8 = arith.constant 8 : index
    %c0_205 = arith.constant 0 : index
    %232 = vector.load %arg2[%c8, %c0_205] : memref<10x128xf32, #tpu.memory_space<vmem>>, vector<1x16xf32>
    %233 = vector.broadcast %232 : vector<1x16xf32> to vector<4x16xf32>
    %234 = arith.addf %231, %233 : vector<4x16xf32>
    %235 = arith.negf %234 : vector<4x16xf32>
    %236 = math.exp %235 : vector<4x16xf32>
    %cst_206 = arith.constant 1.000000e+00 : f32
    %237 = vector.broadcast %cst_206 : f32 to vector<4x16xf32>
    %238 = arith.addf %237, %236 : vector<4x16xf32>
    %239 = arith.divf %237, %238 : vector<4x16xf32>
    %240 = arith.mulf %234, %239 : vector<4x16xf32>
    %c0_207 = arith.constant 0 : index
    %c0_208 = arith.constant 0 : index
    %241 = vector.load %arg13[%c0_207, %c0_208] : memref<16x128xf32, #tpu.memory_space<vmem>>, vector<16x128xf32>
    %cst_209 = arith.constant dense<0.000000e+00> : vector<4x128xf32>
    %242 = tpu.matmul %240, %241, %cst_209 {dimension_numbers = #tpu.dot_dimension_numbers<[1], [0], [0], [1], [0, 0, 1, 1], [], []>} : vector<4x16xf32>, vector<16x128xf32>, vector<4x128xf32> -> vector<4x128xf32>
    %c9 = arith.constant 9 : index
    %c0_210 = arith.constant 0 : index
    %243 = vector.load %arg2[%c9, %c0_210] : memref<10x128xf32, #tpu.memory_space<vmem>>, vector<1x128xf32>
    %244 = vector.broadcast %243 : vector<1x128xf32> to vector<4x128xf32>
    %245 = arith.addf %242, %244 : vector<4x128xf32>
    %246 = vector.shape_cast %245 : vector<4x128xf32> to vector<1x4x128xf32>
    %c0_211 = arith.constant 0 : index
    %c0_212 = arith.constant 0 : index
    %c0_213 = arith.constant 0 : index
    %247 = vector.load %arg14[%c0_211, %c0_212, %c0_213] : memref<1x4x128xf32, #tpu.memory_space<vmem>>, vector<1x4x128xf32>
    tpu.vector_store %arg14[%c0_211, %c0_212, %c0_213], %246 {strides = array<i32>} : memref<1x4x128xf32, #tpu.memory_space<vmem>>, vector<1x4x128xf32>,
    return
  }
  func.func @transform_0(%arg0: i32) -> (i32, i32, i32) {
    %c0_i32 = arith.constant 0 : i32
    %c0_i32_0 = arith.constant 0 : i32
    %c0_i32_1 = arith.constant 0 : i32
    return %arg0, %c0_i32, %c0_i32_0 : i32, i32, i32
  }
  func.func @transform_1(%arg0: i32) -> (i32, i32) {
    %c0_i32 = arith.constant 0 : i32
    %c0_i32_0 = arith.constant 0 : i32
    %c0_i32_1 = arith.constant 0 : i32
    return %c0_i32, %c0_i32_0 : i32, i32
  }
  func.func @transform_2(%arg0: i32) -> (i32, i32, i32) {
    %c0_i32 = arith.constant 0 : i32
    %c0_i32_0 = arith.constant 0 : i32
    %c0_i32_1 = arith.constant 0 : i32
    %c0_i32_2 = arith.constant 0 : i32
    return %c0_i32, %c0_i32_0, %c0_i32_1 : i32, i32, i32
  }
  func.func @transform_3(%arg0: i32) -> (i32, i32, i32) {
    %c0_i32 = arith.constant 0 : i32
    %c0_i32_0 = arith.constant 0 : i32
    %c0_i32_1 = arith.constant 0 : i32
    %c0_i32_2 = arith.constant 0 : i32
    return %c0_i32, %c0_i32_0, %c0_i32_1 : i32, i32, i32
  }
  func.func @transform_4(%arg0: i32) -> (i32, i32, i32) {
    %c0_i32 = arith.constant 0 : i32
    %c0_i32_0 = arith.constant 0 : i32
    %c0_i32_1 = arith.constant 0 : i32
    %c0_i32_2 = arith.constant 0 : i32
    return %c0_i32, %c0_i32_0, %c0_i32_1 : i32, i32, i32
  }
  func.func @transform_5(%arg0: i32) -> (i32, i32) {
    %c0_i32 = arith.constant 0 : i32
    %c0_i32_0 = arith.constant 0 : i32
    %c0_i32_1 = arith.constant 0 : i32
    return %c0_i32, %c0_i32_0 : i32, i32
  }
  func.func @transform_6(%arg0: i32) -> (i32, i32) {
    %c0_i32 = arith.constant 0 : i32
    %c0_i32_0 = arith.constant 0 : i32
    %c0_i32_1 = arith.constant 0 : i32
    return %c0_i32, %c0_i32_0 : i32, i32
  }
  func.func @transform_7(%arg0: i32) -> (i32, i32, i32) {
    %c0_i32 = arith.constant 0 : i32
    %c0_i32_0 = arith.constant 0 : i32
    %c0_i32_1 = arith.constant 0 : i32
    %c0_i32_2 = arith.constant 0 : i32
    return %c0_i32, %c0_i32_0, %c0_i32_1 : i32, i32, i32
  }
  func.func @transform_8(%arg0: i32) -> (i32, i32, i32) {
    %c0_i32 = arith.constant 0 : i32
    %c0_i32_0 = arith.constant 0 : i32
    %c0_i32_1 = arith.constant 0 : i32
    %c0_i32_2 = arith.constant 0 : i32
    return %c0_i32, %c0_i32_0, %c0_i32_1 : i32, i32, i32
  }
  func.func @transform_9(%arg0: i32) -> (i32, i32, i32) {
    %c0_i32 = arith.constant 0 : i32
    %c0_i32_0 = arith.constant 0 : i32
    %c0_i32_1 = arith.constant 0 : i32
    %c0_i32_2 = arith.constant 0 : i32
    return %c0_i32, %c0_i32_0, %c0_i32_1 : i32, i32, i32
  }
  func.func @transform_10(%arg0: i32) -> (i32, i32, i32) {
    %c0_i32 = arith.constant 0 : i32
    %c0_i32_0 = arith.constant 0 : i32
    %c0_i32_1 = arith.constant 0 : i32
    %c0_i32_2 = arith.constant 0 : i32
    return %c0_i32, %c0_i32_0, %c0_i32_1 : i32, i32, i32
  }
  func.func @transform_11(%arg0: i32) -> (i32, i32) {
    %c0_i32 = arith.constant 0 : i32
    %c0_i32_0 = arith.constant 0 : i32
    %c0_i32_1 = arith.constant 0 : i32
    return %c0_i32, %c0_i32_0 : i32, i32
  }
  func.func @transform_12(%arg0: i32) -> (i32, i32) {
    %c0_i32 = arith.constant 0 : i32
    %c0_i32_0 = arith.constant 0 : i32
    %c0_i32_1 = arith.constant 0 : i32
    return %c0_i32, %c0_i32_0 : i32, i32
  }
  func.func @transform_13(%arg0: i32) -> (i32, i32, i32) {
    %c0_i32 = arith.constant 0 : i32
    %c0_i32_0 = arith.constant 0 : i32
    %c0_i32_1 = arith.constant 0 : i32
    return %arg0, %c0_i32, %c0_i32_0 : i32, i32, i32
  }
}

</mosaic_0001>

<bundles_post_ra>
// kernel: _lambda_.1
= control target key start
LH: loop header
LB: loop body
LE: loop exit
PB: predicated region body
PF: predicated region fallthrough
CT: control target
= control target key end

     0   :  { %s7570_s0 = inlined_call_operand.vmem [shape: f32[8,16,6], index: 0, kind: input, shape index: {}]   ;;  %s7571_s1 = inlined_call_operand.vmem [shape: f32[10,128], index: 1, kind: input, shape index: {}]   ;;  %s7572_s2 = inlined_call_operand.hbm [shape: f32[5,6,16], index: 2, kind: input, shape index: {}]   ;;  %s7573_s3 = inlined_call_operand.hbm [shape: f32[1,16,64], index: 3, kind: input, shape index: {}]   ;;  %s7574_s4 = inlined_call_operand.vmem [shape: f32[5,64,64], index: 4, kind: input, shape index: {}]   ;;  %s7575_s5 = inlined_call_operand.vmem [shape: f32[64,4], index: 5, kind: input, shape index: {}]   ;;  %s7576_s6 = inlined_call_operand.vmem [shape: f32[4,64], index: 6, kind: input, shape index: {}]   ;;  %s7577_s7 = inlined_call_operand.vmem [shape: f32[1,64,16], index: 7, kind: input, shape index: {}]   ;;  %s7578_s8 = inlined_call_operand.hbm [shape: f32[5,16,16], index: 8, kind: input, shape index: {}]   ;;  %s7579_s9 = inlined_call_operand.vmem [shape: f32[5,16,16], index: 9, kind: input, shape index: {}]   ;;  %s7580_s10 = inlined_call_operand.hbm [shape: f32[1,16,32], index: 10, kind: input, shape index: {}]   ;;  %s7581_s11 = inlined_call_operand.vmem [shape: f32[32,16], index: 11, kind: input, shape index: {}]   ;;  %s7582_s12 = inlined_call_operand.hbm [shape: f32[16,128], index: 12, kind: input, shape index: {}]   ;;  %s7583_s13 = inlined_call_operand.vmem [shape: f32[2,4,128], index: 13, kind: output, shape index: {}]  }
   0x1   :  { %7588 = sst [smem:[#allocation15_spill]] %s7581_s11 }
   0x2   :  { %7589 = sst [smem:[#allocation16_spill]] %s7583_s13 }
   0x3   :  { %18 = vsyncpa [#allocation4], 0 }
   0x4   :  { %19 = vsyncpa [#allocation6], 0 }
   0x5   :  { %20 = vsyncpa [#allocation9], 0  ;;  %s6691_s25 = smov 0  }
   0x6 LB: > { %7590 = sst [smem:[#allocation14_spill]] %s6608_s25  ;;  %s6697_s26 = sadd.s32 4294967295, %s6608_s25   ;;  %s6608_s25 = sphi %s6691_s25, %s26_s25  }
   0x7   : > { %p4851_p0 = scmp.ge.s32.totalorder %s6608_s25, 1  ;;  %p335_p1 = scmp.lt.s32.totalorder %s6608_s25, 3 }
   0x8   : > { %p7586_p2 = scmp.eq.s32.totalorder %s6697_s26, 0  ;;  %s6610_s28 = smov [#allocation5]  }
   0x9   : > { %p6702_p3 = pnand %p4851_p0, %p335_p1  ;;  %s363_s29 = sshll.u32 %s6610_s28, 4  ;;  %s6706_s29 = int_to_ptr.vmem [resolvable:$true] %s363_s29 }
   0xa   : > { %s6611_s30 = smov [#allocation8]   ;;  %s6612_s16 = smov [#allocation3]  }
   0xb   : > { %s7591_s27 = scalar_select %p6702_p3, 1, 0 }
   0xc   : > { %p6233_p4 = pneg %p6702_p3  ;;  %s404_s14 = sshll.u32 %s6611_s30, 4  ;;  %s6710_s14 = int_to_ptr.vmem [resolvable:$true] %s404_s14 }
   0xd   : > { %s350_s17 = sshll.u32 %s6612_s16, 4  ;;  %s6613_s18 = smov [#allocation7]   ;;  %s6718_s17 = int_to_ptr.vmem [resolvable:$true] %s350_s17 }
   0xe   : > { %p6714_p5 = pnand %p7586_p2, %p6233_p4  ;;  %s6720_s19 = sshll.u32 %s6613_s18, 4  ;;  %s389_s19 = int_to_ptr.vmem [resolvable:$true] %s6720_s19 }
   0xf   : > { %s6450_s22 = scalar_lea.hbm %s7573_s3, 256 }
  0x10   : > { %p6451_p6 = scmp.ne.s32.totalorder %s7573_s3, %s6450_s22  ;;  %p6730_p7 = pneg %p6714_p5 }
  0x11   : > { %p6457_p10 = scmp.lt.u32.totalorder %s6450_s22, %s7573_s3 }
  0x12   : > { %p6453_p8 = pnand %p6730_p7, %p6451_p6 }
  0x14   : > { %p6454_p9 = pneg %p6453_p8 }
  0x16   : > { %p6459_p11 = pnand %p6457_p10, %p6454_p9 }
  0x18   : > { %6462 = shalt.err (!%p6459_p11)
}
  0x19   : > { %s6463_s18 = scalar_lea.vmem %s6706_s29, 256  ;;  %p6471_p1 = scmp.lt.s32.totalorder %s6706_s29, %s6706_s29 }
  0x1a   : > { %p6464_p12 = scmp.ne.s32.totalorder %s6706_s29, %s6463_s18  ;;  %p6472_p4 = scmp.lt.s32.totalorder %s6463_s18, %s6463_s18 }
  0x1c   : > { %p6466_p13 = pnand %p6464_p12, %p6730_p7  ;;  %p6473_p6 = por %p6472_p4, %p6471_p1 }
  0x1e   : > { %p6467_p0 = pneg %p6466_p13 }
  0x20   : > { %p6474_p8 = pnand %p6473_p6, %p6467_p0 }
  0x22   : > { %6477 = shalt.err (!%p6474_p8)
}
  0x23   : > { %s6614_s20 = smov 128   ;;  %s6615_s21 = smov 8  }
  0x24   : > { %6239 = dma.hbm_to_vmem [thread:$0]  (!%p6714_p5), %s7573_s3, 256, %s6706_s29, [#allocation6], %s6614_s20, %s6614_s20, %s6615_s21  }
  0x25   : > { %s6478_s16 = scalar_lea.hbm %s7580_s10, 256 }
  0x26   : > { %p6479_p9 = scmp.ne.s32.totalorder %s7580_s10, %s6478_s16  ;;  %p6485_p12 = scmp.lt.u32.totalorder %s6478_s16, %s7580_s10 }
  0x28   : > { %p6481_p10 = pnand %p6479_p9, %p6730_p7 }
  0x2a   : > { %p6482_p11 = pneg %p6481_p10 }
  0x2c   : > { %p6487_p13 = pnand %p6485_p12, %p6482_p11 }
  0x2e   : > { %6490 = shalt.err (!%p6487_p13)
}
  0x2f   : > { %s6491_s29 = scalar_lea.vmem %s6710_s14, 256  ;;  %p6499_p6 = scmp.lt.s32.totalorder %s6710_s14, %s6710_s14 }
  0x30   : > { %p6492_p0 = scmp.ne.s32.totalorder %s6710_s14, %s6491_s29  ;;  %p6500_p8 = scmp.lt.s32.totalorder %s6491_s29, %s6491_s29 }
  0x32   : > { %p6494_p1 = pnand %p6492_p0, %p6730_p7  ;;  %p6501_p9 = por %p6500_p8, %p6499_p6 }
  0x34   : > { %p6495_p4 = pneg %p6494_p1 }
  0x36   : > { %p6502_p10 = pnand %p6501_p9, %p6495_p4 }
  0x38   : > { %6505 = shalt.err (!%p6502_p10)
}
  0x39   : > { %6245 = dma.hbm_to_vmem [thread:$0]  (!%p6714_p5), %s7580_s10, 256, %s6710_s14, [#allocation9], %s6614_s20, %s6614_s20, %s6615_s21  }
  0x3a   : > { %s6506_s23 = scalar_lea.hbm %s7572_s2, 640 }
  0x3b   : > { %p6507_p11 = scmp.ne.s32.totalorder %s7572_s2, %s6506_s23  ;;  %p6513_p0 = scmp.lt.u32.totalorder %s6506_s23, %s7572_s2 }
  0x3d   : > { %p6509_p12 = pnand %p6507_p11, %p6730_p7 }
  0x3f   : > { %p6510_p13 = pneg %p6509_p12 }
  0x41   : > { %p6515_p1 = pnand %p6513_p0, %p6510_p13 }
  0x43   : > { %6518 = shalt.err (!%p6515_p1)
}
  0x44   : > { %s6519_s14 = scalar_lea.vmem %s6718_s17, 640  ;;  %p6527_p9 = scmp.lt.s32.totalorder %s6718_s17, %s6718_s17 }
  0x45   : > { %p6520_p4 = scmp.ne.s32.totalorder %s6718_s17, %s6519_s14  ;;  %p6528_p10 = scmp.lt.s32.totalorder %s6519_s14, %s6519_s14 }
  0x47   : > { %p6522_p6 = pnand %p6520_p4, %p6730_p7  ;;  %p6529_p11 = por %p6528_p10, %p6527_p9 }
  0x49   : > { %p6523_p8 = pneg %p6522_p6 }
  0x4b   : > { %p6530_p12 = pnand %p6529_p11, %p6523_p8 }
  0x4d   : > { %6533 = shalt.err (!%p6530_p12)
}
  0x4e   : > { %6236 = dma.hbm_to_vmem [thread:$0]  (!%p6714_p5), %s7572_s2, 640, %s6718_s17, [#allocation4], %s6614_s20, %s6614_s20, %s6615_s21  }
  0x4f   : > { %s6534_s22 = scalar_lea.hbm %s7578_s8, 1280 }
  0x50   : > { %p6535_p13 = scmp.ne.s32.totalorder %s7578_s8, %s6534_s22  ;;  %p6541_p4 = scmp.lt.u32.totalorder %s6534_s22, %s7578_s8 }
  0x52   : > { %p6537_p0 = pnand %p6535_p13, %p6730_p7 }
  0x54   : > { %p6538_p1 = pneg %p6537_p0 }
  0x56   : > { %p6543_p6 = pnand %p6541_p4, %p6538_p1 }
  0x58   : > { %6546 = shalt.err (!%p6543_p6)
}
  0x59   : > { %s6547_s18 = scalar_lea.vmem %s389_s19, 1280  ;;  %p6555_p11 = scmp.lt.s32.totalorder %s389_s19, %s389_s19 }
  0x5a   : > { %p6548_p8 = scmp.ne.s32.totalorder %s389_s19, %s6547_s18  ;;  %p6556_p12 = scmp.lt.s32.totalorder %s6547_s18, %s6547_s18 }
  0x5c   : > { %p6550_p9 = pnand %p6548_p8, %p6730_p7  ;;  %p6557_p2 = por %p6556_p12, %p6555_p11 }
  0x5e   : > { %p6551_p10 = pneg %p6550_p9 }
  0x60   : > { %p6558_p3 = pnand %p6557_p2, %p6551_p10 }
  0x62   : > { %6561 = shalt.err (!%p6558_p3)
}
  0x63   : > { %6242 = dma.hbm_to_vmem [thread:$0]  (!%p6714_p5), %s7578_s8, 1280, %s389_s19, [#allocation6], %s6614_s20, %s6614_s20, %s6615_s21  }
  0x64   : > { %s6616_s29 = smov [#allocation10]   ;;  %s6562_s22 = scalar_lea.hbm %s7582_s12, 256 }
  0x65   : > { %s420_s11 = sshll.u32 %s6616_s29, 4  ;;  %p6563_p2 = scmp.ne.s32.totalorder %s7582_s12, %s6562_s22  ;;  %s421_s11 = int_to_ptr.vmem [resolvable:$true] %s420_s11 }
  0x66   : > { %p6569_p0 = scmp.lt.u32.totalorder %s6562_s22, %s7582_s12 }
  0x67   : > { %p6565_p3 = pnand %p6563_p2, %p6730_p7 }
  0x69   : > { %p6566_p13 = pneg %p6565_p3 }
  0x6b   : > { %p6571_p1 = pnand %p6569_p0, %p6566_p13 }
  0x6d   : > { %6574 = shalt.err (!%p6571_p1)
}
  0x6e   : > { %s6575_s19 = scalar_lea.vmem %s421_s11, 256  ;;  %p6583_p9 = scmp.lt.s32.totalorder %s421_s11, %s421_s11 }
  0x6f   : > { %p6576_p4 = scmp.ne.s32.totalorder %s421_s11, %s6575_s19  ;;  %p6584_p10 = scmp.lt.s32.totalorder %s6575_s19, %s6575_s19 }
  0x71   : > { %p6578_p6 = pnand %p6576_p4, %p6730_p7  ;;  %p6585_p11 = por %p6584_p10, %p6583_p9 }
  0x73   : > { %p6579_p8 = pneg %p6578_p6 }
  0x75   : > { %p6586_p12 = pnand %p6585_p11, %p6579_p8 }
  0x77   : > { %6589 = shalt.err (!%p6586_p12)
}
  0x78   : > { %6248 = dma.hbm_to_vmem [thread:$0]  (!%p6714_p5), %s7582_s12, 256, %s421_s11, [#allocation9], %s6614_s20, %s6614_s20, %s6615_s21  }
  0x79   : > { %p7594_p2 = scmp.ne.s32.totalorder %s7591_s27, 0 }
  0x7a   : > { %p7595_p7 = scmp.eq.s32.totalorder (!%p7594_p2), %s6697_s26, 0 }
  0x7b   : > { %446 = sbr.rel (%p7594_p2) target bundleno = 2795 (0xaeb), region = 72 }
  0x82   : > { %6595 = dma.done.wait (%p7595_p7), [#allocation4], 640   ;;  %p7596_p3 = pmov %p7595_p7 }
  0x84   : > { %6597 = vsyncadd (%p7596_p3), [#allocation4], 4294966656  ;;  %p7597_p13 = pmov %p7596_p3 }
  0x85   : > { %p7598_p0 = pmov %p7596_p3 }
  0x86   : > { %6599 = dma.done.wait (%p7597_p13), [#allocation6], 1536  }
  0x87   : > { %6601 = vsyncadd (%p7598_p0), [#allocation6], 4294965760  ;;  %p7599_p1 = pmov %p7598_p0 }
  0x88   : > { %p7600_p5 = pmov %p7598_p0 }
  0x89   : > { %6603 = dma.done.wait (%p7599_p1), [#allocation9], 512  }
  0x8a   : > { %6605 = vsyncadd (%p7600_p5), [#allocation9], 4294966784  ;;  %s4864_s27 = sshll.u32 %s6697_s26, 2  ;;  %vm517_vm0 = vcmask 517120   ;;  %v6617_v0 = vmov 0.0   ;;  %vm586_vm1 = vcmask 1045504  }
  0x8b   : > { %p507_p4 = scmp.lt.s32.totalorder %s4864_s27, 7  ;;  %518 = vst.msk [vmem:[#allocation2] sm:$0x3] %vm517_vm0, %v6617_v0  ;;  %519 = vst.msk [vmem:[#allocation2 + $0x18] sm:$0x3] %vm517_vm0, %v6617_v0  ;;  %vm534_vm2 = vcmask 48128  }
  0x8c   : > { %520 = vst.msk [vmem:[#allocation2 + $0x30] sm:$0x3] %vm517_vm0, %v6617_v0  ;;  %521 = vst.msk [vmem:[#allocation2 + $0x48] sm:$0x3] %vm517_vm0, %v6617_v0  ;;  %v561_v1 = vld [vmem:[#allocation3 + $0x8] sm:$0x3f] }
  0x8d   : > { %522 = vst.msk [vmem:[#allocation2 + $0x12] sm:$0x3] %vm517_vm0, %v6617_v0  ;;  %523 = vst.msk [vmem:[#allocation2 + $0x2a] sm:$0x3] %vm517_vm0, %v6617_v0  ;;  %s7605_s27 = smov (!%p507_p4, %s4864_s27), 7  ;;  %5438 = vmatprep.subr.msk.mxu1 %vm586_vm1, %v561_v1  ;;  %v1346_v54 = vld [vmem:[#allocation5] sm:$0xff] }
  0x8e   : > { %524 = vst.msk [vmem:[#allocation2 + $0x42] sm:$0x3] %vm517_vm0, %v6617_v0  ;;  %525 = vst.msk [vmem:[#allocation2 + $0x5a] sm:$0x3] %vm517_vm0, %v6617_v0  ;;  %s5157_s15 = sshll.u32 %s7605_s27, 4  ;;  %5439 = vmatpush3.msk.msra.mxu1 %vm586_vm1, %v561_v1  ;;  %v1347_v55 = vld [vmem:[#allocation5 + $0x8] sm:$0xff] }
  0x8f   : > { %s511_s21 = scalar_lea.vmem %s7570_s0, %s5157_s15  ;;  %v551_v3 = vld [vmem:[#allocation3] sm:$0x3f]  ;;  %v6885_v11 = vld [vmem:[#allocation3 + $0x18] sm:$0x3f]  ;;  %v836_v16 = vld [vmem:[#allocation3 + $0x10] sm:$0x3f]  ;;  %v5910_v56 = vpack.c.bf16 %v1347_v55, %v1346_v54 }
  0x90   : > { %v526_v2 = vld [vmem:[%s511_s21] sm:$0xff]  ;;  %v527_v4 = vld [vmem:[%s511_s21 + $0x8] sm:$0xff]  ;;  %v528_v5 = vld [vmem:[%s511_s21 + $0x10] sm:$0xff]  ;;  %5452 = vmatprep.subr.msk.mxu1 %vm586_vm1, %v551_v3  ;;  %5480 = vmatprep.subr.msk.mxu0 %vm586_vm1, %v6885_v11  ;;  %vm1353_vm3 = vcmask 130048   ;;  %vm1539_vm4 = vcmask 523264   ;;  %vm6619_vm5 = vmmov 0  }
  0x91   : > { %535 = vst.msk [vmem:[#allocation2 + $0x2] sm:$0xff] %vm534_vm2, %v526_v2  ;;  %v529_v6 = vld [vmem:[%s511_s21 + $0x18] sm:$0xff]  ;;  %536 = vst.msk [vmem:[#allocation2 + $0xa] sm:$0xff] %vm534_vm2, %v527_v4  ;;  %v530_v7 = vld [vmem:[%s511_s21 + $0x20] sm:$0xff]  ;;  %5481 = vmatpush3.msk.msra.mxu0 %vm586_vm1, %v6885_v11  ;;  %vm2428_vm6 = vcmask 1041409   ;;  %vm2430_vm7 = vcmask 1042434  }
  0x92   : > { %537 = vst.msk [vmem:[#allocation2 + $0x1a] sm:$0xff] %vm534_vm2, %v528_v5  ;;  %538 = vst.msk [vmem:[#allocation2 + $0x22] sm:$0xff] %vm534_vm2, %v529_v6  ;;  %v531_v8 = vld [vmem:[%s511_s21 + $0x28] sm:$0xff]  ;;  %v532_v9 = vld [vmem:[%s511_s21 + $0x30] sm:$0xff]  ;;  %vm2432_vm8 = vcmask 1043459   ;;  %vm2523_vm9 = vcmask 1043456  }
  0x93   : > { %539 = vst.msk [vmem:[#allocation2 + $0x32] sm:$0xff] %vm534_vm2, %v530_v7  ;;  %540 = vst.msk [vmem:[#allocation2 + $0x3a] sm:$0xff] %vm534_vm2, %v531_v8  ;;  %v533_v10 = vld [vmem:[%s511_s21 + $0x38] sm:$0xff]  ;;  %v1136_v12 = vld [vmem:[#allocation3 + $0x20] sm:$0x3f]  ;;  %vm2519_vm10 = vcmask 31744  }
  0x94   : > { %541 = vst.msk [vmem:[#allocation2 + $0x4a] sm:$0xff] %vm534_vm2, %v532_v9  ;;  %542 = vst.msk [vmem:[#allocation2 + $0x52] sm:$0xff] %vm534_vm2, %v533_v10  ;;  %5494 = vmatprep.subr.msk.mxu0 %vm586_vm1, %v1136_v12  ;;  %s7601_s23 = sld [smem:[#allocation15_spill]]  ;;  %vm4529_vm11 = vcmask 261120   ;;  %p513_p6 = scmp.lt.s32.totalorder %s6697_s26, 1 }
  0x95   : > { %s7602_s25 = sld [smem:[#allocation16_spill]] }
  0x96   : > { %s7607_s26 = smov (!%p513_p6, %s6697_s26), 1 }
  0x97   : > { %s4867_s21 = sshll.u32 %s7607_s26, 2 }
  0x98   : > { %v552_v13 = vld [vmem:[#allocation2 + $0x1] sm:$0xff]  ;;  %v553_v14 = vld [vmem:[#allocation2 + $0x9] sm:$0xff] }
  0x99   : > { %5440 = vmatprep.mubr.msk.f32.mxu1 %vm534_vm2, %v552_v13  ;;  %v554_v15 = vld [vmem:[#allocation2 + $0x19] sm:$0xff]  ;;  %v555_v17 = vld [vmem:[#allocation2 + $0x21] sm:$0xff]  ;;  %v978_v20 = vld [vmem:[#allocation2 + $0xb] sm:$0xff] }
  0x9a   : > { %5441 = vmatmul.mubr.msk.f32.vlgmr.msra.gmra.mrb[0].mxu1 %vm534_vm2, %v553_v14  ;;  %v556_v18 = vld [vmem:[#allocation2 + $0x31] sm:$0xff]  ;;  %v977_v19 = vld [vmem:[#allocation2 + $0x3] sm:$0xff]  ;;  %v979_v21 = vld [vmem:[#allocation2 + $0x1b] sm:$0xff] }
  0x9b   : > { %5453 = vmatpush3.msk.msra.mxu1 %vm586_vm1, %v551_v3  ;;  %5443 = vmatprep.mubr.msk.f32.mxu1 %vm534_vm2, %v554_v15  ;;  %v557_v22 = vld [vmem:[#allocation2 + $0x39] sm:$0xff]  ;;  %v980_v23 = vld [vmem:[#allocation2 + $0x23] sm:$0xff]  ;;  %v559_v26 = vld [vmem:[#allocation2 + $0x51] sm:$0xff]  ;;  %s516_s22 = scalar_lea.vmem %s7602_s25, %s4867_s21 }
  0x9c   : > { %5466 = vmatprep.subr.msk.mxu1 %vm586_vm1, %v836_v16  ;;  %5482 = vmatprep.mubr.msk.f32.mxu0 %vm534_vm2, %v977_v19  ;;  %v558_v24 = vld [vmem:[#allocation2 + $0x49] sm:$0xff]  ;;  %v543_v28 = vld [vmem:[#allocation2] sm:$0xff]  ;;  %v545_v32 = vld [vmem:[#allocation2 + $0x18] sm:$0xff] }
  0x9d   : > { %5483 = vmatmul.mubr.msk.f32.vlgmr.msra.gmra.mrb[0].mxu0 %vm534_vm2, %v978_v20  ;;  %v1127_v25 = vld [vmem:[#allocation2 + $0x4] sm:$0xff]  ;;  %v1128_v27 = vld [vmem:[#allocation2 + $0xc] sm:$0xff]  ;;  %v1129_v29 = vld [vmem:[#allocation2 + $0x1c] sm:$0xff] }
  0x9e   : > { %5444 = vmatmul.mubr.msk.f32.gmra.mrb[2].mxu1 %vm534_vm2, %v555_v17  ;;  %5485 = vmatprep.mubr.msk.f32.mxu0 %vm534_vm2, %v979_v21  ;;  %v544_v30 = vld [vmem:[#allocation2 + $0x8] sm:$0xff]  ;;  %v1131_v33 = vld [vmem:[#allocation2 + $0x34] sm:$0xff]  ;;  %v546_v34 = vld [vmem:[#allocation2 + $0x20] sm:$0xff] }
  0x9f   : > { %5446 = vmatprep.mubr.msk.f32.mxu1 %vm534_vm2, %v556_v18  ;;  %5495 = vmatpush3.msk.msra.mxu0 %vm586_vm1, %v1136_v12  ;;  %v1130_v31 = vld [vmem:[#allocation2 + $0x24] sm:$0xff]  ;;  %v1132_v35 = vld [vmem:[#allocation2 + $0x3c] sm:$0xff]  ;;  %v547_v36 = vld [vmem:[#allocation2 + $0x30] sm:$0xff] }
  0xa0   : > { %v1133_v37 = vld [vmem:[#allocation2 + $0x4c] sm:$0xff]  ;;  %v548_v38 = vld [vmem:[#allocation2 + $0x38] sm:$0xff]  ;;  %v827_v42 = vld [vmem:[#allocation2 + $0x2] sm:$0xff] }
  0xa1   : > { %5486 = vmatmul.mubr.msk.f32.gmra.mrb[2].mxu0 %vm534_vm2, %v980_v23  ;;  %v1134_v39 = vld [vmem:[#allocation2 + $0x54] sm:$0xff]  ;;  %v549_v40 = vld [vmem:[#allocation2 + $0x48] sm:$0xff]  ;;  %v4913_v3 = vld [vmem:[%s7571_s1] ss:$0 sm:$0xff] }
  0xa2   : > { %5447 = vmatmul.mubr.msk.f32.gmra.mrb[4].mxu1 %vm534_vm2, %v557_v22  ;;  %5496 = vmatprep.mubr.msk.f32.mxu0 %vm534_vm2, %v1127_v25  ;;  %v550_v41 = vld [vmem:[#allocation2 + $0x50] sm:$0xff]  ;;  %v829_v44 = vld [vmem:[#allocation2 + $0x1a] sm:$0xff]  ;;  %v830_v45 = vld [vmem:[#allocation2 + $0x22] sm:$0xff] }
  0xa3   : > { %5449 = vmatprep.mubr.msk.f32.mxu1 %vm534_vm2, %v558_v24  ;;  %v828_v43 = vld [vmem:[#allocation2 + $0xa] sm:$0xff]  ;;  %v831_v46 = vld [vmem:[#allocation2 + $0x32] sm:$0xff]  ;;  %v832_v47 = vld [vmem:[#allocation2 + $0x3a] sm:$0xff] }
  0xa4   : > { %v833_v48 = vld [vmem:[#allocation2 + $0x4a] sm:$0xff]  ;;  %v834_v49 = vld [vmem:[#allocation2 + $0x52] sm:$0xff]  ;;  %v982_v51 = vld [vmem:[#allocation2 + $0x3b] sm:$0xff] }
  0xa5   : > { %5497 = vmatmul.mubr.msk.f32.vlgmr.msra.gmra.mrb[0].mxu0 %vm534_vm2, %v1128_v27  ;;  %v981_v50 = vld [vmem:[#allocation2 + $0x33] sm:$0xff]  ;;  %v983_v52 = vld [vmem:[#allocation2 + $0x4b] sm:$0xff] }
  0xa6   : > { %5450 = vmatmul.mubr.msk.f32.gmra.mrb[6].mxu1 %vm534_vm2, %v559_v26  ;;  %5499 = vmatprep.mubr.msk.f32.mxu0 %vm534_vm2, %v1129_v29  ;;  %v984_v53 = vld [vmem:[#allocation2 + $0x53] sm:$0xff] }
  0xa7   : > { %5454 = vmatprep.mubr.msk.f32.mxu1 %vm534_vm2, %v543_v28 }
  0xa9   : > { %5500 = vmatmul.mubr.msk.f32.gmra.mrb[2].mxu0 %vm534_vm2, %v1130_v31 }
  0xaa   : > { %5455 = vmatmul.mubr.msk.f32.vlgmr.msra.gmra.mrb[0].mxu1 %vm534_vm2, %v544_v30  ;;  %5502 = vmatprep.mubr.msk.f32.mxu0 %vm534_vm2, %v1131_v33 }
  0xab   : > { %5467 = vmatpush3.msk.msra.mxu1 %vm586_vm1, %v836_v16  ;;  %5457 = vmatprep.mubr.msk.f32.mxu1 %vm534_vm2, %v545_v32 }
  0xac   : > { %6075 = vmatprep.subr.msk.mxu1 %vm586_vm1, %v6885_v11 }
  0xad   : > { %5503 = vmatmul.mubr.msk.f32.gmra.mrb[4].mxu0 %vm534_vm2, %v1132_v35 }
  0xae   : > { %5458 = vmatmul.mubr.msk.f32.gmra.mrb[2].mxu1 %vm534_vm2, %v546_v34  ;;  %5505 = vmatprep.mubr.msk.f32.mxu0 %vm534_vm2, %v1133_v37 }
  0xaf   : > { %5460 = vmatprep.mubr.msk.f32.mxu1 %vm534_vm2, %v547_v36 }
  0xb1   : > { %5506 = vmatmul.mubr.msk.f32.gmra.mrb[6].mxu0 %vm534_vm2, %v1134_v39 }
  0xb2   : > { %5461 = vmatmul.mubr.msk.f32.gmra.mrb[4].mxu1 %vm534_vm2, %v548_v38  ;;  %5680 = vmatprep.mubr.msk.f32.mxu0 %vm6619_vm5, %v6617_v0 }
  0xb3   : > { %5463 = vmatprep.mubr.msk.f32.mxu1 %vm534_vm2, %v549_v40 }
  0xb6   : > { %5464 = vmatmul.mubr.msk.f32.gmra.mrb[6].mxu1 %vm534_vm2, %v550_v41 }
  0xb7   : > { %5468 = vmatprep.mubr.msk.f32.mxu1 %vm534_vm2, %v827_v42 }
  0xba   : > { %5469 = vmatmul.mubr.msk.f32.vlgmr.msra.gmra.mrb[0].mxu1 %vm534_vm2, %v828_v43 }
  0xbb   : > { %6076 = vmatpush3.msk.msra.mxu1 %vm586_vm1, %v6885_v11  ;;  %5471 = vmatprep.mubr.msk.f32.mxu1 %vm534_vm2, %v829_v44 }
  0xbc   : > { %5911 = vmatprep.subr.bf16.mxu1 %v5910_v56 }
  0xbe   : > { %5472 = vmatmul.mubr.msk.f32.gmra.mrb[2].mxu1 %vm534_vm2, %v830_v45 }
  0xbf   : > { %5474 = vmatprep.mubr.msk.f32.mxu1 %vm534_vm2, %v831_v46 }
  0xc2   : > { %5475 = vmatmul.mubr.msk.f32.gmra.mrb[4].mxu1 %vm534_vm2, %v832_v47 }
  0xc3   : > { %5477 = vmatprep.mubr.msk.f32.mxu1 %vm534_vm2, %v833_v48 }
  0xc6   : > { %5478 = vmatmul.mubr.msk.f32.gmra.mrb[6].mxu1 %vm534_vm2, %v834_v49 }
  0xc7   : > { %5488 = vmatprep.mubr.msk.f32.mxu1 %vm534_vm2, %v981_v50 }
  0xca   : > { %5489 = vmatmul.mubr.msk.f32.vlgmr.msra.gmra.mrb[4].mxu1 %vm534_vm2, %v982_v51 }
  0xcb   : > { %5491 = vmatprep.mubr.msk.f32.mxu1 %vm534_vm2, %v983_v52  ;;  %5913 = vmatpush3.bf16.msra.mxu1 %v5910_v56 }
  0xce   : > { %5492 = vmatmul.mubr.msk.f32.gmra.mrb[6].mxu1 %vm534_vm2, %v984_v53 }
 0x178   : > { %v5498_v57 = vpop.f32.mrb[0].mxu0 }
 0x179   : > { %v1230_v58 = vpop.f32.mrb[1].mxu0 }
 0x17c   : > { %v5501_v59 = vpop.f32.mrb[2].mxu0 }
 0x17d   : > { %v1240_v60 = vpop.f32.mrb[3].mxu0 }
 0x180   : > { %v5504_v61 = vpop.f32.mrb[4].mxu0 }
 0x181   : > { %v1250_v62 = vpop.f32.mrb[5].mxu0 }
 0x184   : > { %v5507_v63 = vpop.f32.mrb[6].mxu0 }
 0x185   : > { %v1260_v1 = vpop.f32.mrb[7].mxu0 }
 0x18d   : > { %v5470_v2 = vpop.f32.mrb[0].mxu1 }
 0x18e   : > { %v6077_v4 = vadd.f32 %v5498_v57, %v5470_v2  ;;  %v930_v5 = vpop.f32.mrb[1].mxu1 }
 0x18f   : > { %v6078_v6 = vadd.f32 %v1230_v58, %v930_v5  ;;  %v4940_v5 = vld [vmem:[%s7574_s4 + $0x48] sm:$0xff] }
 0x190   : > { %v1283_v7 = vadd.f32 %v6077_v4, %v4913_v3  ;;  %v4939_v4 = vld [vmem:[%s7574_s4 + $0x40] sm:$0xff] }
 0x191   : > { %v1282_v8 = vadd.f32 %v6078_v6, %v4913_v3  ;;  %v5473_v9 = vpop.f32.mrb[2].mxu1  ;;  %v5914_v6 = vpack.c.bf16 %v4940_v5, %v4939_v4 }
 0x192   : > { %v4915_v10 = vmul.f32 -1.442695, %v1283_v7  ;;  %v6079_v11 = vadd.f32 %v5501_v59, %v5473_v9  ;;  %v940_v12 = vpop.f32.mrb[3].mxu1 }
 0x193   : > { %v4914_v13 = vmul.f32 -1.442695, %v1282_v8  ;;  %v6080_v14 = vadd.f32 %v1240_v60, %v940_v12  ;;  %5915 = vmatprep.subr.bf16.mxu1 %v5914_v6 }
 0x194   : > { %6278 = vpow2.f32 %v4915_v10  ;;  %v1285_v15 = vadd.f32 %v6079_v11, %v4913_v3  ;;  %v4943_v10 = vld [vmem:[%s7574_s4 + $0x60] sm:$0xff]  ;;  %v4944_v11 = vld [vmem:[%s7574_s4 + $0x68] sm:$0xff] }
 0x195   : > { %6280 = vpow2.f32 %v4914_v13  ;;  %v1284_v16 = vadd.f32 %v6080_v14, %v4913_v3  ;;  %v5922_v12 = vpack.c.bf16 %v4944_v11, %v4943_v10  ;;  %v4945_v13 = vld [vmem:[%s7574_s4 + $0x70] sm:$0xff]  ;;  %v4946_v14 = vld [vmem:[%s7574_s4 + $0x78] sm:$0xff] }
 0x196   : > { %v4917_v17 = vmul.f32 -1.442695, %v1285_v15  ;;  %v1559_v10 = vld [vmem:[%s7574_s4 + $0x18] sm:$0xff] }
 0x197   : > { %v4916_v18 = vmul.f32 -1.442695, %v1284_v16 }
 0x198   : > { %6282 = vpow2.f32 %v4917_v17  ;;  %v1557_v17 = vld [vmem:[%s7574_s4 + $0x8] sm:$0xff] }
 0x199   : > { %6284 = vpow2.f32 %v4916_v18 }
 0x19d   : > { %v5490_v19 = vpop.f32.mrb[4].mxu1 }
 0x19e   : > { %v6279_v20 = vpop.eup %6278  ;;  %v6081_v21 = vadd.f32 %v5504_v61, %v5490_v19  ;;  %v1100_v22 = vpop.f32.mrb[5].mxu1  ;;  %v4922_v19 = vld [vmem:[%s7571_s1 + $0x1] ss:$0 sm:$0xff] }
 0x19f   : > { %v6281_v23 = vpop.eup %6280  ;;  %v1315_v24 = vadd.f32 1.0, %v6279_v20  ;;  %v6082_v25 = vadd.f32 %v1250_v62, %v1100_v22 }
 0x1a0   : > { %v1314_v26 = vadd.f32 1.0, %v6281_v23  ;;  %v1287_v27 = vadd.f32 %v6081_v21, %v4913_v3 }
 0x1a1   : > { %6286 = vrcp.f32 %v1315_v24  ;;  %v1286_v28 = vadd.f32 %v6082_v25, %v4913_v3  ;;  %v5493_v29 = vpop.f32.mrb[6].mxu1 }
 0x1a2   : > { %v6283_v30 = vpop.eup %6282  ;;  %6288 = vrcp.f32 %v1314_v26  ;;  %v4919_v31 = vmul.f32 -1.442695, %v1287_v27  ;;  %v6083_v32 = vadd.f32 %v5507_v63, %v5493_v29  ;;  %v1110_v33 = vpop.f32.mrb[7].mxu1 }
 0x1a3   : > { %v6285_v34 = vpop.eup %6284  ;;  %v1317_v35 = vadd.f32 1.0, %v6283_v30  ;;  %v4918_v36 = vmul.f32 -1.442695, %v1286_v28  ;;  %v6084_v37 = vadd.f32 %v1260_v1, %v1110_v33 }
 0x1a4   : > { %v1316_v38 = vadd.f32 1.0, %v6285_v34  ;;  %6290 = vpow2.f32 %v4919_v31  ;;  %v1289_v39 = vadd.f32 %v6083_v32, %v4913_v3 }
 0x1a5   : > { %6292 = vrcp.f32 %v1317_v35  ;;  %v1288_v40 = vadd.f32 %v6084_v37, %v4913_v3 }
 0x1a6   : > { %6294 = vrcp.f32 %v1316_v38  ;;  %v4921_v41 = vmul.f32 -1.442695, %v1289_v39 }
 0x1a7   : > { %6296 = vpow2.f32 %v4918_v36  ;;  %v4920_v42 = vmul.f32 -1.442695, %v1288_v40 }
 0x1a8   : > { %6298 = vpow2.f32 %v4921_v41 }
 0x1a9   : > { %6300 = vpow2.f32 %v4920_v42 }
 0x1ab   : > { %v6287_v43 = vpop.eup %6286 }
 0x1ac   : > { %v6289_v44 = vpop.eup %6288  ;;  %v6946_v47 = vmul.f32 %v6287_v43, %v1283_v7  ;;  %v4941_v7 = vld [vmem:[%s7574_s4 + $0x50] sm:$0xff] }
 0x1ad   : > { %v6944_v45 = vmul.f32 %v6289_v44, %v1282_v8  ;;  %v4942_v8 = vld [vmem:[%s7574_s4 + $0x58] sm:$0xff] }
 0x1ae   : > { %v6291_v46 = vpop.eup %6290  ;;  %v5918_v9 = vpack.c.bf16 %v4942_v8, %v4941_v7 }
 0x1af   : > { %v6293_v48 = vpop.eup %6292  ;;  %v1319_v49 = vadd.f32 1.0, %v6291_v46  ;;  %5512 = vmatprep.mubr.msk.f32.mxu1 %vm1353_vm3, %v6944_v45 }
 0x1b0   : > { %v6295_v50 = vpop.eup %6294  ;;  %5513 = vmatmul.mubr.msk.f32.vlgmr.msra.gmra.mrb[8].mxu1 %vm1353_vm3, %v6946_v47  ;;  %v6954_v54 = vmul.f32 %v6293_v48, %v1285_v15  ;;  %v5926_v15 = vpack.c.bf16 %v4946_v14, %v4945_v13  ;;  %v1560_v14 = vld [vmem:[%s7574_s4 + $0x20] sm:$0xff] }
 0x1b1   : > { %v6297_v51 = vpop.eup %6296  ;;  %v6952_v52 = vmul.f32 %v6295_v50, %v1284_v16  ;;  %6302 = vrcp.f32 %v1319_v49  ;;  %5917 = vmatpush3.bf16.msra.mxu1 %v5914_v6  ;;  %v1556_v16 = vld [vmem:[%s7574_s4] sm:$0xff] }
 0x1b2   : > { %v6299_v53 = vpop.eup %6298  ;;  %v1318_v55 = vadd.f32 1.0, %v6297_v51  ;;  %5919 = vmatprep.subr.bf16.mxu1 %v5918_v9  ;;  %v7006_v18 = vpack.c.bf16 %v1557_v17, %v1556_v16 }
 0x1b3   : > { %v6301_v56 = vpop.eup %6300  ;;  %v1321_v57 = vadd.f32 1.0, %v6299_v53  ;;  %5515 = vmatprep.mubr.msk.f32.mxu1 %vm1353_vm3, %v6952_v52 }
 0x1b4   : > { %6304 = vrcp.f32 %v1318_v55  ;;  %v1320_v58 = vadd.f32 1.0, %v6301_v56  ;;  %5516 = vmatmul.mubr.msk.f32.gmra.mrb[10].mxu1 %vm1353_vm3, %v6954_v54 }
 0x1b5   : > { %5921 = vmatpush3.bf16.msra.mxu1 %v5918_v9  ;;  %v1558_v9 = vld [vmem:[%s7574_s4 + $0x10] sm:$0xff] }
 0x1b6   : > { %6306 = vrcp.f32 %v1320_v58  ;;  %5923 = vmatprep.subr.bf16.mxu1 %v5922_v12 }
 0x1b7   : > { %6308 = vrcp.f32 %v1321_v57 }
 0x1b9   : > { %5925 = vmatpush3.bf16.msra.mxu1 %v5922_v12 }
 0x1ba   : > { %5927 = vmatprep.subr.bf16.mxu1 %v5926_v15 }
 0x1bb   : > { %v6303_v59 = vpop.eup %6302 }
 0x1bc   : > { %v6962_v63 = vmul.f32 %v6303_v59, %v1287_v27 }
 0x1bd   : > { %5929 = vmatpush3.bf16.msra.mxu1 %v5926_v15  ;;  %v1561_v15 = vld [vmem:[%s7574_s4 + $0x28] sm:$0xff] }
 0x1be   : > { %v6305_v60 = vpop.eup %6304  ;;  %5931 = vmatprep.subr.bf16.mxu1 %v7006_v18 }
 0x1bf   : > { %v6960_v61 = vmul.f32 %v6305_v60, %v1286_v28 }
 0x1c0   : > { %v6307_v62 = vpop.eup %6306 }
 0x1c1   : > { %v6309_v1 = vpop.eup %6308  ;;  %v6964_v2 = vmul.f32 %v6307_v62, %v1288_v40  ;;  %5518 = vmatprep.mubr.msk.f32.mxu1 %vm1353_vm3, %v6960_v61 }
 0x1c2   : > { %5519 = vmatmul.mubr.msk.f32.gmra.mrb[12].mxu1 %vm1353_vm3, %v6962_v63  ;;  %v6972_v3 = vmul.f32 %v6309_v1, %v1289_v39 }
 0x1c3   : > { %5521 = vmatprep.mubr.msk.f32.mxu1 %vm1353_vm3, %v6964_v2 }
 0x1c6   : > { %5522 = vmatmul.mubr.msk.f32.gmra.mrb[14].mxu1 %vm1353_vm3, %v6972_v3 }
 0x283   : > { %v5514_v20 = vpop.f32.mrb[8].mxu1 }
 0x284   : > { %v1450_v21 = vadd.f32 %v5514_v20, %v4922_v19  ;;  %v1444_v22 = vpop.f32.mrb[9].mxu1 }
 0x285   : > { %v1445_v23 = vadd.f32 %v4922_v19, %v1444_v22 }
 0x286   : > { %v4932_v24 = vmul.f32 -1.442695, %v1450_v21 }
 0x287   : > { %v4931_v25 = vmul.f32 -1.442695, %v1445_v23  ;;  %v5517_v26 = vpop.f32.mrb[10].mxu1 }
 0x288   : > { %6310 = vpow2.f32 %v4932_v24  ;;  %v1460_v27 = vadd.f32 %v5517_v26, %v4922_v19  ;;  %v1454_v28 = vpop.f32.mrb[11].mxu1 }
 0x289   : > { %6312 = vpow2.f32 %v4931_v25  ;;  %v1455_v29 = vadd.f32 %v4922_v19, %v1454_v28 }
 0x28a   : > { %v4934_v30 = vmul.f32 -1.442695, %v1460_v27 }
 0x28b   : > { %v4933_v31 = vmul.f32 -1.442695, %v1455_v29 }
 0x28c   : > { %6314 = vpow2.f32 %v4934_v30  ;;  %v1563_v30 = vld [vmem:[%s7574_s4 + $0x38] sm:$0xff] }
 0x28d   : > { %6316 = vpow2.f32 %v4933_v31 }
 0x292   : > { %v6311_v32 = vpop.eup %6310 }
 0x293   : > { %v6313_v33 = vpop.eup %6312  ;;  %v1508_v34 = vadd.f32 1.0, %v6311_v32 }
 0x294   : > { %v1507_v35 = vadd.f32 1.0, %v6313_v33 }
 0x295   : > { %6318 = vrcp.f32 %v1508_v34  ;;  %v5520_v36 = vpop.f32.mrb[12].mxu1 }
 0x296   : > { %v6315_v37 = vpop.eup %6314  ;;  %6320 = vrcp.f32 %v1507_v35  ;;  %v7012_v38 = vadd.f32 %v5520_v36, %v4922_v19  ;;  %v1464_v39 = vpop.f32.mrb[13].mxu1  ;;  %v5938_v35 = vpack.c.bf16 %v1561_v15, %v1560_v14 }
 0x297   : > { %v6317_v40 = vpop.eup %6316  ;;  %v1510_v41 = vadd.f32 1.0, %v6315_v37  ;;  %v7014_v42 = vadd.f32 %v4922_v19, %v1464_v39 }
 0x298   : > { %v1509_v43 = vadd.f32 1.0, %v6317_v40  ;;  %v4936_v44 = vmul.f32 -1.442695, %v7012_v38 }
 0x299   : > { %6322 = vrcp.f32 %v1510_v41  ;;  %v4935_v46 = vmul.f32 -1.442695, %v7014_v42  ;;  %v5523_v48 = vpop.f32.mrb[14].mxu1 }
 0x29a   : > { %6324 = vrcp.f32 %v1509_v43  ;;  %v7018_v49 = vadd.f32 %v5523_v48, %v4922_v19  ;;  %v1474_v50 = vpop.f32.mrb[15].mxu1  ;;  %v4964_v48 = vld [vmem:[%s7574_s4 + $0x88] sm:$0xff] }
 0x29b   : > { %6326 = vpow2.f32 %v4936_v44  ;;  %v7020_v51 = vadd.f32 %v4922_v19, %v1474_v50 }
 0x29c   : > { %6328 = vpow2.f32 %v4935_v46  ;;  %v4938_v53 = vmul.f32 -1.442695, %v7018_v49  ;;  %v4963_v46 = vld [vmem:[%s7574_s4 + $0x80] sm:$0xff] }
 0x29d   : > { %v4937_v55 = vmul.f32 -1.442695, %v7020_v51 }
 0x29e   : > { %6330 = vpow2.f32 %v4938_v53 }
 0x29f   : > { %v6319_v56 = vpop.eup %6318  ;;  %6332 = vpow2.f32 %v4937_v55 }
 0x2a0   : > { %v6321_v57 = vpop.eup %6320  ;;  %v1532_v58 = vmul.f32 %v6319_v56, %v1450_v21 }
 0x2a1   : > { %v1531_v59 = vmul.f32 %v6321_v57, %v1445_v23  ;;  %v5934_v23 = vpack.c.bf16 %v1559_v10, %v1558_v9 }
 0x2a2   : > { %1541 = vst.msk [vmem:[#allocation2 + $0xa] sm:$0xff] %vm1539_vm4, %v1532_v58 }
 0x2a3   : > { %v6323_v60 = vpop.eup %6322  ;;  %1540 = vst.msk [vmem:[#allocation2 + $0x2] sm:$0xff] %vm1539_vm4, %v1531_v59 }
 0x2a4   : > { %v6325_v62 = vpop.eup %6324  ;;  %v1534_v1 = vmul.f32 %v6323_v60, %v1460_v27 }
 0x2a5   : > { %v6327_v4 = vpop.eup %6326  ;;  %v1533_v5 = vmul.f32 %v6325_v62, %v1455_v29  ;;  %v1562_v29 = vld [vmem:[%s7574_s4 + $0x30] sm:$0xff] }
 0x2a6   : > { %v6329_v6 = vpop.eup %6328  ;;  %v1512_v7 = vadd.f32 1.0, %v6327_v4  ;;  %1543 = vst.msk [vmem:[#allocation2 + $0x22] sm:$0xff] %vm1539_vm4, %v1534_v1  ;;  %v5942_v41 = vpack.c.bf16 %v1563_v30, %v1562_v29  ;;  %v4981_v29 = vld [vmem:[%s7574_s4 + $0xd0] sm:$0xff]  ;;  %v4982_v30 = vld [vmem:[%s7574_s4 + $0xd8] sm:$0xff] }
 0x2a7   : > { %v1511_v8 = vadd.f32 1.0, %v6329_v6  ;;  %1542 = vst.msk [vmem:[#allocation2 + $0x1a] sm:$0xff] %vm1539_vm4, %v1533_v5 }
 0x2a8   : > { %v6331_v11 = vpop.eup %6330  ;;  %6334 = vrcp.f32 %v1512_v7 }
 0x2a9   : > { %v6333_v12 = vpop.eup %6332  ;;  %6336 = vrcp.f32 %v1511_v8  ;;  %v1514_v13 = vadd.f32 1.0, %v6331_v11  ;;  %v7040_v16 = vld [vmem:[#allocation2 + $0xa] sm:$0xff] }
 0x2aa   : > { %v7042_v17 = vld [vmem:[#allocation2 + $0xb] sm:$0xff]  ;;  %v1513_v20 = vadd.f32 1.0, %v6333_v12  ;;  %v1564_v21 = vld [vmem:[#allocation2 + $0x1] sm:$0xff] }
 0x2ab   : > { %v7044_v19 = vld [vmem:[#allocation2 + $0xc] sm:$0xff]  ;;  %v7046_v24 = vld [vmem:[#allocation2] sm:$0xff]  ;;  %6338 = vrcp.f32 %v1514_v13  ;;  %5540 = vmatprep.mubr.msk.f32.mxu1 %vm1539_vm4, %v1564_v21  ;;  %v4966_v13 = vld [vmem:[%s7574_s4 + $0x98] sm:$0xff] }
 0x2ac   : > { %v1565_v22 = vld [vmem:[#allocation2 + $0x9] sm:$0xff]  ;;  %6340 = vrcp.f32 %v1513_v20  ;;  %v4970_v21 = vld [vmem:[%s7574_s4 + $0xb8] sm:$0xff] }
 0x2ad   : > { %v7049_v25 = vld [vmem:[#allocation2 + $0x8] sm:$0xff]  ;;  %5541 = vmatmul.mubr.msk.f32.vlgmr.msra.gmra.mrb[16].mxu1 %vm1539_vm4, %v1565_v22  ;;  %v4965_v8 = vld [vmem:[%s7574_s4 + $0x90] sm:$0xff] }
 0x2ae   : > { %v7051_v26 = vld [vmem:[#allocation2 + $0x2] sm:$0xff]  ;;  %5933 = vmatpush3.bf16.msra.mxu1 %v7006_v18  ;;  %v1566_v18 = vld [vmem:[#allocation2 + $0x19] sm:$0xff] }
 0x2af   : > { %v7053_v27 = vld [vmem:[#allocation2 + $0x3] sm:$0xff]  ;;  %5935 = vmatprep.subr.bf16.mxu1 %v5934_v23  ;;  %v7075_v36 = vld [vmem:[#allocation2 + $0x18] sm:$0xff]  ;;  %5543 = vmatprep.mubr.msk.f32.mxu1 %vm1539_vm4, %v1566_v18  ;;  %v5966_v18 = vpack.c.bf16 %v4982_v30, %v4981_v29 }
 0x2b0   : > { %v7056_v28 = vld [vmem:[#allocation2 + $0x4] sm:$0xff]  ;;  %v7080_v39 = vld [vmem:[#allocation2 + $0x1a] sm:$0xff] }
 0x2b1   : > { %v7065_v31 = vld [vmem:[#allocation2 + $0x22] sm:$0xff]  ;;  %2854 = vst.msk [vmem:[#allocation2 + $0x2] sm:$0xff] %vm1353_vm3, %v6944_v45  ;;  %2855 = vst.msk [vmem:[#allocation2 + $0xa] sm:$0xff] %vm1353_vm3, %v6946_v47 }
 0x2b2   : > { %v7067_v32 = vld [vmem:[#allocation2 + $0x23] sm:$0xff]  ;;  %v7082_v40 = vld [vmem:[#allocation2 + $0x1b] sm:$0xff]  ;;  %5937 = vmatpush3.bf16.msra.mxu1 %v5934_v23  ;;  %v6335_v47 = vpop.eup %6334 }
 0x2b3   : > { %v7073_v33 = vld [vmem:[#allocation2 + $0x24] sm:$0xff]  ;;  %v7085_v45 = vld [vmem:[#allocation2 + $0x1c] sm:$0xff]  ;;  %5939 = vmatprep.subr.bf16.mxu1 %v5938_v35  ;;  %v6337_v43 = vpop.eup %6336  ;;  %v1536_v44 = vmul.f32 %v6335_v47, %v7012_v38  ;;  %v5946_v38 = vpack.c.bf16 %v4964_v48, %v4963_v46 }
 0x2b4   : > { %v1567_v34 = vld [vmem:[#allocation2 + $0x21] sm:$0xff]  ;;  %v1535_v50 = vmul.f32 %v6337_v43, %v7014_v42  ;;  %v4998_v43 = vld [vmem:[%s7574_s4 + $0x118] sm:$0xff] }
 0x2b5   : > { %v7078_v37 = vld [vmem:[#allocation2 + $0x20] sm:$0xff]  ;;  %5544 = vmatmul.mubr.msk.f32.gmra.mrb[18].mxu1 %vm1539_vm4, %v1567_v34  ;;  %1545 = vst.msk [vmem:[#allocation2 + $0x3a] sm:$0xff] %vm1539_vm4, %v1536_v44  ;;  %v4968_v20 = vld [vmem:[%s7574_s4 + $0xa8] sm:$0xff] }
 0x2b6   : > { %2856 = vst.msk [vmem:[#allocation2 + $0x1a] sm:$0xff] %vm1353_vm3, %v6952_v52  ;;  %2857 = vst.msk [vmem:[#allocation2 + $0x22] sm:$0xff] %vm1353_vm3, %v6954_v54  ;;  %v6339_v52 = vpop.eup %6338  ;;  %5941 = vmatpush3.bf16.msra.mxu1 %v5938_v35  ;;  %v4979_v23 = vld [vmem:[%s7574_s4 + $0xc0] sm:$0xff]  ;;  %v4984_v35 = vld [vmem:[%s7574_s4 + $0xe8] sm:$0xff] }
 0x2b7   : > { %v6341_v54 = vpop.eup %6340  ;;  %v1538_v53 = vmul.f32 %v6339_v52, %v7018_v49  ;;  %1544 = vst.msk [vmem:[#allocation2 + $0x32] sm:$0xff] %vm1539_vm4, %v1535_v50  ;;  %5943 = vmatprep.subr.bf16.mxu1 %v5942_v41  ;;  %v4983_v34 = vld [vmem:[%s7574_s4 + $0xe0] sm:$0xff]  ;;  %v4996_v47 = vld [vmem:[%s7574_s4 + $0x108] sm:$0xff]  ;;  %v5002_v52 = vld [vmem:[%s7574_s4 + $0x138] sm:$0xff] }
 0x2b8   : > { %v1537_v55 = vmul.f32 %v6341_v54, %v7020_v51  ;;  %v4999_v46 = vld [vmem:[%s7574_s4 + $0x120] sm:$0xff]  ;;  %v5000_v48 = vld [vmem:[%s7574_s4 + $0x128] sm:$0xff] }
 0x2b9   : > { %1547 = vst.msk [vmem:[#allocation2 + $0x52] sm:$0xff] %vm1539_vm4, %v1538_v53  ;;  %v5986_v50 = vpack.c.bf16 %v5000_v48, %v4999_v46  ;;  %v2415_v53 = vld [vmem:[%s7575_s5 + $0x20] sm:$0xff] }
 0x2ba   : > { %1546 = vst.msk [vmem:[#allocation2 + $0x4a] sm:$0xff] %vm1539_vm4, %v1537_v55  ;;  %5945 = vmatpush3.bf16.msra.mxu1 %v5942_v41  ;;  %v4997_v41 = vld [vmem:[%s7574_s4 + $0x110] sm:$0xff] }
 0x2bb   : > { %5947 = vmatprep.subr.bf16.mxu1 %v5946_v38  ;;  %v5982_v44 = vpack.c.bf16 %v4998_v43, %v4997_v41 }
 0x2bc   : > { %v7105_v42 = vld [vmem:[#allocation2 + $0x3a] sm:$0xff] }
 0x2bd   : > { %v7107_v56 = vld [vmem:[#allocation2 + $0x3b] sm:$0xff] }
 0x2be   : > { %v7109_v57 = vld [vmem:[#allocation2 + $0x3c] sm:$0xff]  ;;  %v1568_v58 = vld [vmem:[#allocation2 + $0x31] sm:$0xff] }
 0x2bf   : > { %v1569_v49 = vld [vmem:[#allocation2 + $0x39] sm:$0xff]  ;;  %v1552_v59 = vld [vmem:[#allocation2 + $0x30] sm:$0xff]  ;;  %5546 = vmatprep.mubr.msk.f32.mxu1 %vm1539_vm4, %v1568_v58  ;;  %v5011_v58 = vld [vmem:[%s7571_s1 + $0x2] ss:$0 sm:$0xff] }
 0x2c0   : > { %v1553_v60 = vld [vmem:[#allocation2 + $0x38] sm:$0xff]  ;;  %5547 = vmatmul.mubr.msk.f32.gmra.mrb[20].mxu1 %vm1539_vm4, %v1569_v49 }
 0x2c1   : > { %v7112_v62 = vld [vmem:[#allocation2 + $0x32] sm:$0xff]  ;;  %v1570_v6 = vld [vmem:[#allocation2 + $0x49] sm:$0xff] }
 0x2c2   : > { %v7114_v51 = vld [vmem:[#allocation2 + $0x33] sm:$0xff]  ;;  %v1554_v9 = vld [vmem:[#allocation2 + $0x48] sm:$0xff]  ;;  %5549 = vmatprep.mubr.msk.f32.mxu1 %vm1539_vm4, %v1570_v6 }
 0x2c3   : > { %v7117_v1 = vld [vmem:[#allocation2 + $0x52] sm:$0xff]  ;;  %v1845_v11 = vld [vmem:[#allocation2 + $0x4a] sm:$0xff] }
 0x2c4   : > { %v7119_v4 = vld [vmem:[#allocation2 + $0x53] sm:$0xff]  ;;  %v7131_v12 = vld [vmem:[#allocation2 + $0x4b] sm:$0xff] }
 0x2c5   : > { %v7121_v5 = vld [vmem:[#allocation2 + $0x34] sm:$0xff]  ;;  %v7136_v14 = vld [vmem:[#allocation2 + $0x4c] sm:$0xff] }
 0x2c6   : > { %v1571_v7 = vld [vmem:[#allocation2 + $0x51] sm:$0xff]  ;;  %2858 = vst.msk [vmem:[#allocation2 + $0x32] sm:$0xff] %vm1353_vm3, %v6960_v61  ;;  %2859 = vst.msk [vmem:[#allocation2 + $0x3a] sm:$0xff] %vm1353_vm3, %v6962_v63  ;;  %v5950_v61 = vpack.c.bf16 %v4966_v13, %v4965_v8  ;;  %v4967_v63 = vld [vmem:[%s7574_s4 + $0xa0] sm:$0xff] }
 0x2c7   : > { %v1555_v10 = vld [vmem:[#allocation2 + $0x50] sm:$0xff]  ;;  %5550 = vmatmul.mubr.msk.f32.gmra.mrb[22].mxu1 %vm1539_vm4, %v1571_v7 }
 0x2c8   : > { %v7138_v15 = vld [vmem:[#allocation2 + $0x54] sm:$0xff]  ;;  %2860 = vst.msk [vmem:[#allocation2 + $0x4a] sm:$0xff] %vm1353_vm3, %v6964_v2  ;;  %5568 = vmatprep.mubr.msk.f32.mxu1 %vm1539_vm4, %v7046_v24  ;;  %v5954_v2 = vpack.c.bf16 %v4968_v20, %v4967_v63  ;;  %v4980_v24 = vld [vmem:[%s7574_s4 + $0xc8] sm:$0xff] }
 0x2c9   : > { %2861 = vst.msk [vmem:[#allocation2 + $0x52] sm:$0xff] %vm1353_vm3, %v6972_v3  ;;  %v4969_v3 = vld [vmem:[%s7574_s4 + $0xb0] sm:$0xff] }
 0x2ca   : > { %v5958_v22 = vpack.c.bf16 %v4970_v21, %v4969_v3 }
 0x2cb   : > { %5569 = vmatmul.mubr.msk.f32.vlgmr.msra.gmra.mrb[16].mxu1 %vm1539_vm4, %v7049_v25  ;;  %v5962_v25 = vpack.c.bf16 %v4980_v24, %v4979_v23 }
 0x2cc   : > { %5949 = vmatpush3.bf16.msra.mxu1 %v5946_v38  ;;  %5571 = vmatprep.mubr.msk.f32.mxu1 %vm1539_vm4, %v7075_v36  ;;  %v5970_v36 = vpack.c.bf16 %v4984_v35, %v4983_v34  ;;  %v2416_v38 = vld [vmem:[%s7575_s5 + $0x28] sm:$0xff] }
 0x2cd   : > { %5951 = vmatprep.subr.bf16.mxu1 %v5950_v61  ;;  %v6001_v55 = vpack.c.bf16 %v2416_v38, %v2415_v53 }
 0x2cf   : > { %5572 = vmatmul.mubr.msk.f32.gmra.mrb[18].mxu1 %vm1539_vm4, %v7078_v37  ;;  %v4986_v37 = vld [vmem:[%s7574_s4 + $0xf8] sm:$0xff] }
 0x2d0   : > { %5953 = vmatpush3.bf16.msra.mxu1 %v5950_v61  ;;  %5574 = vmatprep.mubr.msk.f32.mxu1 %vm1539_vm4, %v1552_v59 }
 0x2d1   : > { %5955 = vmatprep.subr.bf16.mxu1 %v5954_v2 }
 0x2d3   : > { %5575 = vmatmul.mubr.msk.f32.gmra.mrb[20].mxu1 %vm1539_vm4, %v1553_v60 }
 0x2d4   : > { %5957 = vmatpush3.bf16.msra.mxu1 %v5954_v2  ;;  %5577 = vmatprep.mubr.msk.f32.mxu1 %vm1539_vm4, %v1554_v9 }
 0x2d5   : > { %5959 = vmatprep.subr.bf16.mxu1 %v5958_v22 }
 0x2d7   : > { %5578 = vmatmul.mubr.msk.f32.gmra.mrb[22].mxu1 %vm1539_vm4, %v1555_v10 }
 0x2d8   : > { %5961 = vmatpush3.bf16.msra.mxu1 %v5958_v22  ;;  %5596 = vmatprep.mubr.msk.f32.mxu1 %vm1539_vm4, %v7051_v26  ;;  %v4985_v26 = vld [vmem:[%s7574_s4 + $0xf0] sm:$0xff] }
 0x2d9   : > { %5963 = vmatprep.subr.bf16.mxu1 %v5962_v25 }
 0x2db   : > { %5597 = vmatmul.mubr.msk.f32.vlgmr.msra.gmra.mrb[16].mxu1 %vm1539_vm4, %v7040_v16  ;;  %v5974_v16 = vpack.c.bf16 %v4986_v37, %v4985_v26 }
 0x2dc   : > { %5965 = vmatpush3.bf16.msra.mxu1 %v5962_v25  ;;  %5599 = vmatprep.mubr.msk.f32.mxu1 %vm1539_vm4, %v7080_v39  ;;  %v4995_v39 = vld [vmem:[%s7574_s4 + $0x100] sm:$0xff] }
 0x2dd   : > { %5967 = vmatprep.subr.bf16.mxu1 %v5966_v18 }
 0x2df   : > { %5600 = vmatmul.mubr.msk.f32.gmra.mrb[18].mxu1 %vm1539_vm4, %v7065_v31  ;;  %v5978_v31 = vpack.c.bf16 %v4996_v47, %v4995_v39 }
 0x2e0   : > { %5969 = vmatpush3.bf16.msra.mxu1 %v5966_v18  ;;  %5602 = vmatprep.mubr.msk.f32.mxu1 %vm1539_vm4, %v7112_v62 }
 0x2e1   : > { %5971 = vmatprep.subr.bf16.mxu1 %v5970_v36 }
 0x2e3   : > { %5603 = vmatmul.mubr.msk.f32.gmra.mrb[20].mxu1 %vm1539_vm4, %v7105_v42  ;;  %v2417_v42 = vld [vmem:[%s7575_s5 + $0x30] sm:$0xff] }
 0x2e4   : > { %5973 = vmatpush3.bf16.msra.mxu1 %v5970_v36  ;;  %5605 = vmatprep.mubr.msk.f32.mxu1 %vm1539_vm4, %v1845_v11 }
 0x2e5   : > { %5975 = vmatprep.subr.bf16.mxu1 %v5974_v16 }
 0x2e7   : > { %5606 = vmatmul.mubr.msk.f32.gmra.mrb[22].mxu1 %vm1539_vm4, %v7117_v1 }
 0x2e8   : > { %5977 = vmatpush3.bf16.msra.mxu1 %v5974_v16  ;;  %5624 = vmatprep.mubr.msk.f32.mxu1 %vm1539_vm4, %v7053_v27  ;;  %v5001_v27 = vld [vmem:[%s7574_s4 + $0x130] sm:$0xff] }
 0x2e9   : > { %5979 = vmatprep.subr.bf16.mxu1 %v5978_v31 }
 0x2eb   : > { %5625 = vmatmul.mubr.msk.f32.vlgmr.msra.gmra.mrb[16].mxu1 %vm1539_vm4, %v7042_v17  ;;  %v5990_v17 = vpack.c.bf16 %v5002_v52, %v5001_v27 }
 0x2ec   : > { %5981 = vmatpush3.bf16.msra.mxu1 %v5978_v31  ;;  %5627 = vmatprep.mubr.msk.f32.mxu1 %vm1539_vm4, %v7082_v40  ;;  %v2413_v40 = vld [vmem:[%s7575_s5 + $0x10] sm:$0xff] }
 0x2ed   : > { %5983 = vmatprep.subr.bf16.mxu1 %v5982_v44 }
 0x2ef   : > { %5628 = vmatmul.mubr.msk.f32.gmra.mrb[18].mxu1 %vm1539_vm4, %v7067_v32 }
 0x2f0   : > { %5985 = vmatpush3.bf16.msra.mxu1 %v5982_v44  ;;  %5630 = vmatprep.mubr.msk.f32.mxu1 %vm1539_vm4, %v7114_v51 }
 0x2f1   : > { %5987 = vmatprep.subr.bf16.mxu1 %v5986_v50 }
 0x2f3   : > { %5631 = vmatmul.mubr.msk.f32.gmra.mrb[20].mxu1 %vm1539_vm4, %v7107_v56  ;;  %v2418_v56 = vld [vmem:[%s7575_s5 + $0x38] sm:$0xff] }
 0x2f4   : > { %5989 = vmatpush3.bf16.msra.mxu1 %v5986_v50  ;;  %5633 = vmatprep.mubr.msk.f32.mxu1 %vm1539_vm4, %v7131_v12 }
 0x2f5   : > { %5991 = vmatprep.subr.bf16.mxu1 %v5990_v17 }
 0x2f7   : > { %5634 = vmatmul.mubr.msk.f32.gmra.mrb[22].mxu1 %vm1539_vm4, %v7119_v4 }
 0x2f8   : > { %5993 = vmatpush3.bf16.msra.mxu1 %v5990_v17  ;;  %5652 = vmatprep.mubr.msk.f32.mxu1 %vm1539_vm4, %v7056_v28  ;;  %v2412_v28 = vld [vmem:[%s7575_s5 + $0x8] sm:$0xff] }
 0x2fb   : > { %5653 = vmatmul.mubr.msk.f32.vlgmr.msra.gmra.mrb[16].mxu1 %vm1539_vm4, %v7044_v19  ;;  %v2411_v19 = vld [vmem:[%s7575_s5] sm:$0xff] }
 0x2fc   : > { %5655 = vmatprep.mubr.msk.f32.mxu1 %vm1539_vm4, %v7085_v45  ;;  %v5995_v32 = vpack.c.bf16 %v2412_v28, %v2411_v19  ;;  %v2414_v45 = vld [vmem:[%s7575_s5 + $0x18] sm:$0xff] }
 0x2fd   : > { %v5998_v54 = vpack.c.bf16 %v2414_v45, %v2413_v40 }
 0x2ff   : > { %5656 = vmatmul.mubr.msk.f32.gmra.mrb[18].mxu1 %vm1539_vm4, %v7073_v33  ;;  %v6618_v33 = vmov 0.0|0.0  }
 0x300   : > { %5658 = vmatprep.mubr.msk.f32.mxu1 %vm1539_vm4, %v7121_v5  ;;  %5994 = vmatprep.subr.bf16.mxu0 %v6618_v33 }
 0x301   : > { %5996 = vmatpush3.bf16.msra.mxu0 %v5995_v32 }
 0x302   : > { %5997 = vmatprep.subr.bf16.mxu0 %v6618_v33 }
 0x303   : > { %5659 = vmatmul.mubr.msk.f32.gmra.mrb[20].mxu1 %vm1539_vm4, %v7109_v57  ;;  %v6004_v57 = vpack.c.bf16 %v2418_v56, %v2417_v42 }
 0x304   : > { %5661 = vmatprep.mubr.msk.f32.mxu1 %vm1539_vm4, %v7136_v14 }
 0x305   : > { %5999 = vmatpush3.bf16.msra.mxu0 %v5998_v54 }
 0x306   : > { %6000 = vmatprep.subr.bf16.mxu0 %v6618_v33 }
 0x307   : > { %5662 = vmatmul.mubr.msk.f32.gmra.mrb[22].mxu1 %vm1539_vm4, %v7138_v15 }
 0x309   : > { %6002 = vmatpush3.bf16.msra.mxu0 %v6001_v55 }
 0x30a   : > { %6003 = vmatprep.subr.bf16.mxu0 %v6618_v33 }
 0x30d   : > { %6005 = vmatpush3.bf16.msra.mxu0 %v6004_v57 }
 0x30e   : > { %5683 = vmatprep.subr.mxu0 %v6617_v0 }
 0x3ce   : > { %v5654_v49 = vpop.f32.mrb[16].mxu1 }
 0x3cf   : > { %v2307_v59 = vadd.f32 %v5654_v49, %v5011_v58  ;;  %v2254_v60 = vpop.f32.mrb[17].mxu1 }
 0x3d0   : > { %v2306_v62 = vadd.f32 %v5011_v58, %v2254_v60 }
 0x3d1   : > { %v5013_v51 = vmul.f32 -1.442695, %v2307_v59 }
 0x3d2   : > { %v5012_v1 = vmul.f32 -1.442695, %v2306_v62  ;;  %v5657_v4 = vpop.f32.mrb[18].mxu1 }
 0x3d3   : > { %6342 = vpow2.f32 %v5013_v51  ;;  %v2309_v5 = vadd.f32 %v5657_v4, %v5011_v58  ;;  %v2264_v6 = vpop.f32.mrb[19].mxu1 }
 0x3d4   : > { %6344 = vpow2.f32 %v5012_v1  ;;  %v2308_v7 = vadd.f32 %v5011_v58, %v2264_v6 }
 0x3d5   : > { %v5015_v8 = vmul.f32 -1.442695, %v2309_v5 }
 0x3d6   : > { %v5014_v9 = vmul.f32 -1.442695, %v2308_v7  ;;  %v5660_v10 = vpop.f32.mrb[20].mxu1 }
 0x3d7   : > { %6346 = vpow2.f32 %v5015_v8  ;;  %v2311_v11 = vadd.f32 %v5660_v10, %v5011_v58  ;;  %v2274_v12 = vpop.f32.mrb[21].mxu1 }
 0x3d8   : > { %6348 = vpow2.f32 %v5014_v9  ;;  %v2310_v13 = vadd.f32 %v5011_v58, %v2274_v12 }
 0x3d9   : > { %v5017_v14 = vmul.f32 -1.442695, %v2311_v11 }
 0x3da   : > { %v5016_v15 = vmul.f32 -1.442695, %v2310_v13  ;;  %v5663_v61 = vpop.f32.mrb[22].mxu1 }
 0x3db   : > { %6350 = vpow2.f32 %v5017_v14  ;;  %v2313_v63 = vadd.f32 %v5663_v61, %v5011_v58  ;;  %v2284_v20 = vpop.f32.mrb[23].mxu1 }
 0x3dc   : > { %6352 = vpow2.f32 %v5016_v15  ;;  %v2312_v2 = vadd.f32 %v5011_v58, %v2284_v20 }
 0x3dd   : > { %v6343_v3 = vpop.eup %6342  ;;  %v5019_v21 = vmul.f32 -1.442695, %v2313_v63 }
 0x3de   : > { %v6345_v22 = vpop.eup %6344  ;;  %v2339_v23 = vadd.f32 1.0, %v6343_v3  ;;  %v5018_v24 = vmul.f32 -1.442695, %v2312_v2 }
 0x3df   : > { %v2338_v25 = vadd.f32 1.0, %v6345_v22  ;;  %6354 = vpow2.f32 %v5019_v21 }
 0x3e0   : > { %6356 = vrcp.f32 %v2339_v23 }
 0x3e1   : > { %v6347_v29 = vpop.eup %6346  ;;  %6358 = vrcp.f32 %v2338_v25 }
 0x3e2   : > { %v6349_v30 = vpop.eup %6348  ;;  %v2341_v18 = vadd.f32 1.0, %v6347_v29  ;;  %6360 = vpow2.f32 %v5018_v24 }
 0x3e3   : > { %v2340_v34 = vadd.f32 1.0, %v6349_v30 }
 0x3e4   : > { %6362 = vrcp.f32 %v2341_v18 }
 0x3e5   : > { %v6351_v35 = vpop.eup %6350  ;;  %6364 = vrcp.f32 %v2340_v34 }
 0x3e6   : > { %v6353_v36 = vpop.eup %6352  ;;  %v2343_v26 = vadd.f32 1.0, %v6351_v35 }
 0x3e7   : > { %v2342_v37 = vadd.f32 1.0, %v6353_v36 }
 0x3e8   : > { %6366 = vrcp.f32 %v2343_v26 }
 0x3e9   : > { %v6355_v16 = vpop.eup %6354  ;;  %6368 = vrcp.f32 %v2342_v37 }
 0x3ea   : > { %v6357_v39 = vpop.eup %6356  ;;  %v2345_v47 = vadd.f32 1.0, %v6355_v16 }
 0x3eb   : > { %v6359_v31 = vpop.eup %6358  ;;  %v7298_v41 = vmul.f32 %v6357_v39, %v2307_v59  ;;  %v2881_v39 = vld [vmem:[#allocation7 + $0x10] sm:$0xff] }
 0x3ec   : > { %v6361_v43 = vpop.eup %6360  ;;  %v7300_v44 = vmul.f32 %v6359_v31, %v2306_v62  ;;  %6370 = vrcp.f32 %v2345_v47  ;;  %v2882_v47 = vld [vmem:[#allocation7 + $0x18] sm:$0xff]  ;;  %v2513_v31 = vld [vmem:[%s7576_s6] sm:$0xf] }
 0x3ed   : > { %v2371_v46 = vsel %vm1539_vm4, %v7298_v41, 0.0  ;;  %v2344_v48 = vadd.f32 1.0, %v6361_v43  ;;  %v6022_v43 = vpack.c.bf16 %v2882_v47, %v2881_v39  ;;  %v3294_v39 = vld [vmem:[#allocation2 + $0x3b] sm:$0xff]  ;;  %v3295_v47 = vld [vmem:[#allocation2 + $0x4b] sm:$0xff] }
 0x3ee   : > { %v6363_v50 = vpop.eup %6362  ;;  %v2370_v27 = vsel %vm1539_vm4, %v7300_v44, 0.0 }
 0x3ef   : > { %v6365_v52 = vpop.eup %6364  ;;  %v2372_v17 = vadd.f32 %v2371_v46, %v2370_v27  ;;  %v7306_v19 = vmul.f32 %v6363_v50, %v2309_v5  ;;  %6372 = vrcp.f32 %v2344_v48  ;;  %v5020_v46 = vld [vmem:[%s7571_s1 + $0x3] ss:$0 sm:$0xff] }
 0x3f0   : > { %v7308_v28 = vmul.f32 %v6365_v52, %v2308_v7 }
 0x3f1   : > { %v2373_v32 = vrot.slane %v2372_v17, 4  ;;  %v2380_v40 = vsel %vm1539_vm4, %v7306_v19, 0.0 }
 0x3f2   : > { %v6367_v45 = vpop.eup %6366  ;;  %v2379_v54 = vsel %vm1539_vm4, %v7308_v28, 0.0 }
 0x3f3   : > { %v6369_v53 = vpop.eup %6368  ;;  %v2381_v38 = vadd.f32 %v2380_v40, %v2379_v54  ;;  %v7314_v55 = vmul.f32 %v6367_v45, %v2311_v11  ;;  %v2374_v56 = vadd.f32 %v2373_v32, %v2372_v17  ;;  %v2870_v40 = vld [vmem:[#allocation7] sm:$0xff]  ;;  %v2871_v45 = vld [vmem:[#allocation7 + $0x8] sm:$0xff] }
 0x3f4   : > { %v7316_v42 = vmul.f32 %v6369_v53, %v2310_v13 }
 0x3f5   : > { %v2382_v57 = vrot.slane %v2381_v38, 4  ;;  %v2389_v58 = vsel %vm1539_vm4, %v7314_v55, 0.0  ;;  %v2375_v4 = vrot.slane %v2374_v56, 2 }
 0x3f6   : > { %v6371_v49 = vpop.eup %6370  ;;  %v2388_v59 = vsel %vm1539_vm4, %v7316_v42, 0.0 }
 0x3f7   : > { %v2383_v60 = vadd.f32 %v2382_v57, %v2381_v38  ;;  %v2390_v62 = vadd.f32 %v2389_v58, %v2388_v59  ;;  %v7322_v51 = vmul.f32 %v6371_v49, %v2313_v63  ;;  %v2376_v12 = vadd.f32 %v2375_v4, %v2374_v56  ;;  %v3150_v56 = vld [vmem:[#allocation7 + $0x20] sm:$0xff]  ;;  %v3151_v57 = vld [vmem:[#allocation7 + $0x28] sm:$0xff]  ;;  %v2873_v59 = vld [vmem:[#allocation2 + $0x9] sm:$0xff] }
 0x3f8   : > { %v6026_v38 = vpack.c.bf16 %v2871_v45, %v2870_v40  ;;  %v2872_v58 = vld [vmem:[#allocation2 + $0x1] sm:$0xff]  ;;  %v6030_v49 = vpack.c.bf16 %v3151_v57, %v3150_v56  ;;  %v2877_v4 = vld [vmem:[#allocation2 + $0x39] sm:$0xff] }
 0x3f9   : > { %v6373_v1 = vpop.eup %6372  ;;  %v2384_v5 = vrot.slane %v2383_v60, 2  ;;  %v2391_v6 = vrot.slane %v2390_v62, 4  ;;  %v2398_v7 = vsel %vm1539_vm4, %v7322_v51, 0.0  ;;  %v2377_v20 = vrot.slane %v2376_v12, 1  ;;  %v2656_v40 = vld [vmem:[%s7577_s7] sm:$0xff]  ;;  %v2657_v45 = vld [vmem:[%s7577_s7 + $0x8] sm:$0xff] }
 0x3fa   : > { %v7326_v8 = vmul.f32 %v6373_v1, %v2312_v2  ;;  %v2876_v1 = vld [vmem:[#allocation2 + $0x31] sm:$0xff]  ;;  %v2660_v57 = vld [vmem:[%s7577_s7 + $0x20] sm:$0xff] }
 0x3fb   : > { %v2385_v9 = vadd.f32 %v2384_v5, %v2383_v60  ;;  %v2392_v10 = vadd.f32 %v2391_v6, %v2390_v62  ;;  %v2378_v25 = vadd.f32 %v2377_v20, %v2376_v12  ;;  %v2874_v60 = vld [vmem:[#allocation2 + $0x19] sm:$0xff]  ;;  %v2875_v62 = vld [vmem:[#allocation2 + $0x21] sm:$0xff]  ;;  %v2878_v5 = vld [vmem:[#allocation2 + $0x49] sm:$0xff] }
 0x3fc   : > { %v2397_v11 = vsel %vm1539_vm4, %v7326_v8, 0.0  ;;  %v2879_v6 = vld [vmem:[#allocation2 + $0x51] sm:$0xff]  ;;  %v2863_v12 = vld [vmem:[#allocation2 + $0x8] sm:$0xff] }
 0x3fd   : > { %v2393_v13 = vrot.slane %v2392_v10, 2  ;;  %v2399_v14 = vadd.f32 %v2398_v7, %v2397_v11  ;;  %v2386_v15 = vrot.slane %v2385_v9, 1  ;;  %v2407_v34 = vmul.f32 0.0625, %v2378_v25  ;;  %v3298_v7 = vld [vmem:[#allocation7 + $0x30] sm:$0xff]  ;;  %v2869_v20 = vld [vmem:[#allocation2 + $0x50] sm:$0xff]  ;;  %v3143_v25 = vld [vmem:[#allocation2 + $0x1a] sm:$0xff] }
 0x3ff   : > { %v2394_v61 = vadd.f32 %v2393_v13, %v2392_v10  ;;  %v2400_v63 = vrot.slane %v2399_v14, 4  ;;  %v2387_v22 = vadd.f32 %v2386_v15, %v2385_v9  ;;  %v3299_v9 = vld [vmem:[#allocation7 + $0x38] sm:$0xff]  ;;  %v2862_v10 = vld [vmem:[#allocation2] sm:$0xff]  ;;  %v2864_v13 = vld [vmem:[#allocation2 + $0x18] sm:$0xff] }
 0x400   : > { %v6034_v11 = vpack.c.bf16 %v3299_v9, %v3298_v7  ;;  %v2866_v15 = vld [vmem:[#allocation2 + $0x30] sm:$0xff] }
 0x401   : > { %v2395_v3 = vrot.slane %v2394_v61, 1  ;;  %v2401_v21 = vadd.f32 %v2400_v63, %v2399_v14  ;;  %v2408_v29 = vmul.f32 0.0625, %v2387_v22  ;;  %v2865_v14 = vld [vmem:[#allocation2 + $0x20] sm:$0xff]  ;;  %v2868_v63 = vld [vmem:[#allocation2 + $0x48] sm:$0xff] }
 0x402   : > { %v3141_v22 = vld [vmem:[#allocation2 + $0x2] sm:$0xff] }
 0x403   : > { %v2402_v23 = vrot.slane %v2401_v21, 2  ;;  %v2396_v24 = vadd.f32 %v2395_v3, %v2394_v61  ;;  %v2429_v26 = vsel %vm2428_vm6, %v2408_v29, %v2407_v34  ;;  %v2867_v61 = vld [vmem:[#allocation2 + $0x38] sm:$0xff] }
 0x404   : > { %v3446_v3 = vld [vmem:[#allocation7 + $0x40] sm:$0xff] }
 0x405   : > { %v2403_v2 = vadd.f32 %v2402_v23, %v2401_v21  ;;  %v2409_v18 = vmul.f32 0.0625, %v2396_v24  ;;  %v3447_v21 = vld [vmem:[#allocation7 + $0x48] sm:$0xff]  ;;  %v3142_v24 = vld [vmem:[#allocation2 + $0xa] sm:$0xff]  ;;  %v3145_v29 = vld [vmem:[#allocation2 + $0x32] sm:$0xff] }
 0x406   : > { %v6038_v23 = vpack.c.bf16 %v3447_v21, %v3446_v3  ;;  %v3148_v34 = vld [vmem:[#allocation2 + $0x52] sm:$0xff] }
 0x407   : > { %v2404_v30 = vrot.slane %v2403_v2, 1  ;;  %v2431_v37 = vsel %vm2430_vm7, %v2409_v18, %v2429_v26  ;;  %v3147_v18 = vld [vmem:[#allocation2 + $0x4a] sm:$0xff]  ;;  %v3291_v26 = vld [vmem:[#allocation2 + $0x1b] sm:$0xff] }
 0x409   : > { %v2405_v35 = vadd.f32 %v2404_v30, %v2403_v2  ;;  %v3144_v2 = vld [vmem:[#allocation2 + $0x22] sm:$0xff]  ;;  %v3146_v30 = vld [vmem:[#allocation2 + $0x3a] sm:$0xff] }
 0x40b   : > { %v2410_v36 = vmul.f32 0.0625, %v2405_v35  ;;  %v3289_v35 = vld [vmem:[#allocation2 + $0x3] sm:$0xff] }
 0x40d   : > { %v2433_v16 = vsel %vm2432_vm8, %v2410_v36, %v2431_v37  ;;  %v3290_v36 = vld [vmem:[#allocation2 + $0xb] sm:$0xff]  ;;  %v3292_v37 = vld [vmem:[#allocation2 + $0x23] sm:$0xff] }
 0x40e   : > { %5681 = vmatmul.mubr.msk.f32.vlgmr.msra.gmra.mrb[8].mxu0 %vm1539_vm4, %v2433_v16  ;;  %v3293_v16 = vld [vmem:[#allocation2 + $0x33] sm:$0xff] }
 0x40f   : > { %5685 = vmatprep.mubr.msk.f32.mxu0 %vm6619_vm5, %v6617_v0  ;;  %5684 = vmatpush3.msk.msra.mxu0 %vm2523_vm9, %v2513_v31  ;;  %v3296_v31 = vld [vmem:[#allocation2 + $0x53] sm:$0xff] }
 0x410   : > { %6023 = vmatprep.subr.bf16.mxu0 %v6022_v43 }
 0x4e1   : > { %v2502_v48 = vpop.f32.mrb[8].mxu0 }
 0x4e2   : > { %v2503_v50 = vadd.f32 %v5020_v46, %v2502_v48  ;;  %v5682_v27 = vpop.f32.mrb[9].mxu0  ;;  %v3438_v46 = vld [vmem:[#allocation2 + $0xc] sm:$0xff]  ;;  %v3439_v48 = vld [vmem:[#allocation2 + $0x1c] sm:$0xff] }
 0x4e3   : > { %v3441_v27 = vld [vmem:[#allocation2 + $0x34] sm:$0xff] }
 0x4e4   : > { %v5022_v52 = vmul.f32 -1.442695, %v2503_v50 }
 0x4e6   : > { %6374 = vpow2.f32 %v5022_v52  ;;  %v3442_v52 = vld [vmem:[#allocation2 + $0x3c] sm:$0xff] }
 0x4f0   : > { %v6375_v17 = vpop.eup %6374 }
 0x4f1   : > { %v2509_v32 = vadd.f32 1.0, %v6375_v17  ;;  %v3443_v17 = vld [vmem:[#allocation2 + $0x4c] sm:$0xff] }
 0x4f3   : > { %6376 = vrcp.f32 %v2509_v32  ;;  %v3444_v32 = vld [vmem:[#allocation2 + $0x54] sm:$0xff] }
 0x4fd   : > { %v6377_v54 = vpop.eup %6376 }
 0x4fe   : > { %v2512_v53 = vmul.f32 %v6377_v54, %v2503_v50  ;;  %v3440_v50 = vld [vmem:[#allocation2 + $0x24] sm:$0xff]  ;;  %v2658_v54 = vld [vmem:[%s7577_s7 + $0x10] sm:$0xff] }
 0x500   : > { %5686 = vmatmul.mubr.msk.f32.vlgmr.msra.gmra.mrb[10].mxu0 %vm2519_vm10, %v2512_v53  ;;  %v6006_v53 = vpack.c.bf16 %v2657_v45, %v2656_v40 }
 0x501   : > { %6025 = vmatpush3.bf16.msra.mxu0 %v6022_v43  ;;  %5720 = vmatprep.mubr.msk.f32.mxu0 %vm1353_vm3, %v2872_v58  ;;  %v3437_v43 = vld [vmem:[#allocation2 + $0x4] sm:$0xff] }
 0x502   : > { %6027 = vmatprep.subr.bf16.mxu0 %v6026_v38  ;;  %v2661_v58 = vld [vmem:[%s7577_s7 + $0x28] sm:$0xff]  ;;  %6007 = vmatprep.subr.bf16.mxu1 %v6006_v53 }
 0x503   : > { %6009 = vmatpush3.bf16.msra.mxu1 %v6006_v53 }
 0x504   : > { %5721 = vmatmul.mubr.msk.f32.vlgmr.msra.gmra.mrb[12].mxu0 %vm1353_vm3, %v2873_v59  ;;  %v2662_v59 = vld [vmem:[%s7577_s7 + $0x30] sm:$0xff] }
 0x505   : > { %5723 = vmatprep.mubr.msk.f32.mxu0 %vm1353_vm3, %v2874_v60  ;;  %6029 = vmatpush3.bf16.msra.mxu0 %v6026_v38  ;;  %v2659_v38 = vld [vmem:[%s7577_s7 + $0x18] sm:$0xff] }
 0x506   : > { %6031 = vmatprep.subr.bf16.mxu0 %v6030_v49  ;;  %v6010_v56 = vpack.c.bf16 %v2659_v38, %v2658_v54  ;;  %v2663_v60 = vld [vmem:[%s7577_s7 + $0x38] sm:$0xff] }
 0x508   : > { %5724 = vmatmul.mubr.msk.f32.gmra.mrb[14].mxu0 %vm1353_vm3, %v2875_v62  ;;  %6011 = vmatprep.subr.bf16.mxu1 %v6010_v56  ;;  %v6018_v62 = vpack.c.bf16 %v2663_v60, %v2662_v59 }
 0x509   : > { %5726 = vmatprep.mubr.msk.f32.mxu0 %vm1353_vm3, %v2876_v1  ;;  %6013 = vmatpush3.bf16.msra.mxu1 %v6010_v56  ;;  %v5023_v1 = vld [vmem:[%s7571_s1 + $0x4] ss:$0 sm:$0xff] }
 0x50c   : > { %5727 = vmatmul.mubr.msk.f32.gmra.mrb[16].mxu0 %vm1353_vm3, %v2877_v4 }
 0x50d   : > { %5729 = vmatprep.mubr.msk.f32.mxu0 %vm1353_vm3, %v2878_v5 }
 0x510   : > { %5730 = vmatmul.mubr.msk.f32.gmra.mrb[18].mxu0 %vm1353_vm3, %v2879_v6 }
 0x511   : > { %5736 = vmatprep.mubr.msk.f32.mxu0 %vm1353_vm3, %v2862_v10 }
 0x514   : > { %5737 = vmatmul.mubr.msk.f32.vlgmr.msra.gmra.mrb[12].mxu0 %vm1353_vm3, %v2863_v12 }
 0x515   : > { %5739 = vmatprep.mubr.msk.f32.mxu0 %vm1353_vm3, %v2864_v13  ;;  %6033 = vmatpush3.bf16.msra.mxu0 %v6030_v49  ;;  %v6014_v49 = vpack.c.bf16 %v2661_v58, %v2660_v57  ;;  %v2607_v13 = vlaneseq }
 0x516   : > { %6035 = vmatprep.subr.bf16.mxu0 %v6034_v11 }
 0x517   : > { %6015 = vmatprep.subr.bf16.mxu1 %v6014_v49 }
 0x518   : > { %5740 = vmatmul.mubr.msk.f32.gmra.mrb[14].mxu0 %vm1353_vm3, %v2865_v14  ;;  %6017 = vmatpush3.bf16.msra.mxu1 %v6014_v49 }
 0x519   : > { %5742 = vmatprep.mubr.msk.f32.mxu0 %vm1353_vm3, %v2866_v15  ;;  %6019 = vmatprep.subr.bf16.mxu1 %v6018_v62  ;;  %v2608_v15 = vshrl.u32 %v2607_v13, 7 }
 0x51b   : > { %v2630_v3 = vsub.s32 0, %v2608_v15 }
 0x51c   : > { %5743 = vmatmul.mubr.msk.f32.gmra.mrb[16].mxu0 %vm1353_vm3, %v2867_v61  ;;  %6021 = vmatpush3.bf16.msra.mxu1 %v6018_v62 }
 0x51d   : > { %5745 = vmatprep.mubr.msk.f32.mxu0 %vm1353_vm3, %v2868_v63 }
 0x520   : > { %5746 = vmatmul.mubr.msk.f32.gmra.mrb[18].mxu0 %vm1353_vm3, %v2869_v20 }
 0x521   : > { %5752 = vmatprep.mubr.msk.f32.mxu0 %vm1353_vm3, %v3141_v22 }
 0x524   : > { %5753 = vmatmul.mubr.msk.f32.vlgmr.msra.gmra.mrb[12].mxu0 %vm1353_vm3, %v3142_v24 }
 0x525   : > { %5755 = vmatprep.mubr.msk.f32.mxu0 %vm1353_vm3, %v3143_v25  ;;  %6037 = vmatpush3.bf16.msra.mxu0 %v6034_v11  ;;  %v6620_v11 = vmov 1966171168  }
 0x526   : > { %6039 = vmatprep.subr.bf16.mxu0 %v6038_v23  ;;  %v2605_v12 = vunpack.c.l.s4 %v6620_v11 }
 0x528   : > { %5756 = vmatmul.mubr.msk.f32.gmra.mrb[14].mxu0 %vm1353_vm3, %v3144_v2  ;;  %v2606_v14 = vunpack.c.0.s8 %v2605_v12 }
 0x529   : > { %5758 = vmatprep.mubr.msk.f32.mxu0 %vm1353_vm3, %v3145_v29 }
 0x52a   : > { %v2609_v61 = vsub.s32 %v2606_v14, %v2608_v15 }
 0x52c   : > { %5759 = vmatmul.mubr.msk.f32.gmra.mrb[16].mxu0 %vm1353_vm3, %v3146_v30 }
 0x52d   : > { %5761 = vmatprep.mubr.msk.f32.mxu0 %vm1353_vm3, %v3147_v18 }
 0x530   : > { %5762 = vmatmul.mubr.msk.f32.gmra.mrb[18].mxu0 %vm1353_vm3, %v3148_v34 }
 0x531   : > { %5768 = vmatprep.mubr.msk.f32.mxu0 %vm1353_vm3, %v3289_v35 }
 0x534   : > { %5769 = vmatmul.mubr.msk.f32.vlgmr.msra.gmra.mrb[12].mxu0 %vm1353_vm3, %v3290_v36 }
 0x535   : > { %5771 = vmatprep.mubr.msk.f32.mxu0 %vm1353_vm3, %v3291_v26  ;;  %6041 = vmatpush3.bf16.msra.mxu0 %v6038_v23 }
 0x538   : > { %5772 = vmatmul.mubr.msk.f32.gmra.mrb[14].mxu0 %vm1353_vm3, %v3292_v37 }
 0x539   : > { %5774 = vmatprep.mubr.msk.f32.mxu0 %vm1353_vm3, %v3293_v16 }
 0x53c   : > { %5775 = vmatmul.mubr.msk.f32.gmra.mrb[16].mxu0 %vm1353_vm3, %v3294_v39  ;;  %v5027_v39 = vld [vmem:[%s7571_s1 + $0x5] ss:$0 sm:$0xff] }
 0x53d   : > { %5777 = vmatprep.mubr.msk.f32.mxu0 %vm1353_vm3, %v3295_v47 }
 0x540   : > { %5778 = vmatmul.mubr.msk.f32.gmra.mrb[18].mxu0 %vm1353_vm3, %v3296_v31 }
 0x541   : > { %5784 = vmatprep.mubr.msk.f32.mxu0 %vm1353_vm3, %v3437_v43 }
 0x544   : > { %5785 = vmatmul.mubr.msk.f32.vlgmr.msra.gmra.mrb[12].mxu0 %vm1353_vm3, %v3438_v46 }
 0x545   : > { %5787 = vmatprep.mubr.msk.f32.mxu0 %vm1353_vm3, %v3439_v48 }
 0x548   : > { %5788 = vmatmul.mubr.msk.f32.gmra.mrb[14].mxu0 %vm1353_vm3, %v3440_v50 }
 0x549   : > { %5790 = vmatprep.mubr.msk.f32.mxu0 %vm1353_vm3, %v3441_v27 }
 0x54c   : > { %5791 = vmatmul.mubr.msk.f32.gmra.mrb[16].mxu0 %vm1353_vm3, %v3442_v52 }
 0x54d   : > { %5793 = vmatprep.mubr.msk.f32.mxu0 %vm1353_vm3, %v3443_v17 }
 0x550   : > { %5794 = vmatmul.mubr.msk.f32.gmra.mrb[18].mxu0 %vm1353_vm3, %v3444_v32 }
 0x5d3   : > { %v2593_v4 = vpop.f32.mrb[10].mxu0 }
 0x5d4   : > { %v2594_v5 = vadd.f32 %v5023_v1, %v2593_v4  ;;  %v5687_v6 = vpop.f32.mrb[11].mxu0 }
 0x5d6   : > { %v5026_v7 = vmul.f32 -1.442695, %v2594_v5 }
 0x5d8   : > { %6378 = vpow2.f32 %v5026_v7 }
 0x5e2   : > { %v6379_v9 = vpop.eup %6378 }
 0x5e3   : > { %v2600_v10 = vadd.f32 1.0, %v6379_v9 }
 0x5e5   : > { %6380 = vrcp.f32 %v2600_v10 }
 0x5ef   : > { %v6381_v63 = vpop.eup %6380 }
 0x5f0   : > { %v2610_v20 = vrot.slane %v6381_v63, %v2609_v61 }
 0x5f2   : > { %v2618_v21 = vrot.slane %v2610_v20, %v2609_v61  ;;  %v2611_v22 = vcombine.high %v2610_v20, %v2610_v20 }
 0x5f4   : > { %v2631_v23 = vrot.slane %v2618_v21, %v2630_v3  ;;  %v2625_v24 = vrot.slane %v2611_v22, %v2609_v61  ;;  %v2626_v25 = vcombine.high %v2618_v21, %v2618_v21 }
 0x5f6   : > { %v2648_v2 = vmul.f32 %v2631_v23, %v7300_v44  ;;  %v2649_v29 = vmul.f32 %v2631_v23, %v7298_v41  ;;  %v2635_v30 = vrot.slane %v2625_v24, %v2630_v3  ;;  %v2639_v34 = vrot.slane %v2626_v25, %v2630_v3 }
 0x5f7   : > { %v2627_v35 = vcombine.high %v2625_v24, %v2625_v24 }
 0x5f8   : > { %5704 = vmatprep.mubr.msk.f32.mxu1 %vm1539_vm4, %v2648_v2  ;;  %v2650_v18 = vmul.f32 %v2635_v30, %v7308_v28  ;;  %v2651_v36 = vmul.f32 %v2635_v30, %v7306_v19  ;;  %v2652_v26 = vmul.f32 %v2639_v34, %v7316_v42  ;;  %v2653_v41 = vmul.f32 %v2639_v34, %v7314_v55  ;;  %v5084_v19 = vld [vmem:[%s7579_s9 + $0x10] sm:$0xff]  ;;  %v5085_v42 = vld [vmem:[%s7579_s9 + $0x18] sm:$0xff]  ;;  %v3601_v55 = vld [vmem:[%s7579_s9] sm:$0xff] }
 0x5f9   : > { %5705 = vmatmul.mubr.msk.f32.vlgmr.msra.gmra.mrb[24].mxu1 %vm1539_vm4, %v2649_v29  ;;  %v2643_v37 = vrot.slane %v2627_v35, %v2630_v3  ;;  %v6042_v16 = vpack.c.bf16 %v5085_v42, %v5084_v19 }
 0x5fa   : > { %5707 = vmatprep.mubr.msk.f32.mxu1 %vm1539_vm4, %v2650_v18 }
 0x5fb   : > { %v2654_v44 = vmul.f32 %v2643_v37, %v7326_v8  ;;  %v2655_v28 = vmul.f32 %v2643_v37, %v7322_v51  ;;  %6043 = vmatprep.subr.bf16.mxu0 %v6042_v16  ;;  %v3602_v51 = vld [vmem:[%s7579_s9 + $0x8] sm:$0xff] }
 0x5fc   : > { %6045 = vmatpush3.bf16.msra.mxu0 %v6042_v16  ;;  %v7437_v8 = vpack.c.bf16 %v3602_v51, %v3601_v55 }
 0x5fd   : > { %5708 = vmatmul.mubr.msk.f32.gmra.mrb[26].mxu1 %vm1539_vm4, %v2651_v36  ;;  %v5102_v36 = vld [vmem:[%s7579_s9 + $0x20] sm:$0xff] }
 0x5fe   : > { %5710 = vmatprep.mubr.msk.f32.mxu1 %vm1539_vm4, %v2652_v26  ;;  %6047 = vmatprep.subr.bf16.mxu0 %v7437_v8  ;;  %v5103_v26 = vld [vmem:[%s7579_s9 + $0x28] sm:$0xff] }
 0x5ff   : > { %v6050_v42 = vpack.c.bf16 %v5103_v26, %v5102_v36 }
 0x601   : > { %5711 = vmatmul.mubr.msk.f32.gmra.mrb[28].mxu1 %vm1539_vm4, %v2653_v41 }
 0x602   : > { %5713 = vmatprep.mubr.msk.f32.mxu1 %vm1539_vm4, %v2654_v44 }
 0x605   : > { %5714 = vmatmul.mubr.msk.f32.gmra.mrb[30].mxu1 %vm1539_vm4, %v2655_v28 }
 0x6cc   : > { %v5706_v47 = vpop.f32.mrb[24].mxu1 }
 0x6cd   : > { %v2765_v31 = vadd.f32 %v5706_v47, %v5027_v39  ;;  %v2759_v43 = vpop.f32.mrb[25].mxu1 }
 0x6ce   : > { %v2760_v46 = vadd.f32 %v5027_v39, %v2759_v43 }
 0x6cf   : > { %v5037_v48 = vmul.f32 -1.442695, %v2765_v31 }
 0x6d0   : > { %v5036_v50 = vmul.f32 -1.442695, %v2760_v46  ;;  %v5709_v27 = vpop.f32.mrb[26].mxu1 }
 0x6d1   : > { %6382 = vpow2.f32 %v5037_v48  ;;  %v2775_v52 = vadd.f32 %v5709_v27, %v5027_v39  ;;  %v2769_v17 = vpop.f32.mrb[27].mxu1  ;;  %v5113_v27 = vld [vmem:[%s7579_s9 + $0x38] sm:$0xff] }
 0x6d2   : > { %6384 = vpow2.f32 %v5036_v50  ;;  %v2770_v32 = vadd.f32 %v5027_v39, %v2769_v17  ;;  %v5112_v50 = vld [vmem:[%s7579_s9 + $0x30] sm:$0xff] }
 0x6d3   : > { %v5039_v40 = vmul.f32 -1.442695, %v2775_v52  ;;  %v6054_v17 = vpack.c.bf16 %v5113_v27, %v5112_v50 }
 0x6d4   : > { %v5038_v45 = vmul.f32 -1.442695, %v2770_v32  ;;  %v5712_v54 = vpop.f32.mrb[28].mxu1 }
 0x6d5   : > { %6386 = vpow2.f32 %v5039_v40  ;;  %v2785_v53 = vadd.f32 %v5712_v54, %v5027_v39  ;;  %v2779_v38 = vpop.f32.mrb[29].mxu1 }
 0x6d6   : > { %6388 = vpow2.f32 %v5038_v45  ;;  %v2780_v56 = vadd.f32 %v5027_v39, %v2779_v38 }
 0x6d7   : > { %v5041_v57 = vmul.f32 -1.442695, %v2785_v53 }
 0x6d8   : > { %v5040_v58 = vmul.f32 -1.442695, %v2780_v56  ;;  %v5715_v49 = vpop.f32.mrb[30].mxu1 }
 0x6d9   : > { %6390 = vpow2.f32 %v5041_v57  ;;  %v2795_v59 = vadd.f32 %v5715_v49, %v5027_v39  ;;  %v2789_v60 = vpop.f32.mrb[31].mxu1  ;;  %v5122_v57 = vld [vmem:[%s7579_s9 + $0x40] sm:$0xff] }
 0x6da   : > { %6392 = vpow2.f32 %v5040_v58  ;;  %v2790_v62 = vadd.f32 %v5027_v39, %v2789_v60  ;;  %v5123_v58 = vld [vmem:[%s7579_s9 + $0x48] sm:$0xff] }
 0x6db   : > { %v6383_v1 = vpop.eup %6382  ;;  %v5043_v4 = vmul.f32 -1.442695, %v2795_v59 }
 0x6dc   : > { %v6385_v5 = vpop.eup %6384  ;;  %v2823_v6 = vadd.f32 1.0, %v6383_v1  ;;  %v5042_v7 = vmul.f32 -1.442695, %v2790_v62 }
 0x6dd   : > { %v2822_v9 = vadd.f32 1.0, %v6385_v5  ;;  %6394 = vpow2.f32 %v5043_v4 }
 0x6de   : > { %6396 = vrcp.f32 %v2823_v6 }
 0x6df   : > { %v6387_v10 = vpop.eup %6386  ;;  %6398 = vrcp.f32 %v2822_v9 }
 0x6e0   : > { %v6389_v11 = vpop.eup %6388  ;;  %v2825_v12 = vadd.f32 1.0, %v6387_v10  ;;  %6400 = vpow2.f32 %v5042_v7 }
 0x6e1   : > { %v2824_v13 = vadd.f32 1.0, %v6389_v11 }
 0x6e2   : > { %6402 = vrcp.f32 %v2825_v12 }
 0x6e3   : > { %v6391_v14 = vpop.eup %6390  ;;  %6404 = vrcp.f32 %v2824_v13 }
 0x6e4   : > { %v6393_v15 = vpop.eup %6392  ;;  %v2827_v61 = vadd.f32 1.0, %v6391_v14 }
 0x6e5   : > { %v2826_v63 = vadd.f32 1.0, %v6393_v15 }
 0x6e6   : > { %6406 = vrcp.f32 %v2827_v61 }
 0x6e7   : > { %v6395_v20 = vpop.eup %6394  ;;  %6408 = vrcp.f32 %v2826_v63 }
 0x6e8   : > { %v6397_v3 = vpop.eup %6396  ;;  %v2829_v21 = vadd.f32 1.0, %v6395_v20 }
 0x6e9   : > { %v6399_v22 = vpop.eup %6398  ;;  %v2847_v23 = vmul.f32 %v6397_v3, %v2765_v31 }
 0x6ea   : > { %v6401_v24 = vpop.eup %6400  ;;  %v2846_v25 = vmul.f32 %v6399_v22, %v2760_v46  ;;  %6410 = vrcp.f32 %v2829_v21 }
 0x6eb   : > { %3586 = vst.msk [vmem:[#allocation2 + $0xa] sm:$0xff] %vm1353_vm3, %v2847_v23  ;;  %v2828_v2 = vadd.f32 1.0, %v6401_v24 }
 0x6ec   : > { %v6403_v29 = vpop.eup %6402  ;;  %3585 = vst.msk [vmem:[#allocation2 + $0x2] sm:$0xff] %vm1353_vm3, %v2846_v25 }
 0x6ed   : > { %v6405_v30 = vpop.eup %6404  ;;  %v2849_v18 = vmul.f32 %v6403_v29, %v2775_v52  ;;  %6412 = vrcp.f32 %v2828_v2  ;;  %v4393_v2 = vld [vmem:[#allocation8] sm:$0xff]  ;;  %v4394_v29 = vld [vmem:[#allocation8 + $0x8] sm:$0xff] }
 0x6ee   : > { %v2848_v34 = vmul.f32 %v6405_v30, %v2770_v32  ;;  %v6062_v30 = vpack.c.bf16 %v4394_v29, %v4393_v2  ;;  %v4572_v29 = vld [vmem:[%s7601_s23 + $0x10] sm:$0xff] }
 0x6ef   : > { %3588 = vst.msk [vmem:[#allocation2 + $0x22] sm:$0xff] %vm1353_vm3, %v2849_v18  ;;  %v5132_v18 = vld [vmem:[%s7571_s1 + $0x6] ss:$0 sm:$0xff] }
 0x6f0   : > { %v6407_v35 = vpop.eup %6406  ;;  %3587 = vst.msk [vmem:[#allocation2 + $0x1a] sm:$0xff] %vm1353_vm3, %v2848_v34  ;;  %6063 = vmatprep.subr.bf16.mxu1 %v6062_v30 }
 0x6f1   : > { %v6409_v37 = vpop.eup %6408  ;;  %v2851_v41 = vmul.f32 %v6407_v35, %v2785_v53  ;;  %6065 = vmatpush3.bf16.msra.mxu1 %v6062_v30  ;;  %v4573_v30 = vld [vmem:[%s7601_s23 + $0x18] sm:$0xff] }
 0x6f2   : > { %v2850_v44 = vmul.f32 %v6409_v37, %v2780_v56  ;;  %v3873_v60 = vld [vmem:[#allocation2 + $0xa] sm:$0xff]  ;;  %6066 = vmatprep.subr.bf16.mxu1 %v6618_v33 }
 0x6f3   : > { %3590 = vst.msk [vmem:[#allocation2 + $0x3a] sm:$0xff] %vm1353_vm3, %v2851_v41  ;;  %v3603_v28 = vld [vmem:[#allocation2 + $0x1] sm:$0xff]  ;;  %v3604_v19 = vld [vmem:[#allocation2 + $0x9] sm:$0xff] }
 0x6f4   : > { %v6411_v16 = vpop.eup %6410  ;;  %3589 = vst.msk [vmem:[#allocation2 + $0x32] sm:$0xff] %vm1353_vm3, %v2850_v44  ;;  %5800 = vmatprep.mubr.msk.f32.mxu0 %vm1353_vm3, %v3603_v28  ;;  %v3593_v52 = vld [vmem:[#allocation2] sm:$0xff]  ;;  %v3594_v32 = vld [vmem:[#allocation2 + $0x8] sm:$0xff] }
 0x6f5   : > { %v2853_v55 = vmul.f32 %v6411_v16, %v2795_v59  ;;  %5801 = vmatmul.mubr.msk.f32.vlgmr.msra.gmra.mrb[12].mxu0 %vm1353_vm3, %v3604_v19  ;;  %v3872_v49 = vld [vmem:[#allocation2 + $0x2] sm:$0xff]  ;;  %v6058_v59 = vpack.c.bf16 %v5123_v58, %v5122_v57  ;;  %v4021_v10 = vld [vmem:[#allocation2 + $0xb] sm:$0xff] }
 0x6f6   : > { %6049 = vmatpush3.bf16.msra.mxu0 %v7437_v8  ;;  %v3875_v1 = vld [vmem:[#allocation2 + $0x22] sm:$0xff]  ;;  %v4169_v20 = vld [vmem:[#allocation2 + $0xc] sm:$0xff] }
 0x6f7   : > { %v6413_v51 = vpop.eup %6412  ;;  %3592 = vst.msk [vmem:[#allocation2 + $0x52] sm:$0xff] %vm1353_vm3, %v2853_v55  ;;  %v3605_v39 = vld [vmem:[#allocation2 + $0x19] sm:$0xff]  ;;  %v3606_v47 = vld [vmem:[#allocation2 + $0x21] sm:$0xff]  ;;  %6051 = vmatprep.subr.bf16.mxu0 %v6050_v42 }
 0x6f8   : > { %v2852_v31 = vmul.f32 %v6413_v51, %v2790_v62  ;;  %5803 = vmatprep.mubr.msk.f32.mxu0 %vm1353_vm3, %v3605_v39  ;;  %v3595_v40 = vld [vmem:[#allocation2 + $0x18] sm:$0xff]  ;;  %v3596_v45 = vld [vmem:[#allocation2 + $0x20] sm:$0xff] }
 0x6f9   : > { %5804 = vmatmul.mubr.msk.f32.gmra.mrb[14].mxu0 %vm1353_vm3, %v3606_v47  ;;  %v3874_v62 = vld [vmem:[#allocation2 + $0x1a] sm:$0xff]  ;;  %v4020_v9 = vld [vmem:[#allocation2 + $0x3] sm:$0xff] }
 0x6fa   : > { %3591 = vst.msk [vmem:[#allocation2 + $0x4a] sm:$0xff] %vm1353_vm3, %v2852_v31  ;;  %v3877_v5 = vld [vmem:[#allocation2 + $0x3a] sm:$0xff]  ;;  %v4023_v12 = vld [vmem:[#allocation2 + $0x23] sm:$0xff] }
 0x6fb   : > { %v3607_v43 = vld [vmem:[#allocation2 + $0x31] sm:$0xff]  ;;  %v3608_v46 = vld [vmem:[#allocation2 + $0x39] sm:$0xff]  ;;  %v4168_v63 = vld [vmem:[#allocation2 + $0x4] sm:$0xff] }
 0x6fc   : > { %5806 = vmatprep.mubr.msk.f32.mxu0 %vm1353_vm3, %v3607_v43  ;;  %v3597_v54 = vld [vmem:[#allocation2 + $0x30] sm:$0xff]  ;;  %v3598_v53 = vld [vmem:[#allocation2 + $0x38] sm:$0xff]  ;;  %v4171_v21 = vld [vmem:[#allocation2 + $0x24] sm:$0xff] }
 0x6fd   : > { %5807 = vmatmul.mubr.msk.f32.gmra.mrb[16].mxu0 %vm1353_vm3, %v3608_v46  ;;  %v3876_v4 = vld [vmem:[#allocation2 + $0x32] sm:$0xff]  ;;  %v4022_v11 = vld [vmem:[#allocation2 + $0x1b] sm:$0xff] }
 0x6fe   : > { %v3879_v7 = vld [vmem:[#allocation2 + $0x52] sm:$0xff]  ;;  %v4025_v14 = vld [vmem:[#allocation2 + $0x3b] sm:$0xff] }
 0x6ff   : > { %v4024_v13 = vld [vmem:[#allocation2 + $0x33] sm:$0xff]  ;;  %v4170_v3 = vld [vmem:[#allocation2 + $0x1c] sm:$0xff] }
 0x700   : > { %v4027_v61 = vld [vmem:[#allocation2 + $0x53] sm:$0xff]  ;;  %v4173_v23 = vld [vmem:[#allocation2 + $0x3c] sm:$0xff] }
 0x701   : > { %v3609_v8 = vld [vmem:[#allocation2 + $0x49] sm:$0xff]  ;;  %v3610_v48 = vld [vmem:[#allocation2 + $0x51] sm:$0xff] }
 0x702   : > { %5809 = vmatprep.mubr.msk.f32.mxu0 %vm1353_vm3, %v3609_v8  ;;  %v3599_v38 = vld [vmem:[#allocation2 + $0x48] sm:$0xff]  ;;  %v3600_v56 = vld [vmem:[#allocation2 + $0x50] sm:$0xff] }
 0x703   : > { %5810 = vmatmul.mubr.msk.f32.gmra.mrb[18].mxu0 %vm1353_vm3, %v3610_v48  ;;  %v3878_v6 = vld [vmem:[#allocation2 + $0x4a] sm:$0xff]  ;;  %v4172_v22 = vld [vmem:[#allocation2 + $0x34] sm:$0xff] }
 0x704   : > { %5816 = vmatprep.mubr.msk.f32.mxu0 %vm1353_vm3, %v3593_v52  ;;  %v4026_v15 = vld [vmem:[#allocation2 + $0x4b] sm:$0xff]  ;;  %v4175_v25 = vld [vmem:[#allocation2 + $0x54] sm:$0xff] }
 0x705   : > { %v4174_v24 = vld [vmem:[#allocation2 + $0x4c] sm:$0xff] }
 0x707   : > { %5817 = vmatmul.mubr.msk.f32.vlgmr.msra.gmra.mrb[12].mxu0 %vm1353_vm3, %v3594_v32 }
 0x708   : > { %6053 = vmatpush3.bf16.msra.mxu0 %v6050_v42  ;;  %5819 = vmatprep.mubr.msk.f32.mxu0 %vm1353_vm3, %v3595_v40 }
 0x709   : > { %6055 = vmatprep.subr.bf16.mxu0 %v6054_v17 }
 0x70b   : > { %5820 = vmatmul.mubr.msk.f32.gmra.mrb[14].mxu0 %vm1353_vm3, %v3596_v45 }
 0x70c   : > { %5822 = vmatprep.mubr.msk.f32.mxu0 %vm1353_vm3, %v3597_v54 }
 0x70f   : > { %5823 = vmatmul.mubr.msk.f32.gmra.mrb[16].mxu0 %vm1353_vm3, %v3598_v53 }
 0x710   : > { %5825 = vmatprep.mubr.msk.f32.mxu0 %vm1353_vm3, %v3599_v38 }
 0x713   : > { %5826 = vmatmul.mubr.msk.f32.gmra.mrb[18].mxu0 %vm1353_vm3, %v3600_v56 }
 0x714   : > { %5832 = vmatprep.mubr.msk.f32.mxu0 %vm1353_vm3, %v3872_v49 }
 0x717   : > { %5833 = vmatmul.mubr.msk.f32.vlgmr.msra.gmra.mrb[12].mxu0 %vm1353_vm3, %v3873_v60 }
 0x718   : > { %6057 = vmatpush3.bf16.msra.mxu0 %v6054_v17  ;;  %5835 = vmatprep.mubr.msk.f32.mxu0 %vm1353_vm3, %v3874_v62 }
 0x719   : > { %6059 = vmatprep.subr.bf16.mxu0 %v6058_v59 }
 0x71b   : > { %5836 = vmatmul.mubr.msk.f32.gmra.mrb[14].mxu0 %vm1353_vm3, %v3875_v1 }
 0x71c   : > { %5838 = vmatprep.mubr.msk.f32.mxu0 %vm1353_vm3, %v3876_v4 }
 0x71f   : > { %5839 = vmatmul.mubr.msk.f32.gmra.mrb[16].mxu0 %vm1353_vm3, %v3877_v5 }
 0x720   : > { %5841 = vmatprep.mubr.msk.f32.mxu0 %vm1353_vm3, %v3878_v6 }
 0x723   : > { %5842 = vmatmul.mubr.msk.f32.gmra.mrb[18].mxu0 %vm1353_vm3, %v3879_v7 }
 0x724   : > { %5848 = vmatprep.mubr.msk.f32.mxu0 %vm1353_vm3, %v4020_v9 }
 0x727   : > { %5849 = vmatmul.mubr.msk.f32.vlgmr.msra.gmra.mrb[12].mxu0 %vm1353_vm3, %v4021_v10 }
 0x728   : > { %6061 = vmatpush3.bf16.msra.mxu0 %v6058_v59  ;;  %5851 = vmatprep.mubr.msk.f32.mxu0 %vm1353_vm3, %v4022_v11 }
 0x72b   : > { %5852 = vmatmul.mubr.msk.f32.gmra.mrb[14].mxu0 %vm1353_vm3, %v4023_v12 }
 0x72c   : > { %5854 = vmatprep.mubr.msk.f32.mxu0 %vm1353_vm3, %v4024_v13 }
 0x72f   : > { %5855 = vmatmul.mubr.msk.f32.gmra.mrb[16].mxu0 %vm1353_vm3, %v4025_v14 }
 0x730   : > { %5857 = vmatprep.mubr.msk.f32.mxu0 %vm1353_vm3, %v4026_v15 }
 0x733   : > { %5858 = vmatmul.mubr.msk.f32.gmra.mrb[18].mxu0 %vm1353_vm3, %v4027_v61 }
 0x734   : > { %5864 = vmatprep.mubr.msk.f32.mxu0 %vm1353_vm3, %v4168_v63 }
 0x737   : > { %5865 = vmatmul.mubr.msk.f32.vlgmr.msra.gmra.mrb[12].mxu0 %vm1353_vm3, %v4169_v20 }
 0x738   : > { %5867 = vmatprep.mubr.msk.f32.mxu0 %vm1353_vm3, %v4170_v3 }
 0x73b   : > { %5868 = vmatmul.mubr.msk.f32.gmra.mrb[14].mxu0 %vm1353_vm3, %v4171_v21 }
 0x73c   : > { %5870 = vmatprep.mubr.msk.f32.mxu0 %vm1353_vm3, %v4172_v22 }
 0x73f   : > { %5871 = vmatmul.mubr.msk.f32.gmra.mrb[16].mxu0 %vm1353_vm3, %v4173_v23 }
 0x740   : > { %5873 = vmatprep.mubr.msk.f32.mxu0 %vm1353_vm3, %v4174_v24  ;;  %v4570_v24 = vld [vmem:[%s7601_s23] sm:$0xff] }
 0x743   : > { %5874 = vmatmul.mubr.msk.f32.gmra.mrb[18].mxu0 %vm1353_vm3, %v4175_v25  ;;  %v4571_v25 = vld [vmem:[%s7601_s23 + $0x8] sm:$0xff] }
 0x744   : > { %v6067_v2 = vpack.c.bf16 %v4571_v25, %v4570_v24 }
 0x80a   : > { %v5866_v34 = vpop.f32.mrb[12].mxu0 }
 0x80b   : > { %v4330_v35 = vadd.f32 %v5866_v34, %v5132_v18  ;;  %v4269_v36 = vpop.f32.mrb[13].mxu0  ;;  %v5141_v34 = vld [vmem:[%s7571_s1 + $0x7] ss:$0 sm:$0xff] }
 0x80c   : > { %v4329_v26 = vadd.f32 %v5132_v18, %v4269_v36 }
 0x80d   : > { %v5134_v37 = vmul.f32 -1.442695, %v4330_v35 }
 0x80e   : > { %v5133_v41 = vmul.f32 -1.442695, %v4329_v26  ;;  %v5869_v44 = vpop.f32.mrb[14].mxu0 }
 0x80f   : > { %6414 = vpow2.f32 %v5134_v37  ;;  %v4332_v28 = vadd.f32 %v5869_v44, %v5132_v18  ;;  %v4279_v19 = vpop.f32.mrb[15].mxu0 }
 0x810   : > { %6416 = vpow2.f32 %v5133_v41  ;;  %v4331_v42 = vadd.f32 %v5132_v18, %v4279_v19 }
 0x811   : > { %v5136_v16 = vmul.f32 -1.442695, %v4332_v28 }
 0x812   : > { %v5135_v55 = vmul.f32 -1.442695, %v4331_v42  ;;  %v5872_v51 = vpop.f32.mrb[16].mxu0 }
 0x813   : > { %6418 = vpow2.f32 %v5136_v16  ;;  %v4334_v39 = vadd.f32 %v5872_v51, %v5132_v18  ;;  %v4289_v47 = vpop.f32.mrb[17].mxu0 }
 0x814   : > { %6420 = vpow2.f32 %v5135_v55  ;;  %v4333_v31 = vadd.f32 %v5132_v18, %v4289_v47 }
 0x815   : > { %v5138_v43 = vmul.f32 -1.442695, %v4334_v39 }
 0x816   : > { %v5137_v46 = vmul.f32 -1.442695, %v4333_v31  ;;  %v5875_v8 = vpop.f32.mrb[18].mxu0 }
 0x817   : > { %6422 = vpow2.f32 %v5138_v43  ;;  %v4336_v48 = vadd.f32 %v5875_v8, %v5132_v18  ;;  %v4299_v50 = vpop.f32.mrb[19].mxu0 }
 0x818   : > { %6424 = vpow2.f32 %v5137_v46  ;;  %v4335_v27 = vadd.f32 %v5132_v18, %v4299_v50  ;;  %v6070_v18 = vpack.c.bf16 %v4573_v30, %v4572_v29  ;;  %v4665_v29 = vld [vmem:[#allocation10] sm:$0xff]  ;;  %v4666_v30 = vld [vmem:[#allocation10 + $0x8] sm:$0xff] }
 0x819   : > { %v6415_v52 = vpop.eup %6414  ;;  %v5140_v17 = vmul.f32 -1.442695, %v4336_v48 }
 0x81a   : > { %v6417_v32 = vpop.eup %6416  ;;  %v4362_v40 = vadd.f32 1.0, %v6415_v52  ;;  %v5139_v45 = vmul.f32 -1.442695, %v4335_v27 }
 0x81b   : > { %v4361_v54 = vadd.f32 1.0, %v6417_v32  ;;  %6426 = vpow2.f32 %v5140_v17 }
 0x81c   : > { %6428 = vrcp.f32 %v4362_v40 }
 0x81d   : > { %v6419_v53 = vpop.eup %6418  ;;  %6430 = vrcp.f32 %v4361_v54 }
 0x81e   : > { %v6421_v38 = vpop.eup %6420  ;;  %v4364_v56 = vadd.f32 1.0, %v6419_v53  ;;  %6432 = vpow2.f32 %v5139_v45 }
 0x81f   : > { %v4363_v57 = vadd.f32 1.0, %v6421_v38 }
 0x820   : > { %6434 = vrcp.f32 %v4364_v56 }
 0x821   : > { %v6423_v58 = vpop.eup %6422  ;;  %6436 = vrcp.f32 %v4363_v57 }
 0x822   : > { %v6425_v49 = vpop.eup %6424  ;;  %v4366_v59 = vadd.f32 1.0, %v6423_v58 }
 0x823   : > { %v4365_v60 = vadd.f32 1.0, %v6425_v49 }
 0x824   : > { %6438 = vrcp.f32 %v4366_v59 }
 0x825   : > { %v6427_v62 = vpop.eup %6426  ;;  %6440 = vrcp.f32 %v4365_v60 }
 0x826   : > { %v6429_v1 = vpop.eup %6428  ;;  %v4368_v4 = vadd.f32 1.0, %v6427_v62 }
 0x827   : > { %v6431_v5 = vpop.eup %6430  ;;  %v4386_v9 = vmul.f32 %v6429_v1, %v4330_v35 }
 0x828   : > { %v6433_v6 = vpop.eup %6432  ;;  %v4385_v7 = vmul.f32 %v6431_v5, %v4329_v26  ;;  %6442 = vrcp.f32 %v4368_v4 }
 0x829   : > { %v4367_v10 = vadd.f32 1.0, %v6433_v6 }
 0x82a   : > { %v6435_v11 = vpop.eup %6434  ;;  %5880 = vmatprep.mubr.msk.f32.mxu1 %vm1353_vm3, %v4385_v7 }
 0x82b   : > { %v6437_v12 = vpop.eup %6436  ;;  %6444 = vrcp.f32 %v4367_v10  ;;  %5881 = vmatmul.mubr.msk.f32.vlgmr.msra.gmra.mrb[32].mxu1 %vm1353_vm3, %v4386_v9  ;;  %v4388_v14 = vmul.f32 %v6435_v11, %v4332_v28 }
 0x82c   : > { %v4387_v13 = vmul.f32 %v6437_v12, %v4331_v42  ;;  %6068 = vmatpush3.bf16.msra.mxu1 %v6067_v2 }
 0x82d   : > { %6069 = vmatprep.subr.bf16.mxu1 %v6618_v33 }
 0x82e   : > { %v6439_v15 = vpop.eup %6438  ;;  %5883 = vmatprep.mubr.msk.f32.mxu1 %vm1353_vm3, %v4387_v13 }
 0x82f   : > { %v6441_v61 = vpop.eup %6440  ;;  %5884 = vmatmul.mubr.msk.f32.gmra.mrb[34].mxu1 %vm1353_vm3, %v4388_v14  ;;  %v4390_v20 = vmul.f32 %v6439_v15, %v4334_v39 }
 0x830   : > { %v4389_v63 = vmul.f32 %v6441_v61, %v4333_v31  ;;  %6071 = vmatpush3.bf16.msra.mxu1 %v6070_v18  ;;  %v6073_v18 = vpack.c.bf16 %v4666_v30, %v4665_v29 }
 0x831   : > { %6072 = vmatprep.subr.bf16.mxu1 %v6618_v33 }
 0x832   : > { %5886 = vmatprep.mubr.msk.f32.mxu1 %vm1353_vm3, %v4389_v63  ;;  %v6443_v3 = vpop.eup %6442 }
 0x833   : > { %5887 = vmatmul.mubr.msk.f32.gmra.mrb[36].mxu1 %vm1353_vm3, %v4390_v20  ;;  %v4392_v23 = vmul.f32 %v6443_v3, %v4336_v48 }
 0x835   : > { %v6445_v21 = vpop.eup %6444 }
 0x836   : > { %v4391_v22 = vmul.f32 %v6445_v21, %v4335_v27 }
 0x838   : > { %5889 = vmatprep.mubr.msk.f32.mxu1 %vm1353_vm3, %v4391_v22 }
 0x839   : > { %5890 = vmatmul.mubr.msk.f32.gmra.mrb[38].mxu1 %vm1353_vm3, %v4392_v23 }
 0x83a   : > { %5900 = vmatprep.mubr.msk.f32.mxu1 %vm6619_vm5, %v6617_v0 }
 0x8fe   : > { %v5882_v35 = vpop.f32.mrb[32].mxu1 }
 0x8ff   : > { %v4496_v36 = vadd.f32 %v5882_v35, %v5141_v34  ;;  %v4490_v26 = vpop.f32.mrb[33].mxu1 }
 0x900   : > { %v4491_v37 = vadd.f32 %v5141_v34, %v4490_v26 }
 0x901   : > { %v4531_v41 = vsel %vm4529_vm11, %v4496_v36, 0.0 }
 0x902   : > { %v4530_v44 = vsel %vm4529_vm11, %v4491_v37, 0.0  ;;  %v5885_v28 = vpop.f32.mrb[34].mxu1 }
 0x903   : > { %v4532_v19 = vadd.f32 %v4531_v41, %v4530_v44  ;;  %v4506_v42 = vadd.f32 %v5885_v28, %v5141_v34  ;;  %v4500_v16 = vpop.f32.mrb[35].mxu1 }
 0x904   : > { %v4501_v55 = vadd.f32 %v5141_v34, %v4500_v16 }
 0x905   : > { %v4533_v51 = vrot.slane %v4532_v19, 4  ;;  %v4540_v33 = vsel %vm4529_vm11, %v4506_v42, 0.0 }
 0x906   : > { %v4539_v39 = vsel %vm4529_vm11, %v4501_v55, 0.0  ;;  %v5888_v47 = vpop.f32.mrb[36].mxu1 }
 0x907   : > { %v4534_v31 = vadd.f32 %v4533_v51, %v4532_v19  ;;  %v4541_v43 = vadd.f32 %v4540_v33, %v4539_v39  ;;  %v4516_v46 = vadd.f32 %v5888_v47, %v5141_v34  ;;  %v4510_v8 = vpop.f32.mrb[37].mxu1  ;;  %v5153_v19 = vld [vmem:[%s7571_s1 + $0x9] ss:$0 sm:$0xff] }
 0x908   : > { %v4511_v48 = vadd.f32 %v5141_v34, %v4510_v8 }
 0x909   : > { %v4535_v50 = vrot.slane %v4534_v31, 2  ;;  %v4542_v27 = vrot.slane %v4541_v43, 4  ;;  %v4549_v52 = vsel %vm4529_vm11, %v4516_v46, 0.0 }
 0x90a   : > { %v4548_v17 = vsel %vm4529_vm11, %v4511_v48, 0.0 }
 0x90b   : > { %v4536_v32 = vadd.f32 %v4535_v50, %v4534_v31  ;;  %v4543_v40 = vadd.f32 %v4542_v27, %v4541_v43  ;;  %v4550_v45 = vadd.f32 %v4549_v52, %v4548_v17 }
 0x90c   : > { %v5891_v54 = vpop.f32.mrb[38].mxu1 }
 0x90d   : > { %v4537_v53 = vrot.slane %v4536_v32, 1  ;;  %v4544_v38 = vrot.slane %v4543_v40, 2  ;;  %v4551_v56 = vrot.slane %v4550_v45, 4  ;;  %v4526_v57 = vadd.f32 %v5891_v54, %v5141_v34  ;;  %v4520_v58 = vpop.f32.mrb[39].mxu1 }
 0x90e   : > { %v4521_v49 = vadd.f32 %v5141_v34, %v4520_v58  ;;  %v5150_v34 = vld [vmem:[%s7571_s1 + $0x8] ss:$0 sm:$0xff] }
 0x90f   : > { %v4545_v59 = vadd.f32 %v4544_v38, %v4543_v40  ;;  %v4552_v60 = vadd.f32 %v4551_v56, %v4550_v45  ;;  %v4558_v62 = vsel %vm4529_vm11, %v4526_v57, 0.0  ;;  %v4538_v4 = vadd.f32 %v4537_v53, %v4536_v32 }
 0x910   : > { %v4557_v1 = vsel %vm4529_vm11, %v4521_v49, 0.0 }
 0x911   : > { %v4546_v5 = vrot.slane %v4545_v59, 1  ;;  %v4553_v6 = vrot.slane %v4552_v60, 2  ;;  %v4559_v7 = vadd.f32 %v4558_v62, %v4557_v1  ;;  %v4566_v12 = vmul.f32 0.0625, %v4538_v4 }
 0x913   : > { %v4547_v9 = vadd.f32 %v4546_v5, %v4545_v59  ;;  %v4554_v10 = vadd.f32 %v4553_v6, %v4552_v60  ;;  %v4560_v11 = vrot.slane %v4559_v7, 4 }
 0x915   : > { %v4567_v13 = vmul.f32 0.0625, %v4547_v9  ;;  %v4555_v14 = vrot.slane %v4554_v10, 1  ;;  %v4561_v15 = vadd.f32 %v4560_v11, %v4559_v7 }
 0x917   : > { %v4556_v61 = vadd.f32 %v4555_v14, %v4554_v10  ;;  %v4562_v63 = vrot.slane %v4561_v15, 2  ;;  %v4583_v20 = vsel %vm2428_vm6, %v4567_v13, %v4566_v12 }
 0x919   : > { %v4568_v3 = vmul.f32 0.0625, %v4556_v61  ;;  %v4563_v21 = vadd.f32 %v4562_v63, %v4561_v15 }
 0x91b   : > { %v4564_v22 = vrot.slane %v4563_v21, 1  ;;  %v4584_v23 = vsel %vm2430_vm7, %v4568_v3, %v4583_v20 }
 0x91d   : > { %v4565_v24 = vadd.f32 %v4564_v22, %v4563_v21 }
 0x91f   : > { %v4569_v25 = vmul.f32 0.0625, %v4565_v24 }
 0x921   : > { %v4585_v2 = vsel %vm2432_vm8, %v4569_v25, %v4584_v23 }
 0x922   : > { %5901 = vmatmul.mubr.msk.f32.vlgmr.msra.gmra.mrb[40].mxu1 %vm4529_vm11, %v4585_v2 }
 0x923   : > { %5907 = vmatprep.mubr.msk.f32.mxu1 %vm6619_vm5, %v6617_v0  ;;  %6074 = vmatpush3.bf16.msra.mxu1 %v6073_v18 }
 0x9f5   : > { %v4654_v35 = vpop.f32.mrb[40].mxu1 }
 0x9f6   : > { %v4655_v36 = vadd.f32 %v5150_v34, %v4654_v35  ;;  %v5902_v26 = vpop.f32.mrb[41].mxu1 }
 0x9f8   : > { %v5152_v37 = vmul.f32 -1.442695, %v4655_v36 }
 0x9fa   : > { %6446 = vpow2.f32 %v5152_v37 }
 0xa04   : > { %v6447_v41 = vpop.eup %6446 }
 0xa05   : > { %v4661_v44 = vadd.f32 1.0, %v6447_v41 }
 0xa07   : > { %6448 = vrcp.f32 %v4661_v44 }
 0xa11   : > { %v6449_v28 = vpop.eup %6448 }
 0xa12   : > { %v4664_v0 = vmul.f32 %v6449_v28, %v4655_v36 }
 0xa14   : > { %5908 = vmatmul.mubr.msk.f32.vlgmr.msra.gmra.mrb[42].mxu1 %vm1353_vm3, %v4664_v0 }
 0xae7   : > { %v4741_v42 = vpop.f32.mrb[42].mxu1 }
 0xae8   : > { %v4742_v16 = vadd.f32 %v5153_v19, %v4741_v42  ;;  %v5909_v55 = vpop.f32.mrb[43].mxu1 }
 0xaea   : > { %4745 = vst [vmem:[%s516_s22] sm:$0xf] %v4742_v16 }
 0xaeb PF: > { %s7603_s24 = sld [smem:[#allocation14_spill]] }
 0xaf1   : > { %s26_s25 = sadd.s32 1, %s7603_s24  }
 0xaf2   : > { %p23_p8 = scmp.ge.s32.totalorder %s26_s25, 4  }
 0xaf4   :  { %25 = sbr.rel (!%p23_p8) target bundleno = 6 (0x6), region = 139 }
 0xafb   :  { %4765 = vsyncpa [#allocation4], 1 }
 0xafc   :  { %4767 = vsyncpa [#allocation4 + $0x1], 1 }
 0xafd   :  { %4768 = vsyncpa [#allocation6], 1 }
 0xafe   :  { %4769 = vsyncpa [#allocation9], 1 }

</bundles_post_ra>
